<compile_context>
chip_gen: v7x
topology: tpu7x:2x2x1
jax: 0.10.0
libtpu: 0.0.40
codegen_flags: <defaults>
</compile_context>

<pallas_src>
import math
import functools

import jax
import jax.numpy as jnp
from jax.experimental import pallas as pl
from jax.experimental.pallas import tpu as pltpu  # noqa: F401  (TPU backend)

D_MODEL = 32
NHEAD = 4
DFF = 64
NUM_LAYERS = 2
EPS = 1e-5
MASK_VALUE = -1e30

# Order of the D-wide bias / gamma / beta rows in the packed (L, 15, D) tensor.
_BVEC_ORDER = ["sa_bq", "sa_bk", "sa_bv", "sa_bo",
               "ca_bq", "ca_bk", "ca_bv", "ca_bo",
               "n1_g", "n1_b", "n2_g", "n2_b", "n3_g", "n3_b", "ff_b2"]
# Lane order of the packed projection weights (L, D, 6*D).
_WPROJ_ORDER = ["sa_wq", "sa_wk", "sa_wv", "ca_wq", "ca_wk", "ca_wv"]


def _layer_norm(x, g, b):
    mu = jnp.mean(x, axis=-1, keepdims=True)
    var = jnp.mean((x - mu) ** 2, axis=-1, keepdims=True)
    return (x - mu) * jax.lax.rsqrt(var + EPS) * g + b


def _batch_index(shape, dim, batch):
    # row = seq_idx * batch + b  ->  batch index = row mod batch.
    # Computed with f32 floor (exact for these small integer ranges); avoids
    # vector integer div/rem, which Mosaic may not lower.
    i = jax.lax.broadcasted_iota(jnp.int32, shape, dim).astype(jnp.float32)
    return i - float(batch) * jnp.floor((i + 0.5) * (1.0 / float(batch)))


def _batch_mask(rows_q, rows_k, batch):
    # Additive block-diagonal mask: 0 where query/key rows belong to the same
    # batch element, else -1e30 (exact: masked logits underflow to prob 0).
    qb = _batch_index((rows_q, rows_k), 0, batch)
    kb = _batch_index((rows_q, rows_k), 1, batch)
    return jnp.where(qb == kb, 0.0, MASK_VALUE).astype(jnp.float32)


def decoder_kernel(tgt_ref, mem_ref, qpos_ref, pos_ref,
                   w_proj_ref, w_o_ref, b_vec_ref,
                   w_ff1_ref, b_ff1_ref, w_ff2_ref, fin_ref,
                   out_ref, *, nhead, batch):
    d = tgt_ref.shape[-1]
    num_layers = w_proj_ref.shape[0]
    hd = d // nhead
    scale = 1.0 / math.sqrt(hd)
    bf16 = jnp.bfloat16
    f32 = jnp.float32

    # Rows are interleaved across batch: row = seq_idx * B + b.
    x = tgt_ref[...]                       # (B*Lt, D) f32 residual stream
    qpos = qpos_ref[...]                   # (B*Lt, D)
    mem = mem_ref[...]                     # (B*Lm, D)
    mem_k_in = (mem + pos_ref[...]).astype(bf16)
    mem_v_in = mem.astype(bf16)
    rq = x.shape[0]
    rk = mem.shape[0]

    # In-kernel block-diagonal masks (no HBM traffic, no mask DMAs).
    smask = _batch_mask(rq, rq, batch)     # (B*Lt, B*Lt)
    cmask = _batch_mask(rq, rk, batch)     # (B*Lt, B*Lm)

    def split_heads(t):
        # (rows, D) f32 -> (H, rows, hd) bf16 ; leading-axis stack only
        # (no minor-dim reshape/transpose).
        return jnp.stack([t[:, h * hd:(h + 1) * hd] for h in range(nhead)],
                         axis=0).astype(bf16)

    def attend(q, k, v, mask_add, wo_h, bo):
        # q: (rq, D) f32 ; k, v: (rows_k, D) f32 ; wo_h: (H, hd, D) bf16.
        qh = split_heads(q)                # (H, rq, hd)
        kh = split_heads(k)                # (H, rk, hd)
        vh = split_heads(v)                # (H, rk, hd)
        # Head-batched scores: one MXU stream instead of a per-head loop.
        s = jax.lax.dot_general(qh, kh, (((2,), (2,)), ((0,), (0,))),
                                preferred_element_type=f32) * scale  # (H,rq,rk)
        s = s + mask_add[None, :, :]
        s = s - jnp.max(s, axis=-1, keepdims=True)
        p = jnp.exp(s)
        p = p * pl.reciprocal(jnp.sum(p, axis=-1, keepdims=True), approx=True)
        ctx = jax.lax.dot_general(p.astype(bf16), vh,
                                  (((2,), (1,)), ((0,), (0,))),
                                  preferred_element_type=f32)          # (H,rq,hd)
        # Output projection: one head-batched dot with head-major Wo, then a
        # cheap sum over the leading head axis (replaces 4 dots + concat).
        o3 = jax.lax.dot_general(ctx.astype(bf16), wo_h,
                                 (((2,), (1,)), ((0,), (0,))),
                                 preferred_element_type=f32)           # (H,rq,D)
        out = o3[0]
        for h in range(1, nhead):
            out = out + o3[h]
        return out + bo

    for l in range(num_layers):            # statically unrolled (L == 2)
        w_all = w_proj_ref[l]              # (D, 6D) bf16: [saQ|saK|saV|caQ|caK|caV]
        wo_sa = w_o_ref[2 * l]             # (H, hd, D) bf16
        wo_ca = w_o_ref[2 * l + 1]         # (H, hd, D) bf16
        bvec = b_vec_ref[l]                # (15, D) f32
        w1 = w_ff1_ref[l]                  # (D, DFF) bf16
        b1 = b_ff1_ref[l]                  # (1, DFF) f32
        w2 = w_ff2_ref[l]                  # (DFF, D) bf16

        def bv(i):
            return bvec[i:i + 1, :]        # (1, D)

        # ---- self attention: q = k = x + query_pos, v = x ----
        qk_in = (x + qpos).astype(bf16)
        qk = jnp.dot(qk_in, w_all[:, 0:2 * d],
                     preferred_element_type=f32)                # fused Q|K dot
        q = qk[:, 0:d] + bv(0)
        k = qk[:, d:2 * d] + bv(1)
        v = jnp.dot(x.astype(bf16), w_all[:, 2 * d:3 * d],
                    preferred_element_type=f32) + bv(2)
        sa = attend(q, k, v, smask, wo_sa, bv(3))
        x = _layer_norm(x + sa, bv(8), bv(9))

        # ---- cross attention: q = x + query_pos, k = memory + pos, v = memory
        cq = jnp.dot((x + qpos).astype(bf16), w_all[:, 3 * d:4 * d],
                     preferred_element_type=f32) + bv(4)
        ck = jnp.dot(mem_k_in, w_all[:, 4 * d:5 * d],
                     preferred_element_type=f32) + bv(5)
        cv = jnp.dot(mem_v_in, w_all[:, 5 * d:6 * d],
                     preferred_element_type=f32) + bv(6)
        ca = attend(cq, ck, cv, cmask, wo_ca, bv(7))
        x = _layer_norm(x + ca, bv(10), bv(11))

        # ---- feed forward (ReLU), dropout = identity (eval) ----
        hid = jnp.maximum(
            jnp.dot(x.astype(bf16), w1, preferred_element_type=f32) + b1, 0.0)
        ff = jnp.dot(hid.astype(bf16), w2,
                     preferred_element_type=f32) + bv(14)
        x = _layer_norm(x + ff, bv(12), bv(13))

    fin = fin_ref[...]                     # (2, D): final decoder-norm gamma/beta
    out_ref[...] = _layer_norm(x, fin[0:1, :], fin[1:2, :])


@jax.jit
def transformer_decoder(tgt, memory, pos, query_pos, packed):
    """Inputs in PyTorch layout: tgt/query_pos (Lt, B, D), memory/pos (Lm, B, D)."""
    Lt, B, D = tgt.shape
    Lm = memory.shape[0]

    kernel = functools.partial(decoder_kernel, nhead=NHEAD, batch=B)
    out2d = pl.pallas_call(
        kernel,
        out_shape=jax.ShapeDtypeStruct((B * Lt, D), jnp.float32),
    )(
        tgt.reshape(Lt * B, D),            # free row-major collapse
        memory.reshape(Lm * B, D),
        query_pos.reshape(Lt * B, D),
        pos.reshape(Lm * B, D),
        packed["w_proj"], packed["w_o"], packed["b_vec"],
        packed["w_ff1"], packed["b_ff1"], packed["w_ff2"], packed["fin"],
    )
    # Inverse collapse + unsqueeze(0): (B*Lt, D) -> (1, Lt, B, D)
    return out2d.reshape(Lt, B, D)[None]


def pack_params(layer_params, final_norm_params):
    bf16 = jnp.bfloat16
    d = layer_params[0]["sa_wq"].shape[0]
    hd = d // NHEAD
    # (L, D, 6D) bf16: lane-concat of all six projection matrices per layer.
    w_proj = jnp.stack(
        [jnp.concatenate([p[k] for k in _WPROJ_ORDER], axis=1)
         for p in layer_params], axis=0).astype(bf16)
    # (2L, H, hd, D) bf16: head-major output-projection weights [sa, ca] per layer.
    w_o = jnp.stack(
        [p[k].reshape(NHEAD, hd, d)
         for p in layer_params for k in ("sa_wo", "ca_wo")], axis=0).astype(bf16)
    b_vec = jnp.stack(
        [jnp.stack([p[k] for k in _BVEC_ORDER], axis=0) for p in layer_params],
        axis=0)                                                     # (L, 15, D) f32
    w_ff1 = jnp.stack([p["ff_w1"] for p in layer_params],
                      axis=0).astype(bf16)                          # (L, D, DFF)
    b_ff1 = jnp.stack([p["ff_b1"][None, :] for p in layer_params],
                      axis=0)                                       # (L, 1, DFF) f32
    w_ff2 = jnp.stack([p["ff_w2"] for p in layer_params],
                      axis=0).astype(bf16)                          # (L, DFF, D)
    fin = jnp.stack([final_norm_params["g"], final_norm_params["b"]],
                    axis=0)                                         # (2, D) f32
    return {"w_proj": w_proj, "w_o": w_o, "b_vec": b_vec,
            "w_ff1": w_ff1, "b_ff1": b_ff1, "w_ff2": w_ff2, "fin": fin}


def init_layer_params(key, d_model, dff):
    # TODO(synk): real look2hear/PyTorch checkpoints store (out, in) matrices and
    # a packed in_proj_weight; they must be split/transposed to this (fan_in,
    # fan_out) x@W convention before pack_params.
    ks = jax.random.split(key, 10)

    def lin_w(k, fan_in, fan_out):
        return (jax.random.normal(k, (fan_in, fan_out), jnp.float32)
                * (1.0 / math.sqrt(fan_in)))

    p = {}
    p["sa_wq"] = lin_w(ks[0], d_model, d_model)
    p["sa_wk"] = lin_w(ks[1], d_model, d_model)
    p["sa_wv"] = lin_w(ks[2], d_model, d_model)
    p["sa_wo"] = lin_w(ks[3], d_model, d_model)
    p["ca_wq"] = lin_w(ks[4], d_model, d_model)
    p["ca_wk"] = lin_w(ks[5], d_model, d_model)
    p["ca_wv"] = lin_w(ks[6], d_model, d_model)
    p["ca_wo"] = lin_w(ks[7], d_model, d_model)
    for pre in ("sa", "ca"):
        for b in ("bq", "bk", "bv", "bo"):
            p[f"{pre}_{b}"] = jnp.zeros((d_model,), jnp.float32)
    p["ff_w1"] = lin_w(ks[8], d_model, dff)
    p["ff_b1"] = jnp.zeros((dff,), jnp.float32)
    p["ff_w2"] = lin_w(ks[9], dff, d_model)
    p["ff_b2"] = jnp.zeros((d_model,), jnp.float32)
    for n in ("n1", "n2", "n3"):
        p[f"{n}_g"] = jnp.ones((d_model,), jnp.float32)
        p[f"{n}_b"] = jnp.zeros((d_model,), jnp.float32)
    return p


if __name__ == "__main__":
    B, LT, LM, D = 2, 8, 16, D_MODEL
    root = jax.random.PRNGKey(0)
    k_in, k_par = jax.random.split(root)
    k_tgt, k_mem, k_pos, k_qpos = jax.random.split(k_in, 4)

    # PyTorch layout: (seq, batch, d_model)
    tgt = jax.random.normal(k_tgt, (LT, B, D), jnp.float32)
    memory = jax.random.normal(k_mem, (LM, B, D), jnp.float32)
    pos = jax.random.normal(k_pos, (LM, B, D), jnp.float32)
    query_pos = jax.random.normal(k_qpos, (LT, B, D), jnp.float32)

    layer_keys = jax.random.split(k_par, NUM_LAYERS)
    layer_params = [init_layer_params(k, D_MODEL, DFF) for k in layer_keys]
    final_norm = {"g": jnp.ones((D,), jnp.float32),
                  "b": jnp.zeros((D,), jnp.float32)}
    packed = pack_params(layer_params, final_norm)

    out = transformer_decoder(tgt, memory, pos, query_pos, packed)
    out = jax.block_until_ready(out)

    assert out.shape == (1, LT, B, D), out.shape
    assert bool(jnp.all(jnp.isfinite(out)))
    # TODO(synk): tgt_mask / memory_mask / key_padding_mask, training-mode
    # dropout and return_intermediate=True are not exercised by this
    # eval-mode forward.
    print("KERNEL_OK")
</pallas_src>

<mosaic_0001>
module attributes {stable_mosaic.version = 11 : i64} {
  func.func @decoder_kernel(%arg0: memref<16x32xf32, #tpu.memory_space<vmem>>, %arg1: memref<32x32xf32, #tpu.memory_space<vmem>>, %arg2: memref<16x32xf32, #tpu.memory_space<vmem>>, %arg3: memref<32x32xf32, #tpu.memory_space<vmem>>, %arg4: memref<2x32x192xbf16, #tpu.memory_space<vmem>>, %arg5: memref<4x4x8x32xbf16, #tpu.memory_space<vmem>>, %arg6: memref<2x15x32xf32, #tpu.memory_space<vmem>>, %arg7: memref<2x32x64xbf16, #tpu.memory_space<vmem>>, %arg8: memref<2x1x64xf32, #tpu.memory_space<vmem>>, %arg9: memref<2x64x32xbf16, #tpu.memory_space<vmem>>, %arg10: memref<2x32xf32, #tpu.memory_space<vmem>>, %arg11: memref<16x32xf32, #tpu.memory_space<vmem>>) attributes {dimension_semantics = [], scalar_prefetch = 0 : i64, scratch_operands = 0 : i64, tpu.core_type = #tpu.core_type<tc>} {
    %c0 = arith.constant 0 : index
    %c0_0 = arith.constant 0 : index
    %0 = vector.load %arg0[%c0, %c0_0] : memref<16x32xf32, #tpu.memory_space<vmem>>, vector<16x32xf32>
    %c0_1 = arith.constant 0 : index
    %c0_2 = arith.constant 0 : index
    %1 = vector.load %arg2[%c0_1, %c0_2] : memref<16x32xf32, #tpu.memory_space<vmem>>, vector<16x32xf32>
    %c0_3 = arith.constant 0 : index
    %c0_4 = arith.constant 0 : index
    %2 = vector.load %arg1[%c0_3, %c0_4] : memref<32x32xf32, #tpu.memory_space<vmem>>, vector<32x32xf32>
    %c0_5 = arith.constant 0 : index
    %c0_6 = arith.constant 0 : index
    %3 = vector.load %arg3[%c0_5, %c0_6] : memref<32x32xf32, #tpu.memory_space<vmem>>, vector<32x32xf32>
    %4 = arith.addf %2, %3 : vector<32x32xf32>
    %5 = arith.truncf %4 : vector<32x32xf32> to vector<32x32xbf16>
    %6 = arith.truncf %2 : vector<32x32xf32> to vector<32x32xbf16>
    %7 = tpu.iota {dimensions = array<i32: 0>} : vector<16x16xi32>
    %8 = arith.sitofp %7 : vector<16x16xi32> to vector<16x16xf32>
    %cst = arith.constant 5.000000e-01 : f32
    %9 = vector.broadcast %cst : f32 to vector<16x16xf32>
    %10 = arith.addf %8, %9 : vector<16x16xf32>
    %cst_7 = arith.constant 5.000000e-01 : f32
    %11 = vector.broadcast %cst_7 : f32 to vector<16x16xf32>
    %12 = arith.mulf %10, %11 : vector<16x16xf32>
    %13 = math.floor %12 : vector<16x16xf32>
    %cst_8 = arith.constant 2.000000e+00 : f32
    %14 = vector.broadcast %cst_8 : f32 to vector<16x16xf32>
    %15 = arith.mulf %14, %13 : vector<16x16xf32>
    %16 = arith.subf %8, %15 : vector<16x16xf32>
    %17 = tpu.iota {dimensions = array<i32: 1>} : vector<16x16xi32>
    %18 = arith.sitofp %17 : vector<16x16xi32> to vector<16x16xf32>
    %cst_9 = arith.constant 5.000000e-01 : f32
    %19 = vector.broadcast %cst_9 : f32 to vector<16x16xf32>
    %20 = arith.addf %18, %19 : vector<16x16xf32>
    %cst_10 = arith.constant 5.000000e-01 : f32
    %21 = vector.broadcast %cst_10 : f32 to vector<16x16xf32>
    %22 = arith.mulf %20, %21 : vector<16x16xf32>
    %23 = math.floor %22 : vector<16x16xf32>
    %cst_11 = arith.constant 2.000000e+00 : f32
    %24 = vector.broadcast %cst_11 : f32 to vector<16x16xf32>
    %25 = arith.mulf %24, %23 : vector<16x16xf32>
    %26 = arith.subf %18, %25 : vector<16x16xf32>
    %27 = arith.cmpf oeq, %16, %26 : vector<16x16xf32>
    %cst_12 = arith.constant 0.000000e+00 : f32
    %cst_13 = arith.constant -1.000000e+30 : f32
    %28 = vector.broadcast %cst_12 : f32 to vector<16x16xf32>
    %29 = vector.broadcast %cst_13 : f32 to vector<16x16xf32>
    %30 = arith.select %27, %28, %29 : vector<16x16xi1>, vector<16x16xf32>
    %31 = tpu.iota {dimensions = array<i32: 0>} : vector<16x32xi32>
    %32 = arith.sitofp %31 : vector<16x32xi32> to vector<16x32xf32>
    %cst_14 = arith.constant 5.000000e-01 : f32
    %33 = vector.broadcast %cst_14 : f32 to vector<16x32xf32>
    %34 = arith.addf %32, %33 : vector<16x32xf32>
    %cst_15 = arith.constant 5.000000e-01 : f32
    %35 = vector.broadcast %cst_15 : f32 to vector<16x32xf32>
    %36 = arith.mulf %34, %35 : vector<16x32xf32>
    %37 = math.floor %36 : vector<16x32xf32>
    %cst_16 = arith.constant 2.000000e+00 : f32
    %38 = vector.broadcast %cst_16 : f32 to vector<16x32xf32>
    %39 = arith.mulf %38, %37 : vector<16x32xf32>
    %40 = arith.subf %32, %39 : vector<16x32xf32>
    %41 = tpu.iota {dimensions = array<i32: 1>} : vector<16x32xi32>
    %42 = arith.sitofp %41 : vector<16x32xi32> to vector<16x32xf32>
    %cst_17 = arith.constant 5.000000e-01 : f32
    %43 = vector.broadcast %cst_17 : f32 to vector<16x32xf32>
    %44 = arith.addf %42, %43 : vector<16x32xf32>
    %cst_18 = arith.constant 5.000000e-01 : f32
    %45 = vector.broadcast %cst_18 : f32 to vector<16x32xf32>
    %46 = arith.mulf %44, %45 : vector<16x32xf32>
    %47 = math.floor %46 : vector<16x32xf32>
    %cst_19 = arith.constant 2.000000e+00 : f32
    %48 = vector.broadcast %cst_19 : f32 to vector<16x32xf32>
    %49 = arith.mulf %48, %47 : vector<16x32xf32>
    %50 = arith.subf %42, %49 : vector<16x32xf32>
    %51 = arith.cmpf oeq, %40, %50 : vector<16x32xf32>
    %cst_20 = arith.constant 0.000000e+00 : f32
    %cst_21 = arith.constant -1.000000e+30 : f32
    %52 = vector.broadcast %cst_20 : f32 to vector<16x32xf32>
    %53 = vector.broadcast %cst_21 : f32 to vector<16x32xf32>
    %54 = arith.select %51, %52, %53 : vector<16x32xi1>, vector<16x32xf32>
    %c0_22 = arith.constant 0 : index
    %c0_23 = arith.constant 0 : index
    %c0_24 = arith.constant 0 : index
    %55 = vector.load %arg4[%c0_22, %c0_23, %c0_24] : memref<2x32x192xbf16, #tpu.memory_space<vmem>>, vector<1x32x192xbf16>
    %56 = vector.shape_cast %55 : vector<1x32x192xbf16> to vector<32x192xbf16>
    %c0_25 = arith.constant 0 : index
    %c0_26 = arith.constant 0 : index
    %c0_27 = arith.constant 0 : index
    %c0_28 = arith.constant 0 : index
    %57 = vector.load %arg5[%c0_25, %c0_26, %c0_27, %c0_28] : memref<4x4x8x32xbf16, #tpu.memory_space<vmem>>, vector<1x4x8x32xbf16>
    %58 = vector.shape_cast %57 : vector<1x4x8x32xbf16> to vector<4x8x32xbf16>
    %c1 = arith.constant 1 : index
    %c0_29 = arith.constant 0 : index
    %c0_30 = arith.constant 0 : index
    %c0_31 = arith.constant 0 : index
    %59 = vector.load %arg5[%c1, %c0_29, %c0_30, %c0_31] : memref<4x4x8x32xbf16, #tpu.memory_space<vmem>>, vector<1x4x8x32xbf16>
    %60 = vector.shape_cast %59 : vector<1x4x8x32xbf16> to vector<4x8x32xbf16>
    %c0_32 = arith.constant 0 : index
    %c0_33 = arith.constant 0 : index
    %c0_34 = arith.constant 0 : index
    %61 = vector.load %arg6[%c0_32, %c0_33, %c0_34] : memref<2x15x32xf32, #tpu.memory_space<vmem>>, vector<1x15x32xf32>
    %62 = vector.shape_cast %61 : vector<1x15x32xf32> to vector<15x32xf32>
    %c0_35 = arith.constant 0 : index
    %c0_36 = arith.constant 0 : index
    %c0_37 = arith.constant 0 : index
    %63 = vector.load %arg7[%c0_35, %c0_36, %c0_37] : memref<2x32x64xbf16, #tpu.memory_space<vmem>>, vector<1x32x64xbf16>
    %64 = vector.shape_cast %63 : vector<1x32x64xbf16> to vector<32x64xbf16>
    %c0_38 = arith.constant 0 : index
    %c0_39 = arith.constant 0 : index
    %c0_40 = arith.constant 0 : index
    %65 = vector.load %arg8[%c0_38, %c0_39, %c0_40] : memref<2x1x64xf32, #tpu.memory_space<vmem>>, vector<1x1x64xf32>
    %66 = vector.shape_cast %65 : vector<1x1x64xf32> to vector<1x64xf32>
    %c0_41 = arith.constant 0 : index
    %c0_42 = arith.constant 0 : index
    %c0_43 = arith.constant 0 : index
    %67 = vector.load %arg9[%c0_41, %c0_42, %c0_43] : memref<2x64x32xbf16, #tpu.memory_space<vmem>>, vector<1x64x32xbf16>
    %68 = vector.shape_cast %67 : vector<1x64x32xbf16> to vector<64x32xbf16>
    %69 = arith.addf %0, %1 : vector<16x32xf32>
    %70 = arith.truncf %69 : vector<16x32xf32> to vector<16x32xbf16>
    %71 = vector.extract_strided_slice %56 {offsets = [0, 0], sizes = [32, 64], strides = [1, 1]} : vector<32x192xbf16> to vector<32x64xbf16>
    %cst_44 = arith.constant dense<0.000000e+00> : vector<16x64xf32>
    %72 = tpu.matmul %70, %71, %cst_44 {dimension_numbers = #tpu.dot_dimension_numbers<[1], [0], [0], [1], [0, 0, 1, 1], [], []>} : vector<16x32xbf16>, vector<32x64xbf16>, vector<16x64xf32> -> vector<16x64xf32>
    %73 = vector.extract_strided_slice %72 {offsets = [0, 0], sizes = [16, 32], strides = [1, 1]} : vector<16x64xf32> to vector<16x32xf32>
    %74 = vector.extract_strided_slice %62 {offsets = [0, 0], sizes = [1, 32], strides = [1, 1]} : vector<15x32xf32> to vector<1x32xf32>
    %75 = vector.broadcast %74 : vector<1x32xf32> to vector<16x32xf32>
    %76 = arith.addf %73, %75 : vector<16x32xf32>
    %77 = vector.extract_strided_slice %72 {offsets = [0, 32], sizes = [16, 32], strides = [1, 1]} : vector<16x64xf32> to vector<16x32xf32>
    %78 = vector.extract_strided_slice %62 {offsets = [1, 0], sizes = [1, 32], strides = [1, 1]} : vector<15x32xf32> to vector<1x32xf32>
    %79 = vector.broadcast %78 : vector<1x32xf32> to vector<16x32xf32>
    %80 = arith.addf %77, %79 : vector<16x32xf32>
    %81 = arith.truncf %0 : vector<16x32xf32> to vector<16x32xbf16>
    %82 = vector.extract_strided_slice %56 {offsets = [0, 64], sizes = [32, 32], strides = [1, 1]} : vector<32x192xbf16> to vector<32x32xbf16>
    %cst_45 = arith.constant dense<0.000000e+00> : vector<16x32xf32>
    %83 = tpu.matmul %81, %82, %cst_45 {dimension_numbers = #tpu.dot_dimension_numbers<[1], [0], [0], [1], [0, 0, 1, 1], [], []>} : vector<16x32xbf16>, vector<32x32xbf16>, vector<16x32xf32> -> vector<16x32xf32>
    %84 = vector.extract_strided_slice %62 {offsets = [2, 0], sizes = [1, 32], strides = [1, 1]} : vector<15x32xf32> to vector<1x32xf32>
    %85 = vector.broadcast %84 : vector<1x32xf32> to vector<16x32xf32>
    %86 = arith.addf %83, %85 : vector<16x32xf32>
    %87 = vector.extract_strided_slice %62 {offsets = [3, 0], sizes = [1, 32], strides = [1, 1]} : vector<15x32xf32> to vector<1x32xf32>
    %88 = vector.extract_strided_slice %76 {offsets = [0, 0], sizes = [16, 8], strides = [1, 1]} : vector<16x32xf32> to vector<16x8xf32>
    %89 = vector.extract_strided_slice %76 {offsets = [0, 8], sizes = [16, 8], strides = [1, 1]} : vector<16x32xf32> to vector<16x8xf32>
    %90 = vector.extract_strided_slice %76 {offsets = [0, 16], sizes = [16, 8], strides = [1, 1]} : vector<16x32xf32> to vector<16x8xf32>
    %91 = vector.extract_strided_slice %76 {offsets = [0, 24], sizes = [16, 8], strides = [1, 1]} : vector<16x32xf32> to vector<16x8xf32>
    %92 = vector.shape_cast %88 : vector<16x8xf32> to vector<1x16x8xf32>
    %93 = vector.shape_cast %89 : vector<16x8xf32> to vector<1x16x8xf32>
    %94 = vector.shape_cast %90 : vector<16x8xf32> to vector<1x16x8xf32>
    %95 = vector.shape_cast %91 : vector<16x8xf32> to vector<1x16x8xf32>
    %96 = tpu.concatenate %92, %93, %94, %95 in 0 : vector<1x16x8xf32>, vector<1x16x8xf32>, vector<1x16x8xf32>, vector<1x16x8xf32> -> vector<4x16x8xf32>
    %97 = arith.truncf %96 : vector<4x16x8xf32> to vector<4x16x8xbf16>
    %98 = vector.extract_strided_slice %80 {offsets = [0, 0], sizes = [16, 8], strides = [1, 1]} : vector<16x32xf32> to vector<16x8xf32>
    %99 = vector.extract_strided_slice %80 {offsets = [0, 8], sizes = [16, 8], strides = [1, 1]} : vector<16x32xf32> to vector<16x8xf32>
    %100 = vector.extract_strided_slice %80 {offsets = [0, 16], sizes = [16, 8], strides = [1, 1]} : vector<16x32xf32> to vector<16x8xf32>
    %101 = vector.extract_strided_slice %80 {offsets = [0, 24], sizes = [16, 8], strides = [1, 1]} : vector<16x32xf32> to vector<16x8xf32>
    %102 = vector.shape_cast %98 : vector<16x8xf32> to vector<1x16x8xf32>
    %103 = vector.shape_cast %99 : vector<16x8xf32> to vector<1x16x8xf32>
    %104 = vector.shape_cast %100 : vector<16x8xf32> to vector<1x16x8xf32>
    %105 = vector.shape_cast %101 : vector<16x8xf32> to vector<1x16x8xf32>
    %106 = tpu.concatenate %102, %103, %104, %105 in 0 : vector<1x16x8xf32>, vector<1x16x8xf32>, vector<1x16x8xf32>, vector<1x16x8xf32> -> vector<4x16x8xf32>
    %107 = arith.truncf %106 : vector<4x16x8xf32> to vector<4x16x8xbf16>
    %108 = vector.extract_strided_slice %86 {offsets = [0, 0], sizes = [16, 8], strides = [1, 1]} : vector<16x32xf32> to vector<16x8xf32>
    %109 = vector.extract_strided_slice %86 {offsets = [0, 8], sizes = [16, 8], strides = [1, 1]} : vector<16x32xf32> to vector<16x8xf32>
    %110 = vector.extract_strided_slice %86 {offsets = [0, 16], sizes = [16, 8], strides = [1, 1]} : vector<16x32xf32> to vector<16x8xf32>
    %111 = vector.extract_strided_slice %86 {offsets = [0, 24], sizes = [16, 8], strides = [1, 1]} : vector<16x32xf32> to vector<16x8xf32>
    %112 = vector.shape_cast %108 : vector<16x8xf32> to vector<1x16x8xf32>
    %113 = vector.shape_cast %109 : vector<16x8xf32> to vector<1x16x8xf32>
    %114 = vector.shape_cast %110 : vector<16x8xf32> to vector<1x16x8xf32>
    %115 = vector.shape_cast %111 : vector<16x8xf32> to vector<1x16x8xf32>
    %116 = tpu.concatenate %112, %113, %114, %115 in 0 : vector<1x16x8xf32>, vector<1x16x8xf32>, vector<1x16x8xf32>, vector<1x16x8xf32> -> vector<4x16x8xf32>
    %117 = arith.truncf %116 : vector<4x16x8xf32> to vector<4x16x8xbf16>
    %cst_46 = arith.constant dense<0.000000e+00> : vector<4x16x16xf32>
    %118 = tpu.matmul %97, %107, %cst_46 {dimension_numbers = #tpu.dot_dimension_numbers<[2], [2], [1], [1], [0, 0, 0, 1, 1, 1], [0], [0]>} : vector<4x16x8xbf16>, vector<4x16x8xbf16>, vector<4x16x16xf32> -> vector<4x16x16xf32>
    %cst_47 = arith.constant 0.353553385 : f32
    %119 = vector.broadcast %cst_47 : f32 to vector<4x16x16xf32>
    %120 = arith.mulf %118, %119 : vector<4x16x16xf32>
    %121 = vector.shape_cast %30 : vector<16x16xf32> to vector<1x16x16xf32>
    %122 = vector.broadcast %121 : vector<1x16x16xf32> to vector<4x16x16xf32>
    %123 = arith.addf %120, %122 : vector<4x16x16xf32>
    %cst_48 = arith.constant dense<0xFF800000> : vector<4x16xf32>
    %124 = vector.multi_reduction <maximumf>, %123, %cst_48 [2] : vector<4x16x16xf32> to vector<4x16xf32>
    %125 = vector.shape_cast %124 : vector<4x16xf32> to vector<4x16x1xf32>
    %126 = vector.broadcast %125 : vector<4x16x1xf32> to vector<4x16x16xf32>
    %127 = arith.subf %123, %126 : vector<4x16x16xf32>
    %128 = math.exp %127 : vector<4x16x16xf32>
    %cst_49 = arith.constant dense<0.000000e+00> : vector<4x16xf32>
    %129 = vector.multi_reduction <add>, %128, %cst_49 [2] : vector<4x16x16xf32> to vector<4x16xf32>
    %130 = vector.shape_cast %129 : vector<4x16xf32> to vector<4x16x1xf32>
    %131 = tpu.reciprocal %130 {approx = true} : vector<4x16x1xf32> -> vector<4x16x1xf32>
    %132 = vector.broadcast %131 : vector<4x16x1xf32> to vector<4x16x16xf32>
    %133 = arith.mulf %128, %132 : vector<4x16x16xf32>
    %134 = arith.truncf %133 : vector<4x16x16xf32> to vector<4x16x16xbf16>
    %cst_50 = arith.constant dense<0.000000e+00> : vector<4x16x8xf32>
    %135 = tpu.matmul %134, %117, %cst_50 {dimension_numbers = #tpu.dot_dimension_numbers<[2], [1], [1], [2], [0, 0, 0, 1, 1, 2], [0], [0]>} : vector<4x16x16xbf16>, vector<4x16x8xbf16>, vector<4x16x8xf32> -> vector<4x16x8xf32>
    %136 = arith.truncf %135 : vector<4x16x8xf32> to vector<4x16x8xbf16>
    %cst_51 = arith.constant dense<0.000000e+00> : vector<4x16x32xf32>
    %137 = tpu.matmul %136, %58, %cst_51 {dimension_numbers = #tpu.dot_dimension_numbers<[2], [1], [1], [2], [0, 0, 0, 1, 1, 2], [0], [0]>} : vector<4x16x8xbf16>, vector<4x8x32xbf16>, vector<4x16x32xf32> -> vector<4x16x32xf32>
    %138 = vector.extract_strided_slice %137 {offsets = [0, 0, 0], sizes = [1, 16, 32], strides = [1, 1, 1]} : vector<4x16x32xf32> to vector<1x16x32xf32>
    %139 = vector.shape_cast %138 : vector<1x16x32xf32> to vector<16x32xf32>
    %140 = vector.extract_strided_slice %137 {offsets = [1, 0, 0], sizes = [1, 16, 32], strides = [1, 1, 1]} : vector<4x16x32xf32> to vector<1x16x32xf32>
    %141 = vector.shape_cast %140 : vector<1x16x32xf32> to vector<16x32xf32>
    %142 = arith.addf %139, %141 : vector<16x32xf32>
    %143 = vector.extract_strided_slice %137 {offsets = [2, 0, 0], sizes = [1, 16, 32], strides = [1, 1, 1]} : vector<4x16x32xf32> to vector<1x16x32xf32>
    %144 = vector.shape_cast %143 : vector<1x16x32xf32> to vector<16x32xf32>
    %145 = arith.addf %142, %144 : vector<16x32xf32>
    %146 = vector.extract_strided_slice %137 {offsets = [3, 0, 0], sizes = [1, 16, 32], strides = [1, 1, 1]} : vector<4x16x32xf32> to vector<1x16x32xf32>
    %147 = vector.shape_cast %146 : vector<1x16x32xf32> to vector<16x32xf32>
    %148 = arith.addf %145, %147 : vector<16x32xf32>
    %149 = vector.broadcast %87 : vector<1x32xf32> to vector<16x32xf32>
    %150 = arith.addf %148, %149 : vector<16x32xf32>
    %151 = arith.addf %0, %150 : vector<16x32xf32>
    %152 = vector.extract_strided_slice %62 {offsets = [8, 0], sizes = [1, 32], strides = [1, 1]} : vector<15x32xf32> to vector<1x32xf32>
    %153 = vector.extract_strided_slice %62 {offsets = [9, 0], sizes = [1, 32], strides = [1, 1]} : vector<15x32xf32> to vector<1x32xf32>
    %cst_52 = arith.constant dense<0.000000e+00> : vector<16xf32>
    %154 = vector.multi_reduction <add>, %151, %cst_52 [1] : vector<16x32xf32> to vector<16xf32>
    %155 = vector.shape_cast %154 : vector<16xf32> to vector<16x1xf32>
    %cst_53 = arith.constant 3.200000e+01 : f32
    %156 = vector.broadcast %cst_53 : f32 to vector<16x1xf32>
    %157 = arith.divf %155, %156 : vector<16x1xf32>
    %158 = vector.broadcast %157 : vector<16x1xf32> to vector<16x32xf32>
    %159 = arith.subf %151, %158 : vector<16x32xf32>
    %160 = arith.mulf %159, %159 : vector<16x32xf32>
    %cst_54 = arith.constant dense<0.000000e+00> : vector<16xf32>
    %161 = vector.multi_reduction <add>, %160, %cst_54 [1] : vector<16x32xf32> to vector<16xf32>
    %162 = vector.shape_cast %161 : vector<16xf32> to vector<16x1xf32>
    %cst_55 = arith.constant 3.200000e+01 : f32
    %163 = vector.broadcast %cst_55 : f32 to vector<16x1xf32>
    %164 = arith.divf %162, %163 : vector<16x1xf32>
    %165 = vector.broadcast %157 : vector<16x1xf32> to vector<16x32xf32>
    %166 = arith.subf %151, %165 : vector<16x32xf32>
    %cst_56 = arith.constant 9.99999974E-6 : f32
    %167 = vector.broadcast %cst_56 : f32 to vector<16x1xf32>
    %168 = arith.addf %164, %167 : vector<16x1xf32>
    %169 = math.rsqrt %168 : vector<16x1xf32>
    %170 = vector.broadcast %169 : vector<16x1xf32> to vector<16x32xf32>
    %171 = arith.mulf %166, %170 : vector<16x32xf32>
    %172 = vector.broadcast %152 : vector<1x32xf32> to vector<16x32xf32>
    %173 = arith.mulf %171, %172 : vector<16x32xf32>
    %174 = vector.broadcast %153 : vector<1x32xf32> to vector<16x32xf32>
    %175 = arith.addf %173, %174 : vector<16x32xf32>
    %176 = arith.addf %175, %1 : vector<16x32xf32>
    %177 = arith.truncf %176 : vector<16x32xf32> to vector<16x32xbf16>
    %178 = vector.extract_strided_slice %56 {offsets = [0, 96], sizes = [32, 32], strides = [1, 1]} : vector<32x192xbf16> to vector<32x32xbf16>
    %cst_57 = arith.constant dense<0.000000e+00> : vector<16x32xf32>
    %179 = tpu.matmul %177, %178, %cst_57 {dimension_numbers = #tpu.dot_dimension_numbers<[1], [0], [0], [1], [0, 0, 1, 1], [], []>} : vector<16x32xbf16>, vector<32x32xbf16>, vector<16x32xf32> -> vector<16x32xf32>
    %180 = vector.extract_strided_slice %62 {offsets = [4, 0], sizes = [1, 32], strides = [1, 1]} : vector<15x32xf32> to vector<1x32xf32>
    %181 = vector.broadcast %180 : vector<1x32xf32> to vector<16x32xf32>
    %182 = arith.addf %179, %181 : vector<16x32xf32>
    %183 = vector.extract_strided_slice %56 {offsets = [0, 128], sizes = [32, 32], strides = [1, 1]} : vector<32x192xbf16> to vector<32x32xbf16>
    %cst_58 = arith.constant dense<0.000000e+00> : vector<32x32xf32>
    %184 = tpu.matmul %5, %183, %cst_58 {dimension_numbers = #tpu.dot_dimension_numbers<[1], [0], [0], [1], [0, 0, 1, 1], [], []>} : vector<32x32xbf16>, vector<32x32xbf16>, vector<32x32xf32> -> vector<32x32xf32>
    %185 = vector.extract_strided_slice %62 {offsets = [5, 0], sizes = [1, 32], strides = [1, 1]} : vector<15x32xf32> to vector<1x32xf32>
    %186 = vector.broadcast %185 : vector<1x32xf32> to vector<32x32xf32>
    %187 = arith.addf %184, %186 : vector<32x32xf32>
    %188 = vector.extract_strided_slice %56 {offsets = [0, 160], sizes = [32, 32], strides = [1, 1]} : vector<32x192xbf16> to vector<32x32xbf16>
    %cst_59 = arith.constant dense<0.000000e+00> : vector<32x32xf32>
    %189 = tpu.matmul %6, %188, %cst_59 {dimension_numbers = #tpu.dot_dimension_numbers<[1], [0], [0], [1], [0, 0, 1, 1], [], []>} : vector<32x32xbf16>, vector<32x32xbf16>, vector<32x32xf32> -> vector<32x32xf32>
    %190 = vector.extract_strided_slice %62 {offsets = [6, 0], sizes = [1, 32], strides = [1, 1]} : vector<15x32xf32> to vector<1x32xf32>
    %191 = vector.broadcast %190 : vector<1x32xf32> to vector<32x32xf32>
    %192 = arith.addf %189, %191 : vector<32x32xf32>
    %193 = vector.extract_strided_slice %62 {offsets = [7, 0], sizes = [1, 32], strides = [1, 1]} : vector<15x32xf32> to vector<1x32xf32>
    %194 = vector.extract_strided_slice %182 {offsets = [0, 0], sizes = [16, 8], strides = [1, 1]} : vector<16x32xf32> to vector<16x8xf32>
    %195 = vector.extract_strided_slice %182 {offsets = [0, 8], sizes = [16, 8], strides = [1, 1]} : vector<16x32xf32> to vector<16x8xf32>
    %196 = vector.extract_strided_slice %182 {offsets = [0, 16], sizes = [16, 8], strides = [1, 1]} : vector<16x32xf32> to vector<16x8xf32>
    %197 = vector.extract_strided_slice %182 {offsets = [0, 24], sizes = [16, 8], strides = [1, 1]} : vector<16x32xf32> to vector<16x8xf32>
    %198 = vector.shape_cast %194 : vector<16x8xf32> to vector<1x16x8xf32>
    %199 = vector.shape_cast %195 : vector<16x8xf32> to vector<1x16x8xf32>
    %200 = vector.shape_cast %196 : vector<16x8xf32> to vector<1x16x8xf32>
    %201 = vector.shape_cast %197 : vector<16x8xf32> to vector<1x16x8xf32>
    %202 = tpu.concatenate %198, %199, %200, %201 in 0 : vector<1x16x8xf32>, vector<1x16x8xf32>, vector<1x16x8xf32>, vector<1x16x8xf32> -> vector<4x16x8xf32>
    %203 = arith.truncf %202 : vector<4x16x8xf32> to vector<4x16x8xbf16>
    %204 = vector.extract_strided_slice %187 {offsets = [0, 0], sizes = [32, 8], strides = [1, 1]} : vector<32x32xf32> to vector<32x8xf32>
    %205 = vector.extract_strided_slice %187 {offsets = [0, 8], sizes = [32, 8], strides = [1, 1]} : vector<32x32xf32> to vector<32x8xf32>
    %206 = vector.extract_strided_slice %187 {offsets = [0, 16], sizes = [32, 8], strides = [1, 1]} : vector<32x32xf32> to vector<32x8xf32>
    %207 = vector.extract_strided_slice %187 {offsets = [0, 24], sizes = [32, 8], strides = [1, 1]} : vector<32x32xf32> to vector<32x8xf32>
    %208 = vector.shape_cast %204 : vector<32x8xf32> to vector<1x32x8xf32>
    %209 = vector.shape_cast %205 : vector<32x8xf32> to vector<1x32x8xf32>
    %210 = vector.shape_cast %206 : vector<32x8xf32> to vector<1x32x8xf32>
    %211 = vector.shape_cast %207 : vector<32x8xf32> to vector<1x32x8xf32>
    %212 = tpu.concatenate %208, %209, %210, %211 in 0 : vector<1x32x8xf32>, vector<1x32x8xf32>, vector<1x32x8xf32>, vector<1x32x8xf32> -> vector<4x32x8xf32>
    %213 = arith.truncf %212 : vector<4x32x8xf32> to vector<4x32x8xbf16>
    %214 = vector.extract_strided_slice %192 {offsets = [0, 0], sizes = [32, 8], strides = [1, 1]} : vector<32x32xf32> to vector<32x8xf32>
    %215 = vector.extract_strided_slice %192 {offsets = [0, 8], sizes = [32, 8], strides = [1, 1]} : vector<32x32xf32> to vector<32x8xf32>
    %216 = vector.extract_strided_slice %192 {offsets = [0, 16], sizes = [32, 8], strides = [1, 1]} : vector<32x32xf32> to vector<32x8xf32>
    %217 = vector.extract_strided_slice %192 {offsets = [0, 24], sizes = [32, 8], strides = [1, 1]} : vector<32x32xf32> to vector<32x8xf32>
    %218 = vector.shape_cast %214 : vector<32x8xf32> to vector<1x32x8xf32>
    %219 = vector.shape_cast %215 : vector<32x8xf32> to vector<1x32x8xf32>
    %220 = vector.shape_cast %216 : vector<32x8xf32> to vector<1x32x8xf32>
    %221 = vector.shape_cast %217 : vector<32x8xf32> to vector<1x32x8xf32>
    %222 = tpu.concatenate %218, %219, %220, %221 in 0 : vector<1x32x8xf32>, vector<1x32x8xf32>, vector<1x32x8xf32>, vector<1x32x8xf32> -> vector<4x32x8xf32>
    %223 = arith.truncf %222 : vector<4x32x8xf32> to vector<4x32x8xbf16>
    %cst_60 = arith.constant dense<0.000000e+00> : vector<4x16x32xf32>
    %224 = tpu.matmul %203, %213, %cst_60 {dimension_numbers = #tpu.dot_dimension_numbers<[2], [2], [1], [1], [0, 0, 0, 1, 1, 1], [0], [0]>} : vector<4x16x8xbf16>, vector<4x32x8xbf16>, vector<4x16x32xf32> -> vector<4x16x32xf32>
    %cst_61 = arith.constant 0.353553385 : f32
    %225 = vector.broadcast %cst_61 : f32 to vector<4x16x32xf32>
    %226 = arith.mulf %224, %225 : vector<4x16x32xf32>
    %227 = vector.shape_cast %54 : vector<16x32xf32> to vector<1x16x32xf32>
    %228 = vector.broadcast %227 : vector<1x16x32xf32> to vector<4x16x32xf32>
    %229 = arith.addf %226, %228 : vector<4x16x32xf32>
    %cst_62 = arith.constant dense<0xFF800000> : vector<4x16xf32>
    %230 = vector.multi_reduction <maximumf>, %229, %cst_62 [2] : vector<4x16x32xf32> to vector<4x16xf32>
    %231 = vector.shape_cast %230 : vector<4x16xf32> to vector<4x16x1xf32>
    %232 = vector.broadcast %231 : vector<4x16x1xf32> to vector<4x16x32xf32>
    %233 = arith.subf %229, %232 : vector<4x16x32xf32>
    %234 = math.exp %233 : vector<4x16x32xf32>
    %cst_63 = arith.constant dense<0.000000e+00> : vector<4x16xf32>
    %235 = vector.multi_reduction <add>, %234, %cst_63 [2] : vector<4x16x32xf32> to vector<4x16xf32>
    %236 = vector.shape_cast %235 : vector<4x16xf32> to vector<4x16x1xf32>
    %237 = tpu.reciprocal %236 {approx = true} : vector<4x16x1xf32> -> vector<4x16x1xf32>
    %238 = vector.broadcast %237 : vector<4x16x1xf32> to vector<4x16x32xf32>
    %239 = arith.mulf %234, %238 : vector<4x16x32xf32>
    %240 = arith.truncf %239 : vector<4x16x32xf32> to vector<4x16x32xbf16>
    %cst_64 = arith.constant dense<0.000000e+00> : vector<4x16x8xf32>
    %241 = tpu.matmul %240, %223, %cst_64 {dimension_numbers = #tpu.dot_dimension_numbers<[2], [1], [1], [2], [0, 0, 0, 1, 1, 2], [0], [0]>} : vector<4x16x32xbf16>, vector<4x32x8xbf16>, vector<4x16x8xf32> -> vector<4x16x8xf32>
    %242 = arith.truncf %241 : vector<4x16x8xf32> to vector<4x16x8xbf16>
    %cst_65 = arith.constant dense<0.000000e+00> : vector<4x16x32xf32>
    %243 = tpu.matmul %242, %60, %cst_65 {dimension_numbers = #tpu.dot_dimension_numbers<[2], [1], [1], [2], [0, 0, 0, 1, 1, 2], [0], [0]>} : vector<4x16x8xbf16>, vector<4x8x32xbf16>, vector<4x16x32xf32> -> vector<4x16x32xf32>
    %244 = vector.extract_strided_slice %243 {offsets = [0, 0, 0], sizes = [1, 16, 32], strides = [1, 1, 1]} : vector<4x16x32xf32> to vector<1x16x32xf32>
    %245 = vector.shape_cast %244 : vector<1x16x32xf32> to vector<16x32xf32>
    %246 = vector.extract_strided_slice %243 {offsets = [1, 0, 0], sizes = [1, 16, 32], strides = [1, 1, 1]} : vector<4x16x32xf32> to vector<1x16x32xf32>
    %247 = vector.shape_cast %246 : vector<1x16x32xf32> to vector<16x32xf32>
    %248 = arith.addf %245, %247 : vector<16x32xf32>
    %249 = vector.extract_strided_slice %243 {offsets = [2, 0, 0], sizes = [1, 16, 32], strides = [1, 1, 1]} : vector<4x16x32xf32> to vector<1x16x32xf32>
    %250 = vector.shape_cast %249 : vector<1x16x32xf32> to vector<16x32xf32>
    %251 = arith.addf %248, %250 : vector<16x32xf32>
    %252 = vector.extract_strided_slice %243 {offsets = [3, 0, 0], sizes = [1, 16, 32], strides = [1, 1, 1]} : vector<4x16x32xf32> to vector<1x16x32xf32>
    %253 = vector.shape_cast %252 : vector<1x16x32xf32> to vector<16x32xf32>
    %254 = arith.addf %251, %253 : vector<16x32xf32>
    %255 = vector.broadcast %193 : vector<1x32xf32> to vector<16x32xf32>
    %256 = arith.addf %254, %255 : vector<16x32xf32>
    %257 = arith.addf %175, %256 : vector<16x32xf32>
    %258 = vector.extract_strided_slice %62 {offsets = [10, 0], sizes = [1, 32], strides = [1, 1]} : vector<15x32xf32> to vector<1x32xf32>
    %259 = vector.extract_strided_slice %62 {offsets = [11, 0], sizes = [1, 32], strides = [1, 1]} : vector<15x32xf32> to vector<1x32xf32>
    %cst_66 = arith.constant dense<0.000000e+00> : vector<16xf32>
    %260 = vector.multi_reduction <add>, %257, %cst_66 [1] : vector<16x32xf32> to vector<16xf32>
    %261 = vector.shape_cast %260 : vector<16xf32> to vector<16x1xf32>
    %cst_67 = arith.constant 3.200000e+01 : f32
    %262 = vector.broadcast %cst_67 : f32 to vector<16x1xf32>
    %263 = arith.divf %261, %262 : vector<16x1xf32>
    %264 = vector.broadcast %263 : vector<16x1xf32> to vector<16x32xf32>
    %265 = arith.subf %257, %264 : vector<16x32xf32>
    %266 = arith.mulf %265, %265 : vector<16x32xf32>
    %cst_68 = arith.constant dense<0.000000e+00> : vector<16xf32>
    %267 = vector.multi_reduction <add>, %266, %cst_68 [1] : vector<16x32xf32> to vector<16xf32>
    %268 = vector.shape_cast %267 : vector<16xf32> to vector<16x1xf32>
    %cst_69 = arith.constant 3.200000e+01 : f32
    %269 = vector.broadcast %cst_69 : f32 to vector<16x1xf32>
    %270 = arith.divf %268, %269 : vector<16x1xf32>
    %271 = vector.broadcast %263 : vector<16x1xf32> to vector<16x32xf32>
    %272 = arith.subf %257, %271 : vector<16x32xf32>
    %cst_70 = arith.constant 9.99999974E-6 : f32
    %273 = vector.broadcast %cst_70 : f32 to vector<16x1xf32>
    %274 = arith.addf %270, %273 : vector<16x1xf32>
    %275 = math.rsqrt %274 : vector<16x1xf32>
    %276 = vector.broadcast %275 : vector<16x1xf32> to vector<16x32xf32>
    %277 = arith.mulf %272, %276 : vector<16x32xf32>
    %278 = vector.broadcast %258 : vector<1x32xf32> to vector<16x32xf32>
    %279 = arith.mulf %277, %278 : vector<16x32xf32>
    %280 = vector.broadcast %259 : vector<1x32xf32> to vector<16x32xf32>
    %281 = arith.addf %279, %280 : vector<16x32xf32>
    %282 = arith.truncf %281 : vector<16x32xf32> to vector<16x32xbf16>
    %cst_71 = arith.constant dense<0.000000e+00> : vector<16x64xf32>
    %283 = tpu.matmul %282, %64, %cst_71 {dimension_numbers = #tpu.dot_dimension_numbers<[1], [0], [0], [1], [0, 0, 1, 1], [], []>} : vector<16x32xbf16>, vector<32x64xbf16>, vector<16x64xf32> -> vector<16x64xf32>
    %284 = vector.broadcast %66 : vector<1x64xf32> to vector<16x64xf32>
    %285 = arith.addf %283, %284 : vector<16x64xf32>
    %cst_72 = arith.constant 0.000000e+00 : f32
    %286 = vector.broadcast %cst_72 : f32 to vector<16x64xf32>
    %287 = arith.maximumf %285, %286 : vector<16x64xf32>
    %288 = arith.truncf %287 : vector<16x64xf32> to vector<16x64xbf16>
    %cst_73 = arith.constant dense<0.000000e+00> : vector<16x32xf32>
    %289 = tpu.matmul %288, %68, %cst_73 {dimension_numbers = #tpu.dot_dimension_numbers<[1], [0], [0], [1], [0, 0, 1, 1], [], []>} : vector<16x64xbf16>, vector<64x32xbf16>, vector<16x32xf32> -> vector<16x32xf32>
    %290 = vector.extract_strided_slice %62 {offsets = [14, 0], sizes = [1, 32], strides = [1, 1]} : vector<15x32xf32> to vector<1x32xf32>
    %291 = vector.broadcast %290 : vector<1x32xf32> to vector<16x32xf32>
    %292 = arith.addf %289, %291 : vector<16x32xf32>
    %293 = arith.addf %281, %292 : vector<16x32xf32>
    %294 = vector.extract_strided_slice %62 {offsets = [12, 0], sizes = [1, 32], strides = [1, 1]} : vector<15x32xf32> to vector<1x32xf32>
    %295 = vector.extract_strided_slice %62 {offsets = [13, 0], sizes = [1, 32], strides = [1, 1]} : vector<15x32xf32> to vector<1x32xf32>
    %cst_74 = arith.constant dense<0.000000e+00> : vector<16xf32>
    %296 = vector.multi_reduction <add>, %293, %cst_74 [1] : vector<16x32xf32> to vector<16xf32>
    %297 = vector.shape_cast %296 : vector<16xf32> to vector<16x1xf32>
    %cst_75 = arith.constant 3.200000e+01 : f32
    %298 = vector.broadcast %cst_75 : f32 to vector<16x1xf32>
    %299 = arith.divf %297, %298 : vector<16x1xf32>
    %300 = vector.broadcast %299 : vector<16x1xf32> to vector<16x32xf32>
    %301 = arith.subf %293, %300 : vector<16x32xf32>
    %302 = arith.mulf %301, %301 : vector<16x32xf32>
    %cst_76 = arith.constant dense<0.000000e+00> : vector<16xf32>
    %303 = vector.multi_reduction <add>, %302, %cst_76 [1] : vector<16x32xf32> to vector<16xf32>
    %304 = vector.shape_cast %303 : vector<16xf32> to vector<16x1xf32>
    %cst_77 = arith.constant 3.200000e+01 : f32
    %305 = vector.broadcast %cst_77 : f32 to vector<16x1xf32>
    %306 = arith.divf %304, %305 : vector<16x1xf32>
    %307 = vector.broadcast %299 : vector<16x1xf32> to vector<16x32xf32>
    %308 = arith.subf %293, %307 : vector<16x32xf32>
    %cst_78 = arith.constant 9.99999974E-6 : f32
    %309 = vector.broadcast %cst_78 : f32 to vector<16x1xf32>
    %310 = arith.addf %306, %309 : vector<16x1xf32>
    %311 = math.rsqrt %310 : vector<16x1xf32>
    %312 = vector.broadcast %311 : vector<16x1xf32> to vector<16x32xf32>
    %313 = arith.mulf %308, %312 : vector<16x32xf32>
    %314 = vector.broadcast %294 : vector<1x32xf32> to vector<16x32xf32>
    %315 = arith.mulf %313, %314 : vector<16x32xf32>
    %316 = vector.broadcast %295 : vector<1x32xf32> to vector<16x32xf32>
    %317 = arith.addf %315, %316 : vector<16x32xf32>
    %c1_79 = arith.constant 1 : index
    %c0_80 = arith.constant 0 : index
    %c0_81 = arith.constant 0 : index
    %318 = vector.load %arg4[%c1_79, %c0_80, %c0_81] : memref<2x32x192xbf16, #tpu.memory_space<vmem>>, vector<1x32x192xbf16>
    %319 = vector.shape_cast %318 : vector<1x32x192xbf16> to vector<32x192xbf16>
    %c2 = arith.constant 2 : index
    %c0_82 = arith.constant 0 : index
    %c0_83 = arith.constant 0 : index
    %c0_84 = arith.constant 0 : index
    %320 = vector.load %arg5[%c2, %c0_82, %c0_83, %c0_84] : memref<4x4x8x32xbf16, #tpu.memory_space<vmem>>, vector<1x4x8x32xbf16>
    %321 = vector.shape_cast %320 : vector<1x4x8x32xbf16> to vector<4x8x32xbf16>
    %c3 = arith.constant 3 : index
    %c0_85 = arith.constant 0 : index
    %c0_86 = arith.constant 0 : index
    %c0_87 = arith.constant 0 : index
    %322 = vector.load %arg5[%c3, %c0_85, %c0_86, %c0_87] : memref<4x4x8x32xbf16, #tpu.memory_space<vmem>>, vector<1x4x8x32xbf16>
    %323 = vector.shape_cast %322 : vector<1x4x8x32xbf16> to vector<4x8x32xbf16>
    %c1_88 = arith.constant 1 : index
    %c0_89 = arith.constant 0 : index
    %c0_90 = arith.constant 0 : index
    %324 = vector.load %arg6[%c1_88, %c0_89, %c0_90] : memref<2x15x32xf32, #tpu.memory_space<vmem>>, vector<1x15x32xf32>
    %325 = vector.shape_cast %324 : vector<1x15x32xf32> to vector<15x32xf32>
    %c1_91 = arith.constant 1 : index
    %c0_92 = arith.constant 0 : index
    %c0_93 = arith.constant 0 : index
    %326 = vector.load %arg7[%c1_91, %c0_92, %c0_93] : memref<2x32x64xbf16, #tpu.memory_space<vmem>>, vector<1x32x64xbf16>
    %327 = vector.shape_cast %326 : vector<1x32x64xbf16> to vector<32x64xbf16>
    %c1_94 = arith.constant 1 : index
    %c0_95 = arith.constant 0 : index
    %c0_96 = arith.constant 0 : index
    %328 = vector.load %arg8[%c1_94, %c0_95, %c0_96] : memref<2x1x64xf32, #tpu.memory_space<vmem>>, vector<1x1x64xf32>
    %329 = vector.shape_cast %328 : vector<1x1x64xf32> to vector<1x64xf32>
    %c1_97 = arith.constant 1 : index
    %c0_98 = arith.constant 0 : index
    %c0_99 = arith.constant 0 : index
    %330 = vector.load %arg9[%c1_97, %c0_98, %c0_99] : memref<2x64x32xbf16, #tpu.memory_space<vmem>>, vector<1x64x32xbf16>
    %331 = vector.shape_cast %330 : vector<1x64x32xbf16> to vector<64x32xbf16>
    %332 = arith.addf %317, %1 : vector<16x32xf32>
    %333 = arith.truncf %332 : vector<16x32xf32> to vector<16x32xbf16>
    %334 = vector.extract_strided_slice %319 {offsets = [0, 0], sizes = [32, 64], strides = [1, 1]} : vector<32x192xbf16> to vector<32x64xbf16>
    %cst_100 = arith.constant dense<0.000000e+00> : vector<16x64xf32>
    %335 = tpu.matmul %333, %334, %cst_100 {dimension_numbers = #tpu.dot_dimension_numbers<[1], [0], [0], [1], [0, 0, 1, 1], [], []>} : vector<16x32xbf16>, vector<32x64xbf16>, vector<16x64xf32> -> vector<16x64xf32>
    %336 = vector.extract_strided_slice %335 {offsets = [0, 0], sizes = [16, 32], strides = [1, 1]} : vector<16x64xf32> to vector<16x32xf32>
    %337 = vector.extract_strided_slice %325 {offsets = [0, 0], sizes = [1, 32], strides = [1, 1]} : vector<15x32xf32> to vector<1x32xf32>
    %338 = vector.broadcast %337 : vector<1x32xf32> to vector<16x32xf32>
    %339 = arith.addf %336, %338 : vector<16x32xf32>
    %340 = vector.extract_strided_slice %335 {offsets = [0, 32], sizes = [16, 32], strides = [1, 1]} : vector<16x64xf32> to vector<16x32xf32>
    %341 = vector.extract_strided_slice %325 {offsets = [1, 0], sizes = [1, 32], strides = [1, 1]} : vector<15x32xf32> to vector<1x32xf32>
    %342 = vector.broadcast %341 : vector<1x32xf32> to vector<16x32xf32>
    %343 = arith.addf %340, %342 : vector<16x32xf32>
    %344 = arith.truncf %317 : vector<16x32xf32> to vector<16x32xbf16>
    %345 = vector.extract_strided_slice %319 {offsets = [0, 64], sizes = [32, 32], strides = [1, 1]} : vector<32x192xbf16> to vector<32x32xbf16>
    %cst_101 = arith.constant dense<0.000000e+00> : vector<16x32xf32>
    %346 = tpu.matmul %344, %345, %cst_101 {dimension_numbers = #tpu.dot_dimension_numbers<[1], [0], [0], [1], [0, 0, 1, 1], [], []>} : vector<16x32xbf16>, vector<32x32xbf16>, vector<16x32xf32> -> vector<16x32xf32>
    %347 = vector.extract_strided_slice %325 {offsets = [2, 0], sizes = [1, 32], strides = [1, 1]} : vector<15x32xf32> to vector<1x32xf32>
    %348 = vector.broadcast %347 : vector<1x32xf32> to vector<16x32xf32>
    %349 = arith.addf %346, %348 : vector<16x32xf32>
    %350 = vector.extract_strided_slice %325 {offsets = [3, 0], sizes = [1, 32], strides = [1, 1]} : vector<15x32xf32> to vector<1x32xf32>
    %351 = vector.extract_strided_slice %339 {offsets = [0, 0], sizes = [16, 8], strides = [1, 1]} : vector<16x32xf32> to vector<16x8xf32>
    %352 = vector.extract_strided_slice %339 {offsets = [0, 8], sizes = [16, 8], strides = [1, 1]} : vector<16x32xf32> to vector<16x8xf32>
    %353 = vector.extract_strided_slice %339 {offsets = [0, 16], sizes = [16, 8], strides = [1, 1]} : vector<16x32xf32> to vector<16x8xf32>
    %354 = vector.extract_strided_slice %339 {offsets = [0, 24], sizes = [16, 8], strides = [1, 1]} : vector<16x32xf32> to vector<16x8xf32>
    %355 = vector.shape_cast %351 : vector<16x8xf32> to vector<1x16x8xf32>
    %356 = vector.shape_cast %352 : vector<16x8xf32> to vector<1x16x8xf32>
    %357 = vector.shape_cast %353 : vector<16x8xf32> to vector<1x16x8xf32>
    %358 = vector.shape_cast %354 : vector<16x8xf32> to vector<1x16x8xf32>
    %359 = tpu.concatenate %355, %356, %357, %358 in 0 : vector<1x16x8xf32>, vector<1x16x8xf32>, vector<1x16x8xf32>, vector<1x16x8xf32> -> vector<4x16x8xf32>
    %360 = arith.truncf %359 : vector<4x16x8xf32> to vector<4x16x8xbf16>
    %361 = vector.extract_strided_slice %343 {offsets = [0, 0], sizes = [16, 8], strides = [1, 1]} : vector<16x32xf32> to vector<16x8xf32>
    %362 = vector.extract_strided_slice %343 {offsets = [0, 8], sizes = [16, 8], strides = [1, 1]} : vector<16x32xf32> to vector<16x8xf32>
    %363 = vector.extract_strided_slice %343 {offsets = [0, 16], sizes = [16, 8], strides = [1, 1]} : vector<16x32xf32> to vector<16x8xf32>
    %364 = vector.extract_strided_slice %343 {offsets = [0, 24], sizes = [16, 8], strides = [1, 1]} : vector<16x32xf32> to vector<16x8xf32>
    %365 = vector.shape_cast %361 : vector<16x8xf32> to vector<1x16x8xf32>
    %366 = vector.shape_cast %362 : vector<16x8xf32> to vector<1x16x8xf32>
    %367 = vector.shape_cast %363 : vector<16x8xf32> to vector<1x16x8xf32>
    %368 = vector.shape_cast %364 : vector<16x8xf32> to vector<1x16x8xf32>
    %369 = tpu.concatenate %365, %366, %367, %368 in 0 : vector<1x16x8xf32>, vector<1x16x8xf32>, vector<1x16x8xf32>, vector<1x16x8xf32> -> vector<4x16x8xf32>
    %370 = arith.truncf %369 : vector<4x16x8xf32> to vector<4x16x8xbf16>
    %371 = vector.extract_strided_slice %349 {offsets = [0, 0], sizes = [16, 8], strides = [1, 1]} : vector<16x32xf32> to vector<16x8xf32>
    %372 = vector.extract_strided_slice %349 {offsets = [0, 8], sizes = [16, 8], strides = [1, 1]} : vector<16x32xf32> to vector<16x8xf32>
    %373 = vector.extract_strided_slice %349 {offsets = [0, 16], sizes = [16, 8], strides = [1, 1]} : vector<16x32xf32> to vector<16x8xf32>
    %374 = vector.extract_strided_slice %349 {offsets = [0, 24], sizes = [16, 8], strides = [1, 1]} : vector<16x32xf32> to vector<16x8xf32>
    %375 = vector.shape_cast %371 : vector<16x8xf32> to vector<1x16x8xf32>
    %376 = vector.shape_cast %372 : vector<16x8xf32> to vector<1x16x8xf32>
    %377 = vector.shape_cast %373 : vector<16x8xf32> to vector<1x16x8xf32>
    %378 = vector.shape_cast %374 : vector<16x8xf32> to vector<1x16x8xf32>
    %379 = tpu.concatenate %375, %376, %377, %378 in 0 : vector<1x16x8xf32>, vector<1x16x8xf32>, vector<1x16x8xf32>, vector<1x16x8xf32> -> vector<4x16x8xf32>
    %380 = arith.truncf %379 : vector<4x16x8xf32> to vector<4x16x8xbf16>
    %cst_102 = arith.constant dense<0.000000e+00> : vector<4x16x16xf32>
    %381 = tpu.matmul %360, %370, %cst_102 {dimension_numbers = #tpu.dot_dimension_numbers<[2], [2], [1], [1], [0, 0, 0, 1, 1, 1], [0], [0]>} : vector<4x16x8xbf16>, vector<4x16x8xbf16>, vector<4x16x16xf32> -> vector<4x16x16xf32>
    %cst_103 = arith.constant 0.353553385 : f32
    %382 = vector.broadcast %cst_103 : f32 to vector<4x16x16xf32>
    %383 = arith.mulf %381, %382 : vector<4x16x16xf32>
    %384 = vector.shape_cast %30 : vector<16x16xf32> to vector<1x16x16xf32>
    %385 = vector.broadcast %384 : vector<1x16x16xf32> to vector<4x16x16xf32>
    %386 = arith.addf %383, %385 : vector<4x16x16xf32>
    %cst_104 = arith.constant dense<0xFF800000> : vector<4x16xf32>
    %387 = vector.multi_reduction <maximumf>, %386, %cst_104 [2] : vector<4x16x16xf32> to vector<4x16xf32>
    %388 = vector.shape_cast %387 : vector<4x16xf32> to vector<4x16x1xf32>
    %389 = vector.broadcast %388 : vector<4x16x1xf32> to vector<4x16x16xf32>
    %390 = arith.subf %386, %389 : vector<4x16x16xf32>
    %391 = math.exp %390 : vector<4x16x16xf32>
    %cst_105 = arith.constant dense<0.000000e+00> : vector<4x16xf32>
    %392 = vector.multi_reduction <add>, %391, %cst_105 [2] : vector<4x16x16xf32> to vector<4x16xf32>
    %393 = vector.shape_cast %392 : vector<4x16xf32> to vector<4x16x1xf32>
    %394 = tpu.reciprocal %393 {approx = true} : vector<4x16x1xf32> -> vector<4x16x1xf32>
    %395 = vector.broadcast %394 : vector<4x16x1xf32> to vector<4x16x16xf32>
    %396 = arith.mulf %391, %395 : vector<4x16x16xf32>
    %397 = arith.truncf %396 : vector<4x16x16xf32> to vector<4x16x16xbf16>
    %cst_106 = arith.constant dense<0.000000e+00> : vector<4x16x8xf32>
    %398 = tpu.matmul %397, %380, %cst_106 {dimension_numbers = #tpu.dot_dimension_numbers<[2], [1], [1], [2], [0, 0, 0, 1, 1, 2], [0], [0]>} : vector<4x16x16xbf16>, vector<4x16x8xbf16>, vector<4x16x8xf32> -> vector<4x16x8xf32>
    %399 = arith.truncf %398 : vector<4x16x8xf32> to vector<4x16x8xbf16>
    %cst_107 = arith.constant dense<0.000000e+00> : vector<4x16x32xf32>
    %400 = tpu.matmul %399, %321, %cst_107 {dimension_numbers = #tpu.dot_dimension_numbers<[2], [1], [1], [2], [0, 0, 0, 1, 1, 2], [0], [0]>} : vector<4x16x8xbf16>, vector<4x8x32xbf16>, vector<4x16x32xf32> -> vector<4x16x32xf32>
    %401 = vector.extract_strided_slice %400 {offsets = [0, 0, 0], sizes = [1, 16, 32], strides = [1, 1, 1]} : vector<4x16x32xf32> to vector<1x16x32xf32>
    %402 = vector.shape_cast %401 : vector<1x16x32xf32> to vector<16x32xf32>
    %403 = vector.extract_strided_slice %400 {offsets = [1, 0, 0], sizes = [1, 16, 32], strides = [1, 1, 1]} : vector<4x16x32xf32> to vector<1x16x32xf32>
    %404 = vector.shape_cast %403 : vector<1x16x32xf32> to vector<16x32xf32>
    %405 = arith.addf %402, %404 : vector<16x32xf32>
    %406 = vector.extract_strided_slice %400 {offsets = [2, 0, 0], sizes = [1, 16, 32], strides = [1, 1, 1]} : vector<4x16x32xf32> to vector<1x16x32xf32>
    %407 = vector.shape_cast %406 : vector<1x16x32xf32> to vector<16x32xf32>
    %408 = arith.addf %405, %407 : vector<16x32xf32>
    %409 = vector.extract_strided_slice %400 {offsets = [3, 0, 0], sizes = [1, 16, 32], strides = [1, 1, 1]} : vector<4x16x32xf32> to vector<1x16x32xf32>
    %410 = vector.shape_cast %409 : vector<1x16x32xf32> to vector<16x32xf32>
    %411 = arith.addf %408, %410 : vector<16x32xf32>
    %412 = vector.broadcast %350 : vector<1x32xf32> to vector<16x32xf32>
    %413 = arith.addf %411, %412 : vector<16x32xf32>
    %414 = arith.addf %317, %413 : vector<16x32xf32>
    %415 = vector.extract_strided_slice %325 {offsets = [8, 0], sizes = [1, 32], strides = [1, 1]} : vector<15x32xf32> to vector<1x32xf32>
    %416 = vector.extract_strided_slice %325 {offsets = [9, 0], sizes = [1, 32], strides = [1, 1]} : vector<15x32xf32> to vector<1x32xf32>
    %cst_108 = arith.constant dense<0.000000e+00> : vector<16xf32>
    %417 = vector.multi_reduction <add>, %414, %cst_108 [1] : vector<16x32xf32> to vector<16xf32>
    %418 = vector.shape_cast %417 : vector<16xf32> to vector<16x1xf32>
    %cst_109 = arith.constant 3.200000e+01 : f32
    %419 = vector.broadcast %cst_109 : f32 to vector<16x1xf32>
    %420 = arith.divf %418, %419 : vector<16x1xf32>
    %421 = vector.broadcast %420 : vector<16x1xf32> to vector<16x32xf32>
    %422 = arith.subf %414, %421 : vector<16x32xf32>
    %423 = arith.mulf %422, %422 : vector<16x32xf32>
    %cst_110 = arith.constant dense<0.000000e+00> : vector<16xf32>
    %424 = vector.multi_reduction <add>, %423, %cst_110 [1] : vector<16x32xf32> to vector<16xf32>
    %425 = vector.shape_cast %424 : vector<16xf32> to vector<16x1xf32>
    %cst_111 = arith.constant 3.200000e+01 : f32
    %426 = vector.broadcast %cst_111 : f32 to vector<16x1xf32>
    %427 = arith.divf %425, %426 : vector<16x1xf32>
    %428 = vector.broadcast %420 : vector<16x1xf32> to vector<16x32xf32>
    %429 = arith.subf %414, %428 : vector<16x32xf32>
    %cst_112 = arith.constant 9.99999974E-6 : f32
    %430 = vector.broadcast %cst_112 : f32 to vector<16x1xf32>
    %431 = arith.addf %427, %430 : vector<16x1xf32>
    %432 = math.rsqrt %431 : vector<16x1xf32>
    %433 = vector.broadcast %432 : vector<16x1xf32> to vector<16x32xf32>
    %434 = arith.mulf %429, %433 : vector<16x32xf32>
    %435 = vector.broadcast %415 : vector<1x32xf32> to vector<16x32xf32>
    %436 = arith.mulf %434, %435 : vector<16x32xf32>
    %437 = vector.broadcast %416 : vector<1x32xf32> to vector<16x32xf32>
    %438 = arith.addf %436, %437 : vector<16x32xf32>
    %439 = arith.addf %438, %1 : vector<16x32xf32>
    %440 = arith.truncf %439 : vector<16x32xf32> to vector<16x32xbf16>
    %441 = vector.extract_strided_slice %319 {offsets = [0, 96], sizes = [32, 32], strides = [1, 1]} : vector<32x192xbf16> to vector<32x32xbf16>
    %cst_113 = arith.constant dense<0.000000e+00> : vector<16x32xf32>
    %442 = tpu.matmul %440, %441, %cst_113 {dimension_numbers = #tpu.dot_dimension_numbers<[1], [0], [0], [1], [0, 0, 1, 1], [], []>} : vector<16x32xbf16>, vector<32x32xbf16>, vector<16x32xf32> -> vector<16x32xf32>
    %443 = vector.extract_strided_slice %325 {offsets = [4, 0], sizes = [1, 32], strides = [1, 1]} : vector<15x32xf32> to vector<1x32xf32>
    %444 = vector.broadcast %443 : vector<1x32xf32> to vector<16x32xf32>
    %445 = arith.addf %442, %444 : vector<16x32xf32>
    %446 = vector.extract_strided_slice %319 {offsets = [0, 128], sizes = [32, 32], strides = [1, 1]} : vector<32x192xbf16> to vector<32x32xbf16>
    %cst_114 = arith.constant dense<0.000000e+00> : vector<32x32xf32>
    %447 = tpu.matmul %5, %446, %cst_114 {dimension_numbers = #tpu.dot_dimension_numbers<[1], [0], [0], [1], [0, 0, 1, 1], [], []>} : vector<32x32xbf16>, vector<32x32xbf16>, vector<32x32xf32> -> vector<32x32xf32>
    %448 = vector.extract_strided_slice %325 {offsets = [5, 0], sizes = [1, 32], strides = [1, 1]} : vector<15x32xf32> to vector<1x32xf32>
    %449 = vector.broadcast %448 : vector<1x32xf32> to vector<32x32xf32>
    %450 = arith.addf %447, %449 : vector<32x32xf32>
    %451 = vector.extract_strided_slice %319 {offsets = [0, 160], sizes = [32, 32], strides = [1, 1]} : vector<32x192xbf16> to vector<32x32xbf16>
    %cst_115 = arith.constant dense<0.000000e+00> : vector<32x32xf32>
    %452 = tpu.matmul %6, %451, %cst_115 {dimension_numbers = #tpu.dot_dimension_numbers<[1], [0], [0], [1], [0, 0, 1, 1], [], []>} : vector<32x32xbf16>, vector<32x32xbf16>, vector<32x32xf32> -> vector<32x32xf32>
    %453 = vector.extract_strided_slice %325 {offsets = [6, 0], sizes = [1, 32], strides = [1, 1]} : vector<15x32xf32> to vector<1x32xf32>
    %454 = vector.broadcast %453 : vector<1x32xf32> to vector<32x32xf32>
    %455 = arith.addf %452, %454 : vector<32x32xf32>
    %456 = vector.extract_strided_slice %325 {offsets = [7, 0], sizes = [1, 32], strides = [1, 1]} : vector<15x32xf32> to vector<1x32xf32>
    %457 = vector.extract_strided_slice %445 {offsets = [0, 0], sizes = [16, 8], strides = [1, 1]} : vector<16x32xf32> to vector<16x8xf32>
    %458 = vector.extract_strided_slice %445 {offsets = [0, 8], sizes = [16, 8], strides = [1, 1]} : vector<16x32xf32> to vector<16x8xf32>
    %459 = vector.extract_strided_slice %445 {offsets = [0, 16], sizes = [16, 8], strides = [1, 1]} : vector<16x32xf32> to vector<16x8xf32>
    %460 = vector.extract_strided_slice %445 {offsets = [0, 24], sizes = [16, 8], strides = [1, 1]} : vector<16x32xf32> to vector<16x8xf32>
    %461 = vector.shape_cast %457 : vector<16x8xf32> to vector<1x16x8xf32>
    %462 = vector.shape_cast %458 : vector<16x8xf32> to vector<1x16x8xf32>
    %463 = vector.shape_cast %459 : vector<16x8xf32> to vector<1x16x8xf32>
    %464 = vector.shape_cast %460 : vector<16x8xf32> to vector<1x16x8xf32>
    %465 = tpu.concatenate %461, %462, %463, %464 in 0 : vector<1x16x8xf32>, vector<1x16x8xf32>, vector<1x16x8xf32>, vector<1x16x8xf32> -> vector<4x16x8xf32>
    %466 = arith.truncf %465 : vector<4x16x8xf32> to vector<4x16x8xbf16>
    %467 = vector.extract_strided_slice %450 {offsets = [0, 0], sizes = [32, 8], strides = [1, 1]} : vector<32x32xf32> to vector<32x8xf32>
    %468 = vector.extract_strided_slice %450 {offsets = [0, 8], sizes = [32, 8], strides = [1, 1]} : vector<32x32xf32> to vector<32x8xf32>
    %469 = vector.extract_strided_slice %450 {offsets = [0, 16], sizes = [32, 8], strides = [1, 1]} : vector<32x32xf32> to vector<32x8xf32>
    %470 = vector.extract_strided_slice %450 {offsets = [0, 24], sizes = [32, 8], strides = [1, 1]} : vector<32x32xf32> to vector<32x8xf32>
    %471 = vector.shape_cast %467 : vector<32x8xf32> to vector<1x32x8xf32>
    %472 = vector.shape_cast %468 : vector<32x8xf32> to vector<1x32x8xf32>
    %473 = vector.shape_cast %469 : vector<32x8xf32> to vector<1x32x8xf32>
    %474 = vector.shape_cast %470 : vector<32x8xf32> to vector<1x32x8xf32>
    %475 = tpu.concatenate %471, %472, %473, %474 in 0 : vector<1x32x8xf32>, vector<1x32x8xf32>, vector<1x32x8xf32>, vector<1x32x8xf32> -> vector<4x32x8xf32>
    %476 = arith.truncf %475 : vector<4x32x8xf32> to vector<4x32x8xbf16>
    %477 = vector.extract_strided_slice %455 {offsets = [0, 0], sizes = [32, 8], strides = [1, 1]} : vector<32x32xf32> to vector<32x8xf32>
    %478 = vector.extract_strided_slice %455 {offsets = [0, 8], sizes = [32, 8], strides = [1, 1]} : vector<32x32xf32> to vector<32x8xf32>
    %479 = vector.extract_strided_slice %455 {offsets = [0, 16], sizes = [32, 8], strides = [1, 1]} : vector<32x32xf32> to vector<32x8xf32>
    %480 = vector.extract_strided_slice %455 {offsets = [0, 24], sizes = [32, 8], strides = [1, 1]} : vector<32x32xf32> to vector<32x8xf32>
    %481 = vector.shape_cast %477 : vector<32x8xf32> to vector<1x32x8xf32>
    %482 = vector.shape_cast %478 : vector<32x8xf32> to vector<1x32x8xf32>
    %483 = vector.shape_cast %479 : vector<32x8xf32> to vector<1x32x8xf32>
    %484 = vector.shape_cast %480 : vector<32x8xf32> to vector<1x32x8xf32>
    %485 = tpu.concatenate %481, %482, %483, %484 in 0 : vector<1x32x8xf32>, vector<1x32x8xf32>, vector<1x32x8xf32>, vector<1x32x8xf32> -> vector<4x32x8xf32>
    %486 = arith.truncf %485 : vector<4x32x8xf32> to vector<4x32x8xbf16>
    %cst_116 = arith.constant dense<0.000000e+00> : vector<4x16x32xf32>
    %487 = tpu.matmul %466, %476, %cst_116 {dimension_numbers = #tpu.dot_dimension_numbers<[2], [2], [1], [1], [0, 0, 0, 1, 1, 1], [0], [0]>} : vector<4x16x8xbf16>, vector<4x32x8xbf16>, vector<4x16x32xf32> -> vector<4x16x32xf32>
    %cst_117 = arith.constant 0.353553385 : f32
    %488 = vector.broadcast %cst_117 : f32 to vector<4x16x32xf32>
    %489 = arith.mulf %487, %488 : vector<4x16x32xf32>
    %490 = vector.shape_cast %54 : vector<16x32xf32> to vector<1x16x32xf32>
    %491 = vector.broadcast %490 : vector<1x16x32xf32> to vector<4x16x32xf32>
    %492 = arith.addf %489, %491 : vector<4x16x32xf32>
    %cst_118 = arith.constant dense<0xFF800000> : vector<4x16xf32>
    %493 = vector.multi_reduction <maximumf>, %492, %cst_118 [2] : vector<4x16x32xf32> to vector<4x16xf32>
    %494 = vector.shape_cast %493 : vector<4x16xf32> to vector<4x16x1xf32>
    %495 = vector.broadcast %494 : vector<4x16x1xf32> to vector<4x16x32xf32>
    %496 = arith.subf %492, %495 : vector<4x16x32xf32>
    %497 = math.exp %496 : vector<4x16x32xf32>
    %cst_119 = arith.constant dense<0.000000e+00> : vector<4x16xf32>
    %498 = vector.multi_reduction <add>, %497, %cst_119 [2] : vector<4x16x32xf32> to vector<4x16xf32>
    %499 = vector.shape_cast %498 : vector<4x16xf32> to vector<4x16x1xf32>
    %500 = tpu.reciprocal %499 {approx = true} : vector<4x16x1xf32> -> vector<4x16x1xf32>
    %501 = vector.broadcast %500 : vector<4x16x1xf32> to vector<4x16x32xf32>
    %502 = arith.mulf %497, %501 : vector<4x16x32xf32>
    %503 = arith.truncf %502 : vector<4x16x32xf32> to vector<4x16x32xbf16>
    %cst_120 = arith.constant dense<0.000000e+00> : vector<4x16x8xf32>
    %504 = tpu.matmul %503, %486, %cst_120 {dimension_numbers = #tpu.dot_dimension_numbers<[2], [1], [1], [2], [0, 0, 0, 1, 1, 2], [0], [0]>} : vector<4x16x32xbf16>, vector<4x32x8xbf16>, vector<4x16x8xf32> -> vector<4x16x8xf32>
    %505 = arith.truncf %504 : vector<4x16x8xf32> to vector<4x16x8xbf16>
    %cst_121 = arith.constant dense<0.000000e+00> : vector<4x16x32xf32>
    %506 = tpu.matmul %505, %323, %cst_121 {dimension_numbers = #tpu.dot_dimension_numbers<[2], [1], [1], [2], [0, 0, 0, 1, 1, 2], [0], [0]>} : vector<4x16x8xbf16>, vector<4x8x32xbf16>, vector<4x16x32xf32> -> vector<4x16x32xf32>
    %507 = vector.extract_strided_slice %506 {offsets = [0, 0, 0], sizes = [1, 16, 32], strides = [1, 1, 1]} : vector<4x16x32xf32> to vector<1x16x32xf32>
    %508 = vector.shape_cast %507 : vector<1x16x32xf32> to vector<16x32xf32>
    %509 = vector.extract_strided_slice %506 {offsets = [1, 0, 0], sizes = [1, 16, 32], strides = [1, 1, 1]} : vector<4x16x32xf32> to vector<1x16x32xf32>
    %510 = vector.shape_cast %509 : vector<1x16x32xf32> to vector<16x32xf32>
    %511 = arith.addf %508, %510 : vector<16x32xf32>
    %512 = vector.extract_strided_slice %506 {offsets = [2, 0, 0], sizes = [1, 16, 32], strides = [1, 1, 1]} : vector<4x16x32xf32> to vector<1x16x32xf32>
    %513 = vector.shape_cast %512 : vector<1x16x32xf32> to vector<16x32xf32>
    %514 = arith.addf %511, %513 : vector<16x32xf32>
    %515 = vector.extract_strided_slice %506 {offsets = [3, 0, 0], sizes = [1, 16, 32], strides = [1, 1, 1]} : vector<4x16x32xf32> to vector<1x16x32xf32>
    %516 = vector.shape_cast %515 : vector<1x16x32xf32> to vector<16x32xf32>
    %517 = arith.addf %514, %516 : vector<16x32xf32>
    %518 = vector.broadcast %456 : vector<1x32xf32> to vector<16x32xf32>
    %519 = arith.addf %517, %518 : vector<16x32xf32>
    %520 = arith.addf %438, %519 : vector<16x32xf32>
    %521 = vector.extract_strided_slice %325 {offsets = [10, 0], sizes = [1, 32], strides = [1, 1]} : vector<15x32xf32> to vector<1x32xf32>
    %522 = vector.extract_strided_slice %325 {offsets = [11, 0], sizes = [1, 32], strides = [1, 1]} : vector<15x32xf32> to vector<1x32xf32>
    %cst_122 = arith.constant dense<0.000000e+00> : vector<16xf32>
    %523 = vector.multi_reduction <add>, %520, %cst_122 [1] : vector<16x32xf32> to vector<16xf32>
    %524 = vector.shape_cast %523 : vector<16xf32> to vector<16x1xf32>
    %cst_123 = arith.constant 3.200000e+01 : f32
    %525 = vector.broadcast %cst_123 : f32 to vector<16x1xf32>
    %526 = arith.divf %524, %525 : vector<16x1xf32>
    %527 = vector.broadcast %526 : vector<16x1xf32> to vector<16x32xf32>
    %528 = arith.subf %520, %527 : vector<16x32xf32>
    %529 = arith.mulf %528, %528 : vector<16x32xf32>
    %cst_124 = arith.constant dense<0.000000e+00> : vector<16xf32>
    %530 = vector.multi_reduction <add>, %529, %cst_124 [1] : vector<16x32xf32> to vector<16xf32>
    %531 = vector.shape_cast %530 : vector<16xf32> to vector<16x1xf32>
    %cst_125 = arith.constant 3.200000e+01 : f32
    %532 = vector.broadcast %cst_125 : f32 to vector<16x1xf32>
    %533 = arith.divf %531, %532 : vector<16x1xf32>
    %534 = vector.broadcast %526 : vector<16x1xf32> to vector<16x32xf32>
    %535 = arith.subf %520, %534 : vector<16x32xf32>
    %cst_126 = arith.constant 9.99999974E-6 : f32
    %536 = vector.broadcast %cst_126 : f32 to vector<16x1xf32>
    %537 = arith.addf %533, %536 : vector<16x1xf32>
    %538 = math.rsqrt %537 : vector<16x1xf32>
    %539 = vector.broadcast %538 : vector<16x1xf32> to vector<16x32xf32>
    %540 = arith.mulf %535, %539 : vector<16x32xf32>
    %541 = vector.broadcast %521 : vector<1x32xf32> to vector<16x32xf32>
    %542 = arith.mulf %540, %541 : vector<16x32xf32>
    %543 = vector.broadcast %522 : vector<1x32xf32> to vector<16x32xf32>
    %544 = arith.addf %542, %543 : vector<16x32xf32>
    %545 = arith.truncf %544 : vector<16x32xf32> to vector<16x32xbf16>
    %cst_127 = arith.constant dense<0.000000e+00> : vector<16x64xf32>
    %546 = tpu.matmul %545, %327, %cst_127 {dimension_numbers = #tpu.dot_dimension_numbers<[1], [0], [0], [1], [0, 0, 1, 1], [], []>} : vector<16x32xbf16>, vector<32x64xbf16>, vector<16x64xf32> -> vector<16x64xf32>
    %547 = vector.broadcast %329 : vector<1x64xf32> to vector<16x64xf32>
    %548 = arith.addf %546, %547 : vector<16x64xf32>
    %cst_128 = arith.constant 0.000000e+00 : f32
    %549 = vector.broadcast %cst_128 : f32 to vector<16x64xf32>
    %550 = arith.maximumf %548, %549 : vector<16x64xf32>
    %551 = arith.truncf %550 : vector<16x64xf32> to vector<16x64xbf16>
    %cst_129 = arith.constant dense<0.000000e+00> : vector<16x32xf32>
    %552 = tpu.matmul %551, %331, %cst_129 {dimension_numbers = #tpu.dot_dimension_numbers<[1], [0], [0], [1], [0, 0, 1, 1], [], []>} : vector<16x64xbf16>, vector<64x32xbf16>, vector<16x32xf32> -> vector<16x32xf32>
    %553 = vector.extract_strided_slice %325 {offsets = [14, 0], sizes = [1, 32], strides = [1, 1]} : vector<15x32xf32> to vector<1x32xf32>
    %554 = vector.broadcast %553 : vector<1x32xf32> to vector<16x32xf32>
    %555 = arith.addf %552, %554 : vector<16x32xf32>
    %556 = arith.addf %544, %555 : vector<16x32xf32>
    %557 = vector.extract_strided_slice %325 {offsets = [12, 0], sizes = [1, 32], strides = [1, 1]} : vector<15x32xf32> to vector<1x32xf32>
    %558 = vector.extract_strided_slice %325 {offsets = [13, 0], sizes = [1, 32], strides = [1, 1]} : vector<15x32xf32> to vector<1x32xf32>
    %cst_130 = arith.constant dense<0.000000e+00> : vector<16xf32>
    %559 = vector.multi_reduction <add>, %556, %cst_130 [1] : vector<16x32xf32> to vector<16xf32>
    %560 = vector.shape_cast %559 : vector<16xf32> to vector<16x1xf32>
    %cst_131 = arith.constant 3.200000e+01 : f32
    %561 = vector.broadcast %cst_131 : f32 to vector<16x1xf32>
    %562 = arith.divf %560, %561 : vector<16x1xf32>
    %563 = vector.broadcast %562 : vector<16x1xf32> to vector<16x32xf32>
    %564 = arith.subf %556, %563 : vector<16x32xf32>
    %565 = arith.mulf %564, %564 : vector<16x32xf32>
    %cst_132 = arith.constant dense<0.000000e+00> : vector<16xf32>
    %566 = vector.multi_reduction <add>, %565, %cst_132 [1] : vector<16x32xf32> to vector<16xf32>
    %567 = vector.shape_cast %566 : vector<16xf32> to vector<16x1xf32>
    %cst_133 = arith.constant 3.200000e+01 : f32
    %568 = vector.broadcast %cst_133 : f32 to vector<16x1xf32>
    %569 = arith.divf %567, %568 : vector<16x1xf32>
    %570 = vector.broadcast %562 : vector<16x1xf32> to vector<16x32xf32>
    %571 = arith.subf %556, %570 : vector<16x32xf32>
    %cst_134 = arith.constant 9.99999974E-6 : f32
    %572 = vector.broadcast %cst_134 : f32 to vector<16x1xf32>
    %573 = arith.addf %569, %572 : vector<16x1xf32>
    %574 = math.rsqrt %573 : vector<16x1xf32>
    %575 = vector.broadcast %574 : vector<16x1xf32> to vector<16x32xf32>
    %576 = arith.mulf %571, %575 : vector<16x32xf32>
    %577 = vector.broadcast %557 : vector<1x32xf32> to vector<16x32xf32>
    %578 = arith.mulf %576, %577 : vector<16x32xf32>
    %579 = vector.broadcast %558 : vector<1x32xf32> to vector<16x32xf32>
    %580 = arith.addf %578, %579 : vector<16x32xf32>
    %c0_135 = arith.constant 0 : index
    %c0_136 = arith.constant 0 : index
    %581 = vector.load %arg10[%c0_135, %c0_136] : memref<2x32xf32, #tpu.memory_space<vmem>>, vector<2x32xf32>
    %582 = vector.extract_strided_slice %581 {offsets = [0, 0], sizes = [1, 32], strides = [1, 1]} : vector<2x32xf32> to vector<1x32xf32>
    %583 = vector.extract_strided_slice %581 {offsets = [1, 0], sizes = [1, 32], strides = [1, 1]} : vector<2x32xf32> to vector<1x32xf32>
    %cst_137 = arith.constant dense<0.000000e+00> : vector<16xf32>
    %584 = vector.multi_reduction <add>, %580, %cst_137 [1] : vector<16x32xf32> to vector<16xf32>
    %585 = vector.shape_cast %584 : vector<16xf32> to vector<16x1xf32>
    %cst_138 = arith.constant 3.200000e+01 : f32
    %586 = vector.broadcast %cst_138 : f32 to vector<16x1xf32>
    %587 = arith.divf %585, %586 : vector<16x1xf32>
    %588 = vector.broadcast %587 : vector<16x1xf32> to vector<16x32xf32>
    %589 = arith.subf %580, %588 : vector<16x32xf32>
    %590 = arith.mulf %589, %589 : vector<16x32xf32>
    %cst_139 = arith.constant dense<0.000000e+00> : vector<16xf32>
    %591 = vector.multi_reduction <add>, %590, %cst_139 [1] : vector<16x32xf32> to vector<16xf32>
    %592 = vector.shape_cast %591 : vector<16xf32> to vector<16x1xf32>
    %cst_140 = arith.constant 3.200000e+01 : f32
    %593 = vector.broadcast %cst_140 : f32 to vector<16x1xf32>
    %594 = arith.divf %592, %593 : vector<16x1xf32>
    %595 = vector.broadcast %587 : vector<16x1xf32> to vector<16x32xf32>
    %596 = arith.subf %580, %595 : vector<16x32xf32>
    %cst_141 = arith.constant 9.99999974E-6 : f32
    %597 = vector.broadcast %cst_141 : f32 to vector<16x1xf32>
    %598 = arith.addf %594, %597 : vector<16x1xf32>
    %599 = math.rsqrt %598 : vector<16x1xf32>
    %600 = vector.broadcast %599 : vector<16x1xf32> to vector<16x32xf32>
    %601 = arith.mulf %596, %600 : vector<16x32xf32>
    %602 = vector.broadcast %582 : vector<1x32xf32> to vector<16x32xf32>
    %603 = arith.mulf %601, %602 : vector<16x32xf32>
    %604 = vector.broadcast %583 : vector<1x32xf32> to vector<16x32xf32>
    %605 = arith.addf %603, %604 : vector<16x32xf32>
    %c0_142 = arith.constant 0 : index
    %c0_143 = arith.constant 0 : index
    %606 = vector.load %arg11[%c0_142, %c0_143] : memref<16x32xf32, #tpu.memory_space<vmem>>, vector<16x32xf32>
    tpu.vector_store %arg11[%c0_142, %c0_143], %605 {strides = array<i32>} : memref<16x32xf32, #tpu.memory_space<vmem>>, vector<16x32xf32>,
    return
  }
}

</mosaic_0001>

<bundles_post_ra>
// kernel: transformer_decoder.1
= control target key start
LH: loop header
LB: loop body
LE: loop exit
PB: predicated region body
PF: predicated region fallthrough
CT: control target
= control target key end

     0   :  { %16 = vsyncpa [#allocation3], 0  ;;  %s7012_s0 = inlined_call_operand.hbm [shape: f32[16,32], index: 0, kind: input, shape index: {}]   ;;  %s7013_s1 = inlined_call_operand.hbm [shape: f32[32,32], index: 1, kind: input, shape index: {}]   ;;  %s7014_s2 = inlined_call_operand.hbm [shape: f32[16,32], index: 2, kind: input, shape index: {}]   ;;  %s7015_s3 = inlined_call_operand.hbm [shape: f32[32,32], index: 3, kind: input, shape index: {}]   ;;  %s7016_s4 = inlined_call_operand.vmem [shape: bf16[2,32,192], index: 4, kind: input, shape index: {}]   ;;  %s7017_s5 = inlined_call_operand.vmem [shape: bf16[4,4,8,32], index: 5, kind: input, shape index: {}]   ;;  %s7018_s6 = inlined_call_operand.vmem [shape: f32[2,15,32], index: 6, kind: input, shape index: {}]   ;;  %s7019_s7 = inlined_call_operand.vmem [shape: bf16[2,32,64], index: 7, kind: input, shape index: {}]   ;;  %s7020_s8 = inlined_call_operand.hbm [shape: f32[2,1,64], index: 8, kind: input, shape index: {}]   ;;  %s7021_s9 = inlined_call_operand.vmem [shape: bf16[2,64,32], index: 9, kind: input, shape index: {}]   ;;  %s7022_s10 = inlined_call_operand.vmem [shape: f32[2,32], index: 10, kind: input, shape index: {}]   ;;  %s7023_s11 = inlined_call_operand.hbm [shape: f32[16,32], index: 11, kind: output, shape index: {}]  }
   0x1   :  { %17 = vsyncpa [#allocation6], 0 }
   0x2   :  { %18 = vsyncpa [#allocation9], 0 }
   0x3   :  { %19 = vsyncpa [#allocation4], 0  ;;  %s5866_s17 = smov [#allocation5]   ;;  %s5867_s19 = smov [#allocation8]  }
   0x4   :  { %s37_s18 = sshll.u32 %s5866_s17, 4  ;;  %s61_s20 = sshll.u32 %s5867_s19, 4  ;;  %s38_s18 = int_to_ptr.vmem [resolvable:$true] %s37_s18  ;;  %s5945_s20 = int_to_ptr.vmem [resolvable:$true] %s61_s20 }
   0x5   :  { %s5726_s23 = scalar_lea.hbm %s7013_s1, 512 }
   0x6   :  { %p5727_p0 = scmp.ne.s32.totalorder %s7013_s1, %s5726_s23  ;;  %p5730_p1 = scmp.lt.u32.totalorder %s5726_s23, %s7013_s1 }
   0x8   :  { %p5732_p2 = pnand %p5730_p1, %p5727_p0 }
   0xa   :  { %5735 = shalt.err (!%p5732_p2)
}
   0xb   :  { %s5736_s28 = scalar_lea.vmem %s38_s18, 512  ;;  %p5741_p4 = scmp.lt.s32.totalorder %s38_s18, %s38_s18 }
   0xc   :  { %p5737_p3 = scmp.ne.s32.totalorder %s38_s18, %s5736_s28  ;;  %p5742_p5 = scmp.lt.s32.totalorder %s5736_s28, %s5736_s28 }
   0xe   :  { %p5743_p6 = por %p5742_p5, %p5741_p4 }
  0x10   :  { %p5744_p7 = pnand %p5743_p6, %p5737_p3 }
  0x12   :  { %5747 = shalt.err (!%p5744_p7)
}
  0x13   :  { %s5868_s29 = smov 128   ;;  %s5869_s30 = smov 8  }
  0x14   :  { %43 = dma.hbm_to_vmem [thread:$0]  %s7013_s1, 512, %s38_s18, [#allocation6], %s5868_s29, %s5868_s29, %s5869_s30  }
  0x15   :  { %s5748_s16 = scalar_lea.hbm %s7015_s3, 512 }
  0x16   :  { %p5749_p8 = scmp.ne.s32.totalorder %s7015_s3, %s5748_s16  ;;  %p5752_p9 = scmp.lt.u32.totalorder %s5748_s16, %s7015_s3 }
  0x18   :  { %p5754_p10 = pnand %p5752_p9, %p5749_p8 }
  0x1a   :  { %5757 = shalt.err (!%p5754_p10)
}
  0x1b   :  { %s5758_s23 = scalar_lea.vmem %s5945_s20, 512  ;;  %p5763_p12 = scmp.lt.s32.totalorder %s5945_s20, %s5945_s20 }
  0x1c   :  { %p5759_p11 = scmp.ne.s32.totalorder %s5945_s20, %s5758_s23  ;;  %p5764_p13 = scmp.lt.s32.totalorder %s5758_s23, %s5758_s23 }
  0x1e   :  { %p5765_p0 = por %p5764_p13, %p5763_p12 }
  0x20   :  { %p5766_p1 = pnand %p5765_p0, %p5759_p11 }
  0x22   :  { %5769 = shalt.err (!%p5766_p1)
}
  0x23   :  { %67 = dma.hbm_to_vmem [thread:$0]  %s7015_s3, 512, %s5945_s20, [#allocation9], %s5868_s29, %s5868_s29, %s5869_s30  }
  0x24   :  { %s5870_s24 = smov [#allocation2]   ;;  %s5871_s26 = smov [#allocation7]  }
  0x25   :  { %s25_s25 = sshll.u32 %s5870_s24, 4  ;;  %s49_s27 = sshll.u32 %s5871_s26, 4  ;;  %s26_s25 = int_to_ptr.vmem [resolvable:$true] %s25_s25  ;;  %s5982_s27 = int_to_ptr.vmem [resolvable:$true] %s49_s27 }
  0x26   :  { %s5770_s13 = scalar_lea.hbm %s7012_s0, 256 }
  0x27   :  { %p5771_p2 = scmp.ne.s32.totalorder %s7012_s0, %s5770_s13  ;;  %p5774_p3 = scmp.lt.u32.totalorder %s5770_s13, %s7012_s0 }
  0x29   :  { %p5776_p4 = pnand %p5774_p3, %p5771_p2 }
  0x2b   :  { %5779 = shalt.err (!%p5776_p4)
}
  0x2c   :  { %s5780_s3 = scalar_lea.vmem %s26_s25, 256  ;;  %p5785_p6 = scmp.lt.s32.totalorder %s26_s25, %s26_s25 }
  0x2d   :  { %p5781_p5 = scmp.ne.s32.totalorder %s26_s25, %s5780_s3  ;;  %p5786_p7 = scmp.lt.s32.totalorder %s5780_s3, %s5780_s3 }
  0x2f   :  { %p5787_p8 = por %p5786_p7, %p5785_p6 }
  0x31   :  { %p5788_p9 = pnand %p5787_p8, %p5781_p5 }
  0x33   :  { %5791 = shalt.err (!%p5788_p9)
}
  0x34   :  { %31 = dma.hbm_to_vmem [thread:$0]  %s7012_s0, 256, %s26_s25, [#allocation3], %s5868_s29, %s5868_s29, %s5869_s30  }
  0x35   :  { %s5792_s23 = scalar_lea.hbm %s7014_s2, 256 }
  0x36   :  { %p5793_p10 = scmp.ne.s32.totalorder %s7014_s2, %s5792_s23  ;;  %p5796_p11 = scmp.lt.u32.totalorder %s5792_s23, %s7014_s2 }
  0x38   :  { %p5798_p12 = pnand %p5796_p11, %p5793_p10 }
  0x3a   :  { %5801 = shalt.err (!%p5798_p12)
}
  0x3b   :  { %s5802_s28 = scalar_lea.vmem %s5982_s27, 256  ;;  %p5807_p0 = scmp.lt.s32.totalorder %s5982_s27, %s5982_s27 }
  0x3c   :  { %p5803_p13 = scmp.ne.s32.totalorder %s5982_s27, %s5802_s28  ;;  %p5808_p1 = scmp.lt.s32.totalorder %s5802_s28, %s5802_s28 }
  0x3e   :  { %p5809_p2 = por %p5808_p1, %p5807_p0 }
  0x40   :  { %p5810_p3 = pnand %p5809_p2, %p5803_p13 }
  0x42   :  { %5813 = shalt.err (!%p5810_p3)
}
  0x43   :  { %55 = dma.hbm_to_vmem [thread:$0]  %s7014_s2, 256, %s5982_s27, [#allocation6], %s5868_s29, %s5868_s29, %s5869_s30  }
  0x44   :  { %s5872_s12 = smov [#allocation10]   ;;  %s5814_s16 = scalar_lea.hbm %s7020_s8, 32 }
  0x45   :  { %s81_s13 = sshll.u32 %s5872_s12, 4  ;;  %p5815_p4 = scmp.ne.s32.totalorder %s7020_s8, %s5814_s16  ;;  %s82_s13 = int_to_ptr.vmem [resolvable:$true] %s81_s13 }
  0x46   :  { %p5818_p5 = scmp.lt.u32.totalorder %s5814_s16, %s7020_s8 }
  0x48   :  { %p5820_p6 = pnand %p5818_p5, %p5815_p4 }
  0x4a   :  { %5823 = shalt.err (!%p5820_p6)
}
  0x4b   :  { %s5824_s21 = scalar_lea.vmem %s82_s13, 32  ;;  %p5829_p8 = scmp.lt.s32.totalorder %s82_s13, %s82_s13 }
  0x4c   :  { %p5825_p7 = scmp.ne.s32.totalorder %s82_s13, %s5824_s21  ;;  %p5830_p9 = scmp.lt.s32.totalorder %s5824_s21, %s5824_s21 }
  0x4e   :  { %p5831_p10 = por %p5830_p9, %p5829_p8 }
  0x50   :  { %p5832_p11 = pnand %p5831_p10, %p5825_p7 }
  0x52   :  { %5835 = shalt.err (!%p5832_p11)
}
  0x53   :  { %s5873_s2 = smov 16   ;;  %s5874_s27 = smov 1  }
  0x54   :  { %87 = dma.hbm_to_vmem [thread:$0]  %s7020_s8, 32, %s82_s13, [#allocation9], %s5873_s2, %s5873_s2, %s5874_s27  }
  0x55   :  { %5858 = dma.done.wait [#allocation3], 256  }
  0x56   :  { %5859 = vsyncadd [#allocation3], 4294967040 }
  0x57   :  { %5860 = dma.done.wait [#allocation6], 768  }
  0x58   :  { %5861 = vsyncadd [#allocation6], 4294966528 }
  0x59   :  { %5862 = dma.done.wait [#allocation9], 544  }
  0x5a   :  { %5863 = vsyncadd [#allocation9], 4294966752  ;;  %v128_v0 = vlaneseq  ;;  %v5875_v1 = vmov 0.0   ;;  %vm5876_vm0 = vmmov 0   ;;  %v6043_v3 = vld [vmem:[%s7016_s4] ss:$8 sps:$4 sm:$0xff]  }
  0x5b   :  { %4841 = vmatprep.subr.bf16.mxu1 %v5875_v1  ;;  %4845 = vmatprep.mubr.msk.bf16.mxu1 %vm5876_vm0, %v5875_v1  ;;  %v6051_v5 = vld [vmem:[%s7016_s4 + $0x10] ss:$8 sps:$4 sm:$0xff]   ;;  %v6054_v6 = vld [vmem:[#allocation2] sm:$0xff]  ;;  %v6056_v7 = vld [vmem:[#allocation2 + $0x8] sm:$0xff]  ;;  %vm198_vm1 = vcmask 261120   ;;  %s5877_s0 = smov 32  }
  0x5c   :  { %4857 = vmatprep.subr.bf16.mxu0 %v5875_v1  ;;  %4859 = vmatprep.mubr.msk.bf16.mxu0 %vm5876_vm0, %v5875_v1  ;;  %v6038_v2 = vshrl.u32 %v128_v0, 7  ;;  %v110_v8 = vld [vmem:[#allocation7] sm:$0xff]  ;;  %v111_v9 = vld [vmem:[#allocation7 + $0x8] sm:$0xff]  ;;  %v6063_v11 = vld [vmem:[%s7018_s6] sm:$0xff]  ;;  %s5878_s25 = smov 112   ;;  %s5879_s12 = smov 120   ;;  %v259_v46 = vpack.c.bf16 %v6056_v7, %v6054_v6 }
  0x5d   :  { %4842 = vmatpush3.bf16.msra.mxu1 %v6043_v3  ;;  %v183_v10 = vadd.f32 %v110_v8, %v6054_v6  ;;  %v184_v12 = vadd.f32 %v111_v9, %v6056_v7  ;;  %s5880_s13 = smov 104   ;;  %s5881_s14 = smov 64   ;;  %vm389_vm2 = vcmask 64512   ;;  %v144_v9 = vand.u32 127, %v128_v0 }
  0x5e   :  { %v6046_v4 = vsub.s32 1, %v6038_v2  ;;  %4843 = vmatprep.subr.bf16.mxu1 %v5875_v1  ;;  %v6075_v15 = vsub.s32 0, %v6038_v2  ;;  %s5882_s15 = smov 96   ;;  %v6124_v0 = vsub.s32 2, %v6038_v2  ;;  %vm603_vm5 = vcmask 130048   ;;  %s5884_s19 = smov [#allocation11]  }
  0x5f   :  { %v185_v14 = vpack.c.bf16 %v184_v12, %v183_v10  ;;  %v130_v10 = vadd.s32 8, %v6038_v2  ;;  %v145_v12 = vcvt.s32.f32 %v144_v9  ;;  %vm879_vm6 = vcmask 1043456  }
  0x60   :  { %v252_v13 = vrot.slane %v6063_v11, %v6046_v4  ;;  %v246_v18 = vrot.slane %v6063_v11, %v6075_v15  ;;  %vm2249_vm7 = vcmask 523264  }
  0x61   :  { %4844 = vmatpush3.bf16.msra.mxu1 %v6051_v5 }
  0x62   :  { %254 = vrot.lane.b32.xlu0 %v252_v13, %s5877_s0  ;;  %4849 = vmatprep.subr.bf16.mxu1 %v5875_v1  ;;  %v131_v13 = vcvt.s32.f32 %v6038_v2 }
  0x64   :  { %4846 = vmatmul.mubr.msk.bf16.vlgmr.msra.gmra.mrb[0].mxu1 %vm198_vm1, %v185_v14  ;;  %v132_v14 = vcvt.s32.f32 %v130_v10 }
  0x65   :  { %4853 = vmatprep.mubr.msk.bf16.mxu1 %vm5876_vm0, %v5875_v1 }
  0xd4   :  { %v255_v16 = vpop.permute.xlu0 %254 }
 0x137   :  { %v236_v17 = vpop.f32.mrb[0].mxu1 }
 0x138   :  { %v4847_v19 = vpop.f32.mrb[1].mxu1  ;;  %v257_v21 = vadd.f32 %v255_v16, %v236_v17  ;;  %v247_v25 = vadd.f32 %v246_v18, %v236_v17  ;;  %v133_v17 = vadd.f32 0.5, %v131_v13 }
 0x139   :  { %v239_v20 = vpop.f32.mrb[2].mxu1 }
 0x13a   :  { %v248_v22 = vadd.f32 %v246_v18, %v239_v20  ;;  %v258_v23 = vadd.f32 %v255_v16, %v239_v20  ;;  %v4848_v24 = vpop.f32.mrb[3].mxu1  ;;  %v146_v16 = vadd.f32 0.5, %v145_v12  ;;  %v134_v18 = vadd.f32 0.5, %v132_v14 }
 0x13b   :  { %v135_v20 = vmul.f32 0.5, %v133_v17 }
 0x13c   :  { %v5305_v26 = vpack.i.bf16 %v258_v23, %v257_v21  ;;  %v358_v27 = vpack.c.bf16 %v258_v23, %v257_v21  ;;  %v5315_v28 = vpack.i.bf16 %v248_v22, %v247_v25  ;;  %v334_v29 = vpack.c.bf16 %v248_v22, %v247_v25 }
 0x13d   :  { %v147_v19 = vmul.f32 0.5, %v146_v16  ;;  %v136_v21 = vmul.f32 0.5, %v134_v18  ;;  %v137_v23 = vfloor.f32 %v135_v20 }
 0x13e   :  { %5306 = vrot.lane.b32.xlu1 %v5305_v26, %s5878_s25  ;;  %5301 = vrot.lane.b32.xlu0 %v5305_v26, %s5879_s12 }
 0x13f   :  { %v148_v22 = vfloor.f32 %v147_v19  ;;  %v138_v24 = vfloor.f32 %v136_v21  ;;  %v139_v25 = vmul.f32 2.0, %v137_v23 }
 0x142   :  { %5311 = vrot.lane.b32.xlu1 %v5305_v26, %s5880_s13  ;;  %264 = vrot.lane.b32.xlu0 %v6043_v3, %s5881_s14  ;;  %v149_v26 = vmul.f32 2.0, %v148_v22 }
 0x146   :  { %387 = vrot.lane.b32.xlu0 %v358_v27, %s5882_s15  ;;  %266 = vrot.lane.b32.xlu1 %v6051_v5, %s5881_s14  ;;  %v140_v27 = vmul.f32 2.0, %v138_v24 }
 0x14a   :  { %5316 = vrot.lane.b32.xlu0 %v5315_v28, %s5879_s12 }
 0x1b0   :  { %v5307_v30 = vpop.permute.xlu1 %5306  ;;  %v5302_v31 = vpop.permute.xlu0 %5301 }
 0x1b1   :  { %v5304_v32 = vunpack.i.h.bf16 %v5302_v31  ;;  %v5303_v33 = vunpack.i.l.bf16 %v5302_v31  ;;  %v5309_v34 = vunpack.i.h.bf16 %v5307_v30  ;;  %v5308_v35 = vunpack.i.l.bf16 %v5307_v30 }
 0x1b2   :  { %v142_v30 = vsub.f32 %v132_v14, %v140_v27  ;;  %v263_v31 = vrot.slane %v6063_v11, %v6124_v0 }
 0x1b3   :  { %v359_v36 = vpack.c.bf16 %v5304_v32, %v5303_v33  ;;  %v360_v41 = vpack.c.bf16 %v5309_v34, %v5308_v35 }
 0x1b4   :  { %v5312_v37 = vpop.permute.xlu1 %5311  ;;  %v265_v38 = vpop.permute.xlu0 %264 }
 0x1b5   :  { %v5314_v39 = vunpack.i.h.bf16 %v5312_v37  ;;  %v5313_v40 = vunpack.i.l.bf16 %v5312_v37  ;;  %438 = vrot.lane.b32.xlu1 %v359_v36, %s5882_s15  ;;  %4850 = vmatpush3.bf16.msra.mxu1 %v265_v38  ;;  %v5883_v37 = vmov -1e+30  }
 0x1b6   :  { %4851 = vmatprep.subr.bf16.mxu1 %v5875_v1 }
 0x1b7   :  { %v361_v42 = vpack.c.bf16 %v5314_v39, %v5313_v40 }
 0x1b8   :  { %v388_v43 = vpop.permute.xlu0 %387  ;;  %v267_v44 = vpop.permute.xlu1 %266 }
 0x1b9   :  { %488 = vrot.lane.b32.xlu1 %v360_v41, %s5882_s15  ;;  %538 = vrot.lane.b32.xlu0 %v361_v42, %s5882_s15  ;;  %v394_v45 = vsel %vm389_vm2, %v388_v43, 0 }
 0x1ba   :  { %4858 = vmatpush3.bf16.xpose.msra.mxu0 %v394_v45  ;;  %4852 = vmatpush3.bf16.msra.mxu1 %v267_v44 }
 0x1bb   :  { %4863 = vmatprep.subr.bf16.mxu1 %v5875_v1  ;;  %4869 = vmatprep.subr.bf16.mxu0 %v5875_v1 }
 0x1bc   :  { %v5317_v47 = vpop.permute.xlu0 %5316 }
 0x1bd   :  { %5321 = vrot.lane.b32.xlu1 %v5315_v28, %s5878_s25  ;;  %5326 = vrot.lane.b32.xlu0 %v5315_v28, %s5880_s13  ;;  %v5319_v50 = vunpack.i.h.bf16 %v5317_v47  ;;  %v5318_v51 = vunpack.i.l.bf16 %v5317_v47  ;;  %v141_v28 = vsub.f32 %v131_v13, %v139_v25 }
 0x1be   :  { %4854 = vmatmul.mubr.msk.bf16.vlgmr.msra.gmra.mrb[4].mxu1 %vm198_vm1, %v259_v46 }
 0x1bf   :  { %4865 = vmatprep.mubr.msk.bf16.mxu1 %vm5876_vm0, %v5875_v1  ;;  %v335_v55 = vpack.c.bf16 %v5319_v50, %v5318_v51 }
 0x1c1   :  { %4860 = vmatmul.mubr.msk.bf16.vlgmr.msra.gmra.mrb[0].mxu0 %vm389_vm2, %v334_v29  ;;  %v150_v29 = vsub.f32 %v145_v12, %v149_v26 }
 0x1c2   :  { %4871 = vmatprep.mubr.msk.bf16.mxu0 %vm5876_vm0, %v5875_v1 }
 0x1c3   :  { %vm151_vm3 = vcmp.eq.f32.partialorder %v141_v28, %v150_v29  ;;  %vm152_vm4 = vcmp.eq.f32.partialorder %v142_v30, %v150_v29 }
 0x1c4   :  { %v6128_v38 = vsel %vm151_vm3, 0.0, %v5883_v37  ;;  %v6130_v43 = vsel %vm152_vm4, 0.0, %v5883_v37 }
 0x227   :  { %v439_v48 = vpop.permute.xlu1 %438 }
 0x228   :  { %v444_v49 = vsel %vm389_vm2, %v439_v48, 0 }
 0x229   :  { %4864 = vmatpush3.bf16.xpose.msra.mxu1 %v444_v49 }
 0x22a   :  { %4875 = vmatprep.subr.bf16.mxu1 %v5875_v1 }
 0x22b   :  { %v489_v52 = vpop.permute.xlu1 %488  ;;  %v539_v53 = vpop.permute.xlu0 %538 }
 0x22c   :  { %v494_v54 = vsel %vm389_vm2, %v489_v52, 0  ;;  %v544_v58 = vsel %vm389_vm2, %v539_v53, 0 }
 0x22d   :  { %4870 = vmatpush3.bf16.xpose.msra.mxu0 %v494_v54 }
 0x22e   :  { %4881 = vmatprep.subr.bf16.mxu0 %v5875_v1 }
 0x22f   :  { %v5322_v56 = vpop.permute.xlu1 %5321  ;;  %v5327_v57 = vpop.permute.xlu0 %5326 }
 0x230   :  { %v5324_v59 = vunpack.i.h.bf16 %v5322_v56  ;;  %v5323_v60 = vunpack.i.l.bf16 %v5322_v56  ;;  %4866 = vmatmul.mubr.msk.bf16.vlgmr.msra.gmra.mrb[8].mxu1 %vm389_vm2, %v335_v55  ;;  %v5329_v62 = vunpack.i.h.bf16 %v5327_v57  ;;  %v5328_v63 = vunpack.i.l.bf16 %v5327_v57 }
 0x231   :  { %4876 = vmatpush3.bf16.xpose.msra.mxu1 %v544_v58  ;;  %4877 = vmatprep.mubr.msk.bf16.mxu1 %vm5876_vm0, %v5875_v1 }
 0x232   :  { %v336_v61 = vpack.c.bf16 %v5324_v59, %v5323_v60  ;;  %4887 = vmatprep.subr.bf16.mxu1 %v5875_v1  ;;  %v337_v8 = vpack.c.bf16 %v5329_v62, %v5328_v63 }
 0x234   :  { %4872 = vmatmul.mubr.msk.bf16.vlgmr.msra.gmra.mrb[4].mxu0 %vm389_vm2, %v336_v61 }
 0x235   :  { %4883 = vmatprep.mubr.msk.bf16.mxu0 %vm5876_vm0, %v5875_v1 }
 0x238   :  { %4878 = vmatmul.mubr.msk.bf16.vlgmr.msra.gmra.mrb[12].mxu1 %vm389_vm2, %v337_v8 }
 0x239   :  { %4889 = vmatprep.mubr.msk.bf16.mxu1 %vm5876_vm0, %v5875_v1 }
 0x291   :  { %v307_v32 = vpop.f32.mrb[4].mxu1 }
 0x292   :  { %v308_v33 = vadd.f32 %v307_v32, %v263_v31  ;;  %v4855_v34 = vpop.f32.mrb[5].mxu1 }
 0x293   :  { %v310_v35 = vpop.f32.mrb[6].mxu1 }
 0x294   :  { %v430_v36 = vpop.f32.mrb[0].mxu0  ;;  %v311_v39 = vadd.f32 %v310_v35, %v263_v31  ;;  %v4856_v40 = vpop.f32.mrb[7].mxu1 }
 0x295   :  { %v587_v41 = vmul.f32 0.35355338, %v430_v36  ;;  %v4861_v42 = vpop.f32.mrb[1].mxu0 }
 0x296   :  { %v433_v44 = vpop.f32.mrb[2].mxu0  ;;  %v382_v45 = vpack.c.bf16 %v311_v39, %v308_v33  ;;  %v6132_v46 = vpack.i.bf16 %v311_v39, %v308_v33 }
 0x297   :  { %v588_v47 = vmul.f32 0.35355338, %v433_v44  ;;  %v4862_v48 = vpop.f32.mrb[3].mxu0  ;;  %v595_v49 = vadd.f32 %v587_v41, %v6128_v38 }
 0x298   :  { %4882 = vmatpush3.bf16.msra.mxu0 %v382_v45 }
 0x299   :  { %v604_v50 = vsel %vm603_vm5, %v595_v49, -inf  ;;  %v596_v51 = vadd.f32 %v588_v47, %v6130_v43  ;;  %4893 = vmatprep.subr.bf16.mxu0 %v5875_v1 }
 0x29a   :  { %605 = vmax.xlane.f32.xlu1 %v604_v50 }
 0x29b   :  { %v607_v52 = vsel %vm603_vm5, %v596_v51, -inf }
 0x29c   :  { %608 = vmax.xlane.f32.xlu0 %v607_v52 }
 0x303   :  { %v480_v53 = vpop.f32.mrb[8].mxu1 }
 0x304   :  { %v589_v54 = vmul.f32 0.35355338, %v480_v53  ;;  %v4867_v55 = vpop.f32.mrb[9].mxu1 }
 0x305   :  { %v483_v56 = vpop.f32.mrb[10].mxu1 }
 0x306   :  { %v590_v57 = vmul.f32 0.35355338, %v483_v56  ;;  %v4868_v58 = vpop.f32.mrb[11].mxu1  ;;  %v597_v59 = vadd.f32 %v589_v54, %v6128_v38 }
 0x307   :  { %v530_v60 = vpop.f32.mrb[4].mxu0 }
 0x308   :  { %v591_v61 = vmul.f32 0.35355338, %v530_v60  ;;  %v4873_v62 = vpop.f32.mrb[5].mxu0  ;;  %v610_v63 = vsel %vm603_vm5, %v597_v59, -inf  ;;  %v598_v8 = vadd.f32 %v590_v57, %v6130_v43 }
 0x309   :  { %v533_v9 = vpop.f32.mrb[6].mxu0  ;;  %611 = vmax.xlane.f32.xlu0 %v610_v63 }
 0x30a   :  { %v592_v10 = vmul.f32 0.35355338, %v533_v9  ;;  %v4874_v12 = vpop.f32.mrb[7].mxu0  ;;  %v613_v13 = vsel %vm603_vm5, %v598_v8, -inf  ;;  %v599_v14 = vadd.f32 %v591_v61, %v6128_v38 }
 0x30b   :  { %614 = vmax.xlane.f32.xlu1 %v613_v13  ;;  %v580_v16 = vpop.f32.mrb[12].mxu1 }
 0x30c   :  { %v593_v17 = vmul.f32 0.35355338, %v580_v16  ;;  %v4879_v18 = vpop.f32.mrb[13].mxu1  ;;  %v616_v19 = vsel %vm603_vm5, %v599_v14, -inf  ;;  %v600_v20 = vadd.f32 %v592_v10, %v6130_v43 }
 0x30d   :  { %617 = vmax.xlane.f32.xlu0 %v616_v19  ;;  %v583_v21 = vpop.f32.mrb[14].mxu1 }
 0x30e   :  { %v594_v22 = vmul.f32 0.35355338, %v583_v21  ;;  %v4880_v23 = vpop.f32.mrb[15].mxu1  ;;  %v619_v24 = vsel %vm603_vm5, %v600_v20, -inf  ;;  %v601_v25 = vadd.f32 %v593_v17, %v6128_v38 }
 0x30f   :  { %620 = vmax.xlane.f32.xlu1 %v619_v24 }
 0x310   :  { %v622_v26 = vsel %vm603_vm5, %v601_v25, -inf  ;;  %v602_v27 = vadd.f32 %v594_v22, %v6130_v43 }
 0x311   :  { %623 = vmax.xlane.f32.xlu0 %v622_v26 }
 0x312   :  { %v625_v28 = vsel %vm603_vm5, %v602_v27, -inf }
 0x313   :  { %626 = vmax.xlane.f32.xlu1 %v625_v28 }
 0x327   :  { %v606_v29 = vpop.xlane.xlu1 %605 }
 0x328   :  { %v628_v30 = vsub.f32 %v595_v49, %v606_v29 }
 0x329   :  { %v609_v31 = vpop.xlane.xlu0 %608 }
 0x32a   :  { %v636_v32 = vmul.f32 1.442695, %v628_v30  ;;  %v629_v33 = vsub.f32 %v596_v51, %v609_v31 }
 0x32c   :  { %5564 = vpow2.f32 %v636_v32  ;;  %v638_v34 = vmul.f32 1.442695, %v629_v33 }
 0x32e   :  { %5566 = vpow2.f32 %v638_v34 }
 0x336   :  { %v5565_v35 = vpop.eup %5564 }
 0x337   :  { %v652_v36 = vsel %vm603_vm5, %v5565_v35, 0.0 }
 0x338   :  { %v5567_v37 = vpop.eup %5566  ;;  %653 = vadd.xlane.f32.xlu0 %v652_v36 }
 0x339   :  { %v655_v39 = vsel %vm603_vm5, %v5567_v37, 0.0 }
 0x33a   :  { %656 = vadd.xlane.f32.xlu1 %v655_v39 }
 0x396   :  { %v612_v40 = vpop.xlane.xlu0 %611 }
 0x397   :  { %v630_v41 = vsub.f32 %v597_v59, %v612_v40 }
 0x398   :  { %v615_v42 = vpop.xlane.xlu1 %614 }
 0x399   :  { %v640_v44 = vmul.f32 1.442695, %v630_v41  ;;  %v631_v45 = vsub.f32 %v598_v8, %v615_v42 }
 0x39a   :  { %v618_v47 = vpop.xlane.xlu0 %617 }
 0x39b   :  { %5568 = vpow2.f32 %v640_v44  ;;  %v642_v48 = vmul.f32 1.442695, %v631_v45  ;;  %v632_v49 = vsub.f32 %v599_v14, %v618_v47  ;;  %v159_v45 = vld [vmem:[%s7017_s5] sm:$0xf] }
 0x39c   :  { %v621_v50 = vpop.xlane.xlu1 %620 }
 0x39d   :  { %5570 = vpow2.f32 %v642_v48  ;;  %v644_v51 = vmul.f32 1.442695, %v632_v49  ;;  %v633_v52 = vsub.f32 %v600_v20, %v621_v50 }
 0x39e   :  { %v624_v53 = vpop.xlane.xlu0 %623 }
 0x39f   :  { %5572 = vpow2.f32 %v644_v51  ;;  %v646_v54 = vmul.f32 1.442695, %v633_v52  ;;  %v634_v55 = vsub.f32 %v601_v25, %v624_v53  ;;  %v881_v51 = vsel %vm879_vm6, %v159_v45, 0 }
 0x3a0   :  { %v627_v12 = vpop.xlane.xlu1 %626 }
 0x3a1   :  { %5574 = vpow2.f32 %v646_v54  ;;  %v648_v56 = vmul.f32 1.442695, %v634_v55  ;;  %v635_v16 = vsub.f32 %v602_v27, %v627_v12 }
 0x3a3   :  { %5576 = vpow2.f32 %v648_v56  ;;  %v650_v18 = vmul.f32 1.442695, %v635_v16 }
 0x3a5   :  { %v5569_v57 = vpop.eup %5568 }
 0x3a6   :  { %v658_v58 = vsel %vm603_vm5, %v5569_v57, 0.0 }
 0x3a7   :  { %v5571_v59 = vpop.eup %5570  ;;  %659 = vadd.xlane.f32.xlu0 %v658_v58 }
 0x3a8   :  { %v661_v60 = vsel %vm603_vm5, %v5571_v59, 0.0 }
 0x3a9   :  { %v5573_v61 = vpop.eup %5572  ;;  %662 = vadd.xlane.f32.xlu1 %v661_v60 }
 0x3aa   :  { %v664_v62 = vsel %vm603_vm5, %v5573_v61, 0.0 }
 0x3ab   :  { %v5575_v63 = vpop.eup %5574  ;;  %665 = vadd.xlane.f32.xlu0 %v664_v62  ;;  %v160_v62 = vld [vmem:[%s7017_s5 + $0x4] sm:$0xf] }
 0x3ac   :  { %v667_v8 = vsel %vm603_vm5, %v5575_v63, 0.0 }
 0x3ad   :  { %v6157_v9 = vpop.eup %5576  ;;  %668 = vadd.xlane.f32.xlu1 %v667_v8 }
 0x3ae   :  { %v670_v10 = vsel %vm603_vm5, %v6157_v9, 0.0 }
 0x3af   :  { %671 = vadd.xlane.f32.xlu0 %v670_v10 }
 0x3be   :  { %5336 = vrot.lane.b32.xlu1 %v6132_v46, %s5878_s25 }
 0x3c5   :  { %5331 = vrot.lane.b32.xlu0 %v6132_v46, %s5879_s12  ;;  %v654_v13 = vpop.xlane.xlu0 %653 }
 0x3c6   :  { %5578 = vrcp.f32 %v654_v13 }
 0x3c7   :  { %v657_v14 = vpop.xlane.xlu1 %656 }
 0x3c8   :  { %5580 = vrcp.f32 %v657_v14 }
 0x3c9   :  { %5582 = vpow2.f32 %v650_v18  ;;  %v162_v18 = vld [vmem:[%s7017_s5 + $0xc] sm:$0xf] }
 0x3d0   :  { %v5579_v17 = vpop.eup %5578 }
 0x3d1   :  { %v684_v20 = vmul.f32 %v5579_v17, %v5565_v35 }
 0x3d2   :  { %v5581_v19 = vpop.eup %5580 }
 0x3d3   :  { %v685_v21 = vmul.f32 %v5581_v19, %v5567_v37  ;;  %v5583_v23 = vpop.eup %5582 }
 0x3d4   :  { %v673_v24 = vsel %vm603_vm5, %v5583_v23, 0.0 }
 0x3d5   :  { %v692_v22 = vpack.c.bf16 %v685_v21, %v684_v20 }
 0x3d7   :  { %4884 = vmatmul.mubr.msk.bf16.vlgmr.msra.gmra.mrb[8].mxu0 %vm603_vm5, %v692_v22 }
 0x3d8   :  { %4895 = vmatprep.mubr.msk.bf16.mxu0 %vm5876_vm0, %v5875_v1 }
 0x3e2   :  { %674 = vadd.xlane.f32.xlu1 %v673_v24 }
 0x3f3   :  { %5341 = vrot.lane.b32.xlu1 %v6132_v46, %s5880_s13 }
 0x434   :  { %v660_v25 = vpop.xlane.xlu0 %659 }
 0x435   :  { %5584 = vrcp.f32 %v660_v25  ;;  %v1022_v25 = vsel %vm879_vm6, %v162_v18, 0  ;;  %v6238_v18 = vld [vmem:[#allocation5 + $0x18] sm:$0xff] }
 0x436   :  { %v663_v26 = vpop.xlane.xlu1 %662 }
 0x437   :  { %5586 = vrcp.f32 %v663_v26 }
 0x438   :  { %v666_v27 = vpop.xlane.xlu0 %665 }
 0x439   :  { %5588 = vrcp.f32 %v666_v27 }
 0x43a   :  { %v669_v28 = vpop.xlane.xlu1 %668 }
 0x43b   :  { %5590 = vrcp.f32 %v669_v28 }
 0x43c   :  { %v672_v29 = vpop.xlane.xlu0 %671 }
 0x43d   :  { %5592 = vrcp.f32 %v672_v29 }
 0x43e   :  { %v5337_v30 = vpop.permute.xlu1 %5336 }
 0x43f   :  { %v5339_v31 = vunpack.i.h.bf16 %v5337_v30  ;;  %v5338_v32 = vunpack.i.l.bf16 %v5337_v30  ;;  %v5585_v33 = vpop.eup %5584 }
 0x440   :  { %v5332_v34 = vpop.permute.xlu0 %5331  ;;  %v686_v42 = vmul.f32 %v5585_v33, %v5569_v57 }
 0x441   :  { %v5587_v35 = vpop.eup %5586  ;;  %v384_v36 = vpack.c.bf16 %v5339_v31, %v5338_v32  ;;  %v5334_v37 = vunpack.i.h.bf16 %v5332_v34  ;;  %v5333_v39 = vunpack.i.l.bf16 %v5332_v34 }
 0x442   :  { %v687_v40 = vmul.f32 %v5587_v35, %v5571_v59 }
 0x443   :  { %v5589_v46 = vpop.eup %5588  ;;  %v383_v41 = vpack.c.bf16 %v5334_v37, %v5333_v39  ;;  %4894 = vmatpush3.bf16.msra.mxu0 %v384_v36 }
 0x444   :  { %4905 = vmatprep.subr.bf16.mxu0 %v5875_v1  ;;  %v688_v47 = vmul.f32 %v5589_v46, %v5573_v61  ;;  %v693_v49 = vpack.c.bf16 %v687_v40, %v686_v42 }
 0x445   :  { %v5591_v44 = vpop.eup %5590  ;;  %4888 = vmatpush3.bf16.msra.mxu1 %v383_v41 }
 0x446   :  { %v689_v48 = vmul.f32 %v5591_v44, %v5575_v63  ;;  %4899 = vmatprep.subr.bf16.mxu1 %v5875_v1  ;;  %v928_v63 = vsel %vm879_vm6, %v160_v62, 0 }
 0x447   :  { %v5593_v57 = vpop.eup %5592 }
 0x448   :  { %4890 = vmatmul.mubr.msk.bf16.vlgmr.msra.gmra.mrb[16].mxu1 %vm603_vm5, %v693_v49  ;;  %v694_v50 = vpack.c.bf16 %v689_v48, %v688_v47  ;;  %v690_v59 = vmul.f32 %v5593_v57, %v6157_v9  ;;  %v161_v9 = vld [vmem:[%s7017_s5 + $0x8] sm:$0xf] }
 0x449   :  { %4901 = vmatprep.mubr.msk.bf16.mxu1 %vm5876_vm0, %v5875_v1  ;;  %v975_v16 = vsel %vm879_vm6, %v161_v9, 0 }
 0x44a   :  { %4896 = vmatmul.mubr.msk.bf16.vlgmr.msra.gmra.mrb[12].mxu0 %vm603_vm5, %v694_v50 }
 0x44b   :  { %4906 = vmatpush3.bf16.msra.mxu0 %v881_v51  ;;  %4907 = vmatprep.mubr.msk.bf16.mxu0 %vm5876_vm0, %v5875_v1 }
 0x44c   :  { %4917 = vmatprep.subr.bf16.mxu0 %v5875_v1 }
 0x46f   :  { %v675_v52 = vpop.xlane.xlu1 %674 }
 0x470   :  { %5594 = vrcp.f32 %v675_v52  ;;  %v6214_v52 = vsub.s32 3, %v6038_v2 }
 0x473   :  { %v5342_v53 = vpop.permute.xlu1 %5341 }
 0x474   :  { %v5344_v54 = vunpack.i.h.bf16 %v5342_v53  ;;  %v5343_v55 = vunpack.i.l.bf16 %v5342_v53  ;;  %v1074_v53 = vrot.slane %v6063_v11, %v6214_v52 }
 0x476   :  { %v385_v56 = vpack.c.bf16 %v5344_v54, %v5343_v55 }
 0x478   :  { %4900 = vmatpush3.bf16.msra.mxu1 %v385_v56 }
 0x479   :  { %4911 = vmatprep.subr.bf16.mxu1 %v5875_v1 }
 0x47a   :  { %v5595_v58 = vpop.eup %5594 }
 0x47b   :  { %v691_v60 = vmul.f32 %v5595_v58, %v5583_v23 }
 0x47d   :  { %v695_v61 = vpack.c.bf16 %v691_v60, %v690_v59 }
 0x47f   :  { %4902 = vmatmul.mubr.msk.bf16.vlgmr.msra.gmra.mrb[20].mxu1 %vm603_vm5, %v695_v61 }
 0x480   :  { %4913 = vmatprep.mubr.msk.bf16.mxu1 %vm5876_vm0, %v5875_v1  ;;  %4912 = vmatpush3.bf16.msra.mxu1 %v928_v63 }
 0x481   :  { %4923 = vmatprep.subr.bf16.mxu1 %v5875_v1 }
 0x4aa   :  { %v733_v8 = vpop.f32.mrb[8].mxu0 }
 0x4ab   :  { %v4885_v10 = vpop.f32.mrb[9].mxu0 }
 0x4ac   :  { %v736_v12 = vpop.f32.mrb[10].mxu0  ;;  %v5544_v10 = vld [vmem:[%s7016_s4 + $0x4] ss:$8 sps:$4 sm:$0xff]  }
 0x4ad   :  { %v872_v13 = vpack.c.bf16 %v736_v12, %v733_v8  ;;  %v4886_v14 = vpop.f32.mrb[11].mxu0  ;;  %v5545_v12 = vld [vmem:[%s7016_s4 + $0x14] ss:$8 sps:$4 sm:$0xff]  }
 0x4ae   :  { %v117_v14 = vld [vmem:[#allocation8 + $0x8] sm:$0xff] }
 0x4af   :  { %4908 = vmatmul.mubr.msk.bf16.vlgmr.msra.gmra.mrb[16].mxu0 %vm389_vm2, %v872_v13  ;;  %v6232_v13 = vld [vmem:[#allocation5 + $0x8] sm:$0xff] }
 0x4b0   :  { %4918 = vmatpush3.bf16.msra.mxu0 %v975_v16  ;;  %4919 = vmatprep.mubr.msk.bf16.mxu0 %vm5876_vm0, %v5875_v1 }
 0x4b1   :  { %4929 = vmatprep.subr.bf16.mxu0 %v5875_v1 }
 0x51b   :  { %v777_v17 = vpop.f32.mrb[16].mxu1 }
 0x51c   :  { %v4891_v19 = vpop.f32.mrb[17].mxu1 }
 0x51d   :  { %v780_v20 = vpop.f32.mrb[18].mxu1  ;;  %v821_v21 = vpop.f32.mrb[12].mxu0  ;;  %v118_v19 = vld [vmem:[#allocation8 + $0x10] sm:$0xff] }
 0x51e   :  { %v873_v22 = vpack.c.bf16 %v780_v20, %v777_v17  ;;  %v4892_v23 = vpop.f32.mrb[19].mxu1  ;;  %v4897_v24 = vpop.f32.mrb[13].mxu0  ;;  %v121_v17 = vadd.f32 %v117_v14, %v6232_v13  ;;  %v119_v20 = vld [vmem:[#allocation8 + $0x18] sm:$0xff] }
 0x51f   :  { %v824_v26 = vpop.f32.mrb[14].mxu0  ;;  %v123_v23 = vadd.f32 %v119_v20, %v6238_v18  ;;  %v6295_v20 = vld [vmem:[#allocation7 + $0x8] sm:$0xff] }
 0x520   :  { %v874_v27 = vpack.c.bf16 %v824_v26, %v821_v21  ;;  %v4898_v28 = vpop.f32.mrb[15].mxu0  ;;  %4914 = vmatmul.mubr.msk.bf16.vlgmr.msra.gmra.mrb[24].mxu1 %vm389_vm2, %v873_v22 }
 0x521   :  { %4924 = vmatpush3.bf16.msra.mxu1 %v1022_v25  ;;  %4925 = vmatprep.mubr.msk.bf16.mxu1 %vm5876_vm0, %v5875_v1 }
 0x522   :  { %4920 = vmatmul.mubr.msk.bf16.vlgmr.msra.gmra.mrb[20].mxu0 %vm389_vm2, %v874_v27  ;;  %4937 = vmatprep.subr.bf16.mxu1 %v5544_v10 }
 0x523   :  { %4933 = vmatprep.mubr.msk.bf16.mxu0 %vm5876_vm0, %v5875_v1 }
 0x552   :  { %v865_v29 = vpop.f32.mrb[20].mxu1 }
 0x553   :  { %v4903_v30 = vpop.f32.mrb[21].mxu1 }
 0x554   :  { %v868_v31 = vpop.f32.mrb[22].mxu1 }
 0x555   :  { %v875_v32 = vpack.c.bf16 %v868_v31, %v865_v29  ;;  %v4904_v33 = vpop.f32.mrb[23].mxu1 }
 0x557   :  { %4926 = vmatmul.mubr.msk.bf16.vlgmr.msra.gmra.mrb[28].mxu1 %vm389_vm2, %v875_v32 }
 0x558   :  { %4938 = vmatpush3.bf16.msra.mxu1 %v5544_v10 }
 0x559   :  { %4939 = vmatprep.subr.bf16.mxu1 %v5545_v12 }
 0x55c   :  { %4940 = vmatpush3.bf16.msra.mxu1 %v5545_v12 }
 0x55d   :  { %4953 = vmatprep.subr.bf16.mxu1 %v5875_v1 }
 0x582   :  { %v917_v34 = vpop.f32.mrb[16].mxu0 }
 0x583   :  { %v4909_v35 = vpop.f32.mrb[17].mxu0 }
 0x584   :  { %v920_v36 = vpop.f32.mrb[18].mxu0 }
 0x585   :  { %v4910_v37 = vpop.f32.mrb[19].mxu0 }
 0x5f3   :  { %v964_v39 = vpop.f32.mrb[24].mxu1 }
 0x5f4   :  { %v1065_v40 = vadd.f32 %v964_v39, %v917_v34  ;;  %v4915_v46 = vpop.f32.mrb[25].mxu1 }
 0x5f5   :  { %v967_v41 = vpop.f32.mrb[26].mxu1  ;;  %v1011_v42 = vpop.f32.mrb[20].mxu0 }
 0x5f6   :  { %v1066_v44 = vadd.f32 %v967_v41, %v920_v36  ;;  %v1067_v45 = vadd.f32 %v1065_v40, %v1011_v42  ;;  %v4916_v47 = vpop.f32.mrb[27].mxu1  ;;  %v4921_v48 = vpop.f32.mrb[21].mxu0  ;;  %v6261_v36 = vsub.s32 5, %v6038_v2 }
 0x5f7   :  { %v1014_v49 = vpop.f32.mrb[22].mxu0 }
 0x5f8   :  { %v1068_v50 = vadd.f32 %v1066_v44, %v1014_v49  ;;  %v4922_v51 = vpop.f32.mrb[23].mxu0  ;;  %v1178_v37 = vrot.slane %v6063_v11, %v6261_v36 }
 0x62a   :  { %v1058_v54 = vpop.f32.mrb[28].mxu1 }
 0x62b   :  { %v1069_v55 = vadd.f32 %v1067_v45, %v1058_v54  ;;  %v4927_v56 = vpop.f32.mrb[29].mxu1 }
 0x62c   :  { %v1061_v57 = vpop.f32.mrb[30].mxu1 }
 0x62d   :  { %v1075_v58 = vadd.f32 %v1074_v53, %v1069_v55  ;;  %v1070_v59 = vadd.f32 %v1068_v50, %v1061_v57  ;;  %v4928_v60 = vpop.f32.mrb[31].mxu1 }
 0x62e   :  { %v6281_v60 = vld [vmem:[%s7018_s6 + $0x8] sm:$0x7f] }
 0x62f   :  { %v1076_v61 = vadd.f32 %v1074_v53, %v1070_v59  ;;  %v1077_v62 = vadd.f32 %v1075_v58, %v6054_v6  ;;  %v6230_v6 = vld [vmem:[#allocation5] sm:$0xff] }
 0x631   :  { %v1079_v63 = vsel %vm198_vm1, %v1077_v62, 0.0  ;;  %v1078_v8 = vadd.f32 %v1076_v61, %v6056_v7  ;;  %v116_v7 = vld [vmem:[#allocation8] sm:$0xff]  ;;  %v1109_v61 = vrot.slane %v6281_v60, %v6075_v15 }
 0x632   :  { %1080 = vadd.xlane.f32.xlu0 %v1079_v63  ;;  %v120_v16 = vadd.f32 %v116_v7, %v6230_v6 }
 0x633   :  { %v1082_v9 = vsel %vm198_vm1, %v1078_v8, 0.0 }
 0x634   :  { %1083 = vadd.xlane.f32.xlu1 %v1082_v9  ;;  %v6242_v22 = vpack.c.bf16 %v121_v17, %v120_v16  ;;  %v1115_v9 = vrot.slane %v6281_v60, %v6046_v4  ;;  %v6291_v17 = vld [vmem:[#allocation7] sm:$0xff] }
 0x636   :  { %4941 = vmatprep.mubr.msk.bf16.mxu1 %vm198_vm1, %v6242_v22 }
 0x645   :  { %1125 = vrot.lane.b32.xlu1 %v6043_v3, %s5877_s0  ;;  %v6236_v3 = vld [vmem:[#allocation5 + $0x10] sm:$0xff] }
 0x646   :  { %v122_v21 = vadd.f32 %v118_v19, %v6236_v3 }
 0x648   :  { %v6247_v24 = vpack.c.bf16 %v123_v23, %v122_v21 }
 0x649   :  { %1246 = vrot.lane.b32.xlu1 %v5544_v10, %s5882_s15 }
 0x64a   :  { %4942 = vmatmul.mubr.msk.bf16.vlgmr.msra.gmra.mrb[32].mxu1 %vm198_vm1, %v6247_v24 }
 0x64b   :  { %4957 = vmatprep.mubr.msk.bf16.mxu1 %vm5876_vm0, %v5875_v1 }
 0x64d   :  { %1248 = vrot.lane.b32.xlu1 %v5545_v12, %s5882_s15 }
 0x6bf   :  { %v1081_v25 = vpop.xlane.xlu0 %1080 }
 0x6c0   :  { %v1086_v26 = vmul.f32 0.03125, %v1081_v25 }
 0x6c1   :  { %v1084_v27 = vpop.xlane.xlu1 %1083 }
 0x6c2   :  { %v1088_v28 = vsub.f32 %v1077_v62, %v1086_v26  ;;  %v1087_v29 = vmul.f32 0.03125, %v1084_v27  ;;  %v6302_v26 = vpack.c.bf16 %v6232_v13, %v6230_v6 }
 0x6c4   :  { %v1089_v30 = vsub.f32 %v1078_v8, %v1087_v29  ;;  %v1090_v31 = vmul.f32 %v1088_v28, %v1088_v28 }
 0x6c5   :  { %v1126_v35 = vpop.permute.xlu1 %1125 }
 0x6c6   :  { %v1092_v32 = vsel %vm198_vm1, %v1090_v31, 0.0  ;;  %v1091_v33 = vmul.f32 %v1089_v30, %v1089_v30  ;;  %4930 = vmatpush3.bf16.msra.mxu0 %v1126_v35  ;;  %v6308_v31 = vpack.c.bf16 %v6238_v18, %v6236_v3  ;;  %v6320_v35 = vsub.s32 4, %v6038_v2 }
 0x6c7   :  { %1093 = vadd.xlane.f32.xlu0 %v1092_v32  ;;  %4931 = vmatprep.subr.bf16.mxu0 %v5875_v1 }
 0x6c8   :  { %v1095_v34 = vsel %vm198_vm1, %v1091_v33, 0.0 }
 0x6c9   :  { %v1247_v25 = vpop.permute.xlu1 %1246 }
 0x6cb   :  { %1096 = vadd.xlane.f32.xlu0 %v1095_v34 }
 0x6e1   :  { %1127 = vrot.lane.b32.xlu0 %v6051_v5, %s5877_s0 }
 0x71d   :  { %v4943_v39 = vpop.f32.mrb[32].mxu1 }
 0x71e   :  { %v1236_v40 = vadd.f32 %v4943_v39, %v1178_v37  ;;  %v1227_v46 = vpop.f32.mrb[33].mxu1 }
 0x71f   :  { %v1228_v41 = vadd.f32 %v1227_v46, %v1178_v37  ;;  %v4944_v42 = vpop.f32.mrb[34].mxu1 }
 0x720   :  { %v1239_v44 = vadd.f32 %v4944_v42, %v1178_v37  ;;  %v1230_v45 = vpop.f32.mrb[35].mxu1 }
 0x721   :  { %v1231_v47 = vadd.f32 %v1230_v45, %v1178_v37 }
 0x722   :  { %v6265_v48 = vpack.i.bf16 %v1239_v44, %v1236_v40  ;;  %v1372_v11 = vpack.c.bf16 %v1239_v44, %v1236_v40 }
 0x723   :  { %v5345_v5 = vpack.i.bf16 %v1231_v47, %v1228_v41  ;;  %v1371_v49 = vpack.c.bf16 %v1231_v47, %v1228_v41  ;;  %v6325_v41 = vld [vmem:[%s7018_s6] sm:$0xff] }
 0x724   :  { %5351 = vrot.lane.b32.xlu1 %v6265_v48, %s5879_s12  ;;  %v1434_v51 = vsel %vm389_vm2, %v1372_v11, 0  ;;  %v1124_v42 = vrot.slane %v6325_v41, %v6320_v35 }
 0x725   :  { %5346 = vrot.lane.b32.xlu0 %v5345_v5, %s5879_s12  ;;  %v1431_v50 = vsel %vm389_vm2, %v1371_v49, 0 }
 0x726   :  { %4954 = vmatpush3.bf16.xpose.msra.mxu1 %v1431_v50 }
 0x727   :  { %4955 = vmatprep.subr.bf16.mxu1 %v5875_v1 }
 0x728   :  { %5361 = vrot.lane.b32.xlu1 %v5345_v5, %s5880_s13 }
 0x729   :  { %5356 = vrot.lane.b32.xlu0 %v5345_v5, %s5878_s25 }
 0x72c   :  { %5371 = vrot.lane.b32.xlu1 %v6265_v48, %s5878_s25 }
 0x72e   :  { %4956 = vmatpush3.bf16.xpose.msra.mxu1 %v1434_v51 }
 0x72f   :  { %4969 = vmatprep.subr.bf16.mxu1 %v5875_v1 }
 0x754   :  { %v1094_v53 = vpop.xlane.xlu0 %1093 }
 0x755   :  { %v1098_v54 = vmul.f32 0.03125, %v1094_v53 }
 0x757   :  { %v1100_v55 = vadd.f32 1e-05, %v1098_v54 }
 0x758   :  { %v1097_v56 = vpop.xlane.xlu0 %1096 }
 0x759   :  { %5596 = vrsqrt.f32 %v1100_v55  ;;  %v1099_v57 = vmul.f32 0.03125, %v1097_v56 }
 0x75b   :  { %v1101_v58 = vadd.f32 1e-05, %v1099_v57 }
 0x75c   :  { %v1128_v59 = vpop.permute.xlu0 %1127 }
 0x75d   :  { %5598 = vrsqrt.f32 %v1101_v58  ;;  %4932 = vmatpush3.bf16.msra.mxu0 %v1128_v59 }
 0x75e   :  { %4945 = vmatprep.subr.bf16.mxu0 %v1247_v25 }
 0x763   :  { %v5597_v62 = vpop.eup %5596 }
 0x764   :  { %v1104_v63 = vmul.f32 %v5597_v62, %v1088_v28  ;;  %v1249_v28 = vpop.permute.xlu1 %1248 }
 0x766   :  { %v1110_v8 = vmul.f32 %v1109_v61, %v1104_v63 }
 0x767   :  { %v5599_v10 = vpop.eup %5598 }
 0x768   :  { %v1105_v12 = vmul.f32 %v5599_v10, %v1089_v30  ;;  %v6287_v14 = vadd.f32 %v1115_v9, %v1110_v8 }
 0x76a   :  { %v1111_v7 = vmul.f32 %v1109_v61, %v1105_v12  ;;  %v1118_v19 = vadd.f32 %v6291_v17, %v6287_v14 }
 0x76c   :  { %v6289_v16 = vadd.f32 %v1115_v9, %v1111_v7  ;;  %v6342_v9 = vsub.s32 6, %v6038_v2 }
 0x76e   :  { %v1119_v21 = vadd.f32 %v6295_v20, %v6289_v16  ;;  %v1245_v10 = vrot.slane %v6325_v41, %v6342_v9 }
 0x770   :  { %v1120_v23 = vpack.c.bf16 %v1119_v21, %v1118_v19 }
 0x772   :  { %4934 = vmatmul.mubr.msk.bf16.vlgmr.msra.gmra.mrb[24].mxu0 %vm198_vm1, %v1120_v23 }
 0x773   :  { %4946 = vmatpush3.bf16.msra.mxu0 %v1247_v25  ;;  %4949 = vmatprep.mubr.msk.bf16.mxu0 %vm198_vm1, %v6302_v26 }
 0x774   :  { %4947 = vmatprep.subr.bf16.mxu0 %v1249_v28 }
 0x777   :  { %4948 = vmatpush3.bf16.msra.mxu0 %v1249_v28 }
 0x778   :  { %4961 = vmatprep.subr.bf16.mxu0 %v5875_v1 }
 0x77a   :  { %4950 = vmatmul.mubr.msk.bf16.vlgmr.msra.gmra.mrb[28].mxu0 %vm198_vm1, %v6308_v31 }
 0x77b   :  { %4965 = vmatprep.mubr.msk.bf16.mxu0 %vm5876_vm0, %v5875_v1 }
 0x796   :  { %v5352_v6 = vpop.permute.xlu1 %5351 }
 0x797   :  { %v5347_v27 = vpop.permute.xlu0 %5346  ;;  %v5354_v13 = vunpack.i.h.bf16 %v5352_v6  ;;  %v5353_v33 = vunpack.i.l.bf16 %v5352_v6 }
 0x798   :  { %v5349_v29 = vunpack.i.h.bf16 %v5347_v27  ;;  %v5348_v30 = vunpack.i.l.bf16 %v5347_v27 }
 0x799   :  { %v1374_v3 = vpack.c.bf16 %v5354_v13, %v5353_v33 }
 0x79a   :  { %v1373_v32 = vpack.c.bf16 %v5349_v29, %v5348_v30  ;;  %v5362_v39 = vpop.permute.xlu1 %5361 }
 0x79b   :  { %v1484_v18 = vsel %vm389_vm2, %v1374_v3, 0  ;;  %v5357_v37 = vpop.permute.xlu0 %5356  ;;  %v5364_v12 = vunpack.i.h.bf16 %v5362_v39  ;;  %v5363_v7 = vunpack.i.l.bf16 %v5362_v39 }
 0x79c   :  { %v1481_v34 = vsel %vm389_vm2, %v1373_v32, 0  ;;  %v5359_v40 = vunpack.i.h.bf16 %v5357_v37  ;;  %v5358_v46 = vunpack.i.l.bf16 %v5357_v37 }
 0x79d   :  { %4962 = vmatpush3.bf16.xpose.msra.mxu0 %v1481_v34  ;;  %v1377_v25 = vpack.c.bf16 %v5364_v12, %v5363_v7 }
 0x79e   :  { %4963 = vmatprep.subr.bf16.mxu0 %v5875_v1  ;;  %v1375_v5 = vpack.c.bf16 %v5359_v40, %v5358_v46  ;;  %v5372_v51 = vpop.permute.xlu1 %5371 }
 0x79f   :  { %v5374_v56 = vunpack.i.h.bf16 %v5372_v51  ;;  %v5373_v57 = vunpack.i.l.bf16 %v5372_v51  ;;  %v1581_v39 = vsel %vm389_vm2, %v1377_v25, 0 }
 0x7a0   :  { %v1531_v55 = vsel %vm389_vm2, %v1375_v5, 0 }
 0x7a1   :  { %v1376_v58 = vpack.c.bf16 %v5374_v56, %v5373_v57 }
 0x7a3   :  { %v1534_v59 = vsel %vm389_vm2, %v1376_v58, 0 }
 0x7a5   :  { %4964 = vmatpush3.bf16.xpose.msra.mxu0 %v1484_v18 }
 0x7a6   :  { %4977 = vmatprep.subr.bf16.mxu0 %v5875_v1 }
 0x845   :  { %v1168_v44 = vpop.f32.mrb[24].mxu0 }
 0x846   :  { %v4935_v45 = vpop.f32.mrb[25].mxu0  ;;  %v1169_v49 = vadd.f32 %v1168_v44, %v1124_v42 }
 0x847   :  { %v1171_v47 = vpop.f32.mrb[26].mxu0 }
 0x848   :  { %v1172_v50 = vadd.f32 %v1171_v47, %v1124_v42  ;;  %v4936_v11 = vpop.f32.mrb[27].mxu0 }
 0x84a   :  { %v1327_v53 = vpack.c.bf16 %v1172_v50, %v1169_v49  ;;  %v5380_v54 = vpack.i.bf16 %v1172_v50, %v1169_v49 }
 0x84c   :  { %5381 = vrot.lane.b32.xlu1 %v5380_v54, %s5878_s25  ;;  %5366 = vrot.lane.b32.xlu0 %v5380_v54, %s5879_s12 }
 0x84d   :  { %4958 = vmatmul.mubr.msk.bf16.vlgmr.msra.gmra.mrb[36].mxu1 %vm389_vm2, %v1327_v53  ;;  %v4951_v61 = vpop.f32.mrb[28].mxu0 }
 0x84e   :  { %4970 = vmatpush3.bf16.xpose.msra.mxu1 %v1531_v55  ;;  %4973 = vmatprep.mubr.msk.bf16.mxu1 %vm5876_vm0, %v5875_v1  ;;  %v1292_v62 = vpop.f32.mrb[29].mxu0  ;;  %v6350_v32 = vadd.f32 %v4951_v61, %v1245_v10 }
 0x84f   :  { %4971 = vmatprep.subr.bf16.mxu1 %v5875_v1  ;;  %v4952_v63 = vpop.f32.mrb[30].mxu0 }
 0x850   :  { %5376 = vrot.lane.b32.xlu0 %v6265_v48, %s5880_s13  ;;  %v1295_v8 = vpop.f32.mrb[31].mxu0  ;;  %v6346_v48 = vadd.f32 %v1292_v62, %v1245_v10  ;;  %v6352_v33 = vadd.f32 %v4952_v63, %v1245_v10 }
 0x851   :  { %v6348_v19 = vadd.f32 %v1295_v8, %v1245_v10 }
 0x852   :  { %v1420_v40 = vpack.c.bf16 %v6352_v33, %v6350_v32 }
 0x853   :  { %v1419_v34 = vpack.c.bf16 %v6348_v19, %v6346_v48 }
 0x854   :  { %5386 = vrot.lane.b32.xlu0 %v5380_v54, %s5880_s13 }
 0x856   :  { %4972 = vmatpush3.bf16.xpose.msra.mxu1 %v1534_v59 }
 0x857   :  { %4985 = vmatprep.subr.bf16.mxu1 %v5875_v1 }
 0x8be   :  { %v5382_v21 = vpop.permute.xlu1 %5381  ;;  %v5367_v23 = vpop.permute.xlu0 %5366 }
 0x8bf   :  { %v5384_v27 = vunpack.i.h.bf16 %v5382_v21  ;;  %v5383_v28 = vunpack.i.l.bf16 %v5382_v21  ;;  %v5369_v29 = vunpack.i.h.bf16 %v5367_v23  ;;  %v5368_v30 = vunpack.i.l.bf16 %v5367_v23 }
 0x8c1   :  { %v1329_v6 = vpack.c.bf16 %v5384_v27, %v5383_v28  ;;  %v1328_v13 = vpack.c.bf16 %v5369_v29, %v5368_v30 }
 0x8c2   :  { %v5377_v3 = vpop.permute.xlu0 %5376 }
 0x8c3   :  { %v5379_v18 = vunpack.i.h.bf16 %v5377_v3  ;;  %v5378_v37 = vunpack.i.l.bf16 %v5377_v3  ;;  %4966 = vmatmul.mubr.msk.bf16.vlgmr.msra.gmra.mrb[32].mxu0 %vm389_vm2, %v1328_v13  ;;  %4974 = vmatmul.mubr.msk.bf16.vlgmr.msra.gmra.mrb[40].mxu1 %vm389_vm2, %v1329_v6 }
 0x8c4   :  { %4978 = vmatpush3.bf16.xpose.msra.mxu0 %v1581_v39  ;;  %4981 = vmatprep.mubr.msk.bf16.mxu0 %vm5876_vm0, %v5875_v1 }
 0x8c5   :  { %4979 = vmatprep.subr.bf16.mxu0 %v5875_v1  ;;  %4986 = vmatpush3.bf16.msra.mxu1 %v1419_v34  ;;  %v1378_v46 = vpack.c.bf16 %v5379_v18, %v5378_v37 }
 0x8c6   :  { %4987 = vmatprep.subr.bf16.mxu1 %v5875_v1  ;;  %4989 = vmatprep.mubr.msk.bf16.mxu1 %vm5876_vm0, %v5875_v1  ;;  %v5387_v42 = vpop.permute.xlu0 %5386 }
 0x8c7   :  { %v1584_v44 = vsel %vm389_vm2, %v1378_v46, 0  ;;  %v5389_v45 = vunpack.i.h.bf16 %v5387_v42  ;;  %v5388_v47 = vunpack.i.l.bf16 %v5387_v42 }
 0x8c9   :  { %4988 = vmatpush3.bf16.msra.mxu1 %v1420_v40  ;;  %v1330_v5 = vpack.c.bf16 %v5389_v45, %v5388_v47 }
 0x8ca   :  { %5001 = vmatprep.subr.bf16.mxu1 %v5875_v1 }
 0x8cc   :  { %4980 = vmatpush3.bf16.xpose.msra.mxu0 %v1584_v44 }
 0x8cd   :  { %4993 = vmatprep.subr.bf16.mxu0 %v5875_v1 }
 0x8d3   :  { %4982 = vmatmul.mubr.msk.bf16.vlgmr.msra.gmra.mrb[36].mxu0 %vm389_vm2, %v1330_v5 }
 0x8d4   :  { %4997 = vmatprep.mubr.msk.bf16.mxu0 %vm5876_vm0, %v5875_v1 }
 0x920   :  { %v1470_v49 = vpop.f32.mrb[36].mxu1 }
 0x921   :  { %v1627_v50 = vmul.f32 0.35355338, %v1470_v49  ;;  %v4959_v11 = vpop.f32.mrb[37].mxu1 }
 0x922   :  { %v1473_v51 = vpop.f32.mrb[38].mxu1  ;;  %v5390_v11 = vpack.i.bf16 %v6348_v19, %v6346_v48 }
 0x923   :  { %v1628_v53 = vmul.f32 0.35355338, %v1473_v51  ;;  %v4960_v54 = vpop.f32.mrb[39].mxu1  ;;  %v1635_v55 = vadd.f32 %v1627_v50, %v6128_v38  ;;  %v6391_v50 = vpack.i.bf16 %v6352_v33, %v6350_v32 }
 0x925   :  { %v1643_v56 = vsel %vm198_vm1, %v1635_v55, -inf  ;;  %v1636_v57 = vadd.f32 %v1628_v53, %v6130_v43 }
 0x926   :  { %1644 = vmax.xlane.f32.xlu1 %v1643_v56 }
 0x927   :  { %v1646_v58 = vsel %vm198_vm1, %v1636_v57, -inf }
 0x928   :  { %1647 = vmax.xlane.f32.xlu0 %v1646_v58 }
 0x996   :  { %v1520_v59 = vpop.f32.mrb[32].mxu0  ;;  %v1570_v61 = vpop.f32.mrb[40].mxu1 }
 0x997   :  { %v1629_v62 = vmul.f32 0.35355338, %v1520_v59  ;;  %v1631_v63 = vmul.f32 0.35355338, %v1570_v61  ;;  %v4967_v8 = vpop.f32.mrb[33].mxu0  ;;  %v4975_v10 = vpop.f32.mrb[41].mxu1 }
 0x998   :  { %v1523_v12 = vpop.f32.mrb[34].mxu0  ;;  %v1573_v7 = vpop.f32.mrb[42].mxu1 }
 0x999   :  { %v1630_v21 = vmul.f32 0.35355338, %v1523_v12  ;;  %v1632_v23 = vmul.f32 0.35355338, %v1573_v7  ;;  %v4968_v25 = vpop.f32.mrb[35].mxu0  ;;  %v4976_v27 = vpop.f32.mrb[43].mxu1  ;;  %v1637_v28 = vadd.f32 %v1629_v62, %v6128_v38  ;;  %v1639_v6 = vadd.f32 %v1631_v63, %v6128_v38 }
 0x99b   :  { %v1649_v29 = vsel %vm198_vm1, %v1637_v28, -inf  ;;  %v1638_v30 = vadd.f32 %v1630_v21, %v6130_v43  ;;  %v1640_v34 = vadd.f32 %v1632_v23, %v6130_v43  ;;  %v1655_v3 = vsel %vm198_vm1, %v1639_v6, -inf }
 0x99c   :  { %1650 = vmax.xlane.f32.xlu0 %v1649_v29 }
 0x99d   :  { %v1652_v13 = vsel %vm198_vm1, %v1638_v30, -inf  ;;  %v1658_v18 = vsel %vm198_vm1, %v1640_v34, -inf }
 0x99e   :  { %1653 = vmax.xlane.f32.xlu1 %v1652_v13 }
 0x9a0   :  { %1656 = vmax.xlane.f32.xlu0 %v1655_v3 }
 0x9a2   :  { %1659 = vmax.xlane.f32.xlu1 %v1658_v18 }
 0x9a6   :  { %v1620_v37 = vpop.f32.mrb[36].mxu0 }
 0x9a7   :  { %v1633_v39 = vmul.f32 0.35355338, %v1620_v37  ;;  %v4983_v40 = vpop.f32.mrb[37].mxu0 }
 0x9a8   :  { %v1623_v46 = vpop.f32.mrb[38].mxu0 }
 0x9a9   :  { %v1634_v42 = vmul.f32 0.35355338, %v1623_v46  ;;  %v4984_v44 = vpop.f32.mrb[39].mxu0  ;;  %v1641_v45 = vadd.f32 %v1633_v39, %v6128_v38 }
 0x9ab   :  { %v1661_v47 = vsel %vm198_vm1, %v1641_v45, -inf  ;;  %v1642_v5 = vadd.f32 %v1634_v42, %v6130_v43 }
 0x9ac   :  { %1662 = vmax.xlane.f32.xlu0 %v1661_v47 }
 0x9ad   :  { %v1664_v49 = vsel %vm198_vm1, %v1642_v5, -inf }
 0x9ae   :  { %1665 = vmax.xlane.f32.xlu1 %v1664_v49 }
 0x9b3   :  { %v1645_v51 = vpop.xlane.xlu1 %1644 }
 0x9b4   :  { %v1667_v54 = vsub.f32 %v1635_v55, %v1645_v51 }
 0x9b5   :  { %v1648_v53 = vpop.xlane.xlu0 %1647 }
 0x9b6   :  { %v1668_v56 = vsub.f32 %v1636_v57, %v1648_v53  ;;  %v1675_v58 = vmul.f32 1.442695, %v1667_v54 }
 0x9b8   :  { %v1677_v59 = vmul.f32 1.442695, %v1668_v56  ;;  %5600 = vpow2.f32 %v1675_v58 }
 0x9ba   :  { %5602 = vpow2.f32 %v1677_v59 }
 0x9bf   :  { %5396 = vrot.lane.b32.xlu1 %v6391_v50, %s5879_s12 }
 0x9c2   :  { %5391 = vrot.lane.b32.xlu0 %v5390_v11, %s5879_s12  ;;  %v6400_v32 = vpop.eup %5600 }
 0x9c3   :  { %5401 = vrot.lane.b32.xlu1 %v5390_v11, %s5878_s25  ;;  %v1691_v48 = vsel %vm198_vm1, %v6400_v32, 0.0 }
 0x9c4   :  { %v6402_v33 = vpop.eup %5602 }
 0x9c5   :  { %v1694_v19 = vsel %vm198_vm1, %v6402_v33, 0.0 }
 0x9c6   :  { %5406 = vrot.lane.b32.xlu0 %v5390_v11, %s5880_s13 }
 0x9e5   :  { %1692 = vadd.xlane.f32.xlu0 %v1691_v48 }
 0x9e7   :  { %1695 = vadd.xlane.f32.xlu1 %v1694_v19 }
 0xa29   :  { %v1651_v61 = vpop.xlane.xlu0 %1650 }
 0xa2a   :  { %v1669_v62 = vsub.f32 %v1637_v28, %v1651_v61 }
 0xa2b   :  { %v1654_v55 = vpop.xlane.xlu1 %1653 }
 0xa2c   :  { %v1679_v57 = vmul.f32 1.442695, %v1669_v62  ;;  %v1670_v63 = vsub.f32 %v1638_v30, %v1654_v55 }
 0xa2d   :  { %v1657_v8 = vpop.xlane.xlu0 %1656 }
 0xa2e   :  { %5604 = vpow2.f32 %v1679_v57  ;;  %v1681_v10 = vmul.f32 1.442695, %v1670_v63  ;;  %v1671_v12 = vsub.f32 %v1639_v6, %v1657_v8 }
 0xa2f   :  { %v1660_v7 = vpop.xlane.xlu1 %1659 }
 0xa30   :  { %5606 = vpow2.f32 %v1681_v10  ;;  %v1683_v21 = vmul.f32 1.442695, %v1671_v12  ;;  %v1672_v23 = vsub.f32 %v1640_v34, %v1660_v7 }
 0xa32   :  { %5608 = vpow2.f32 %v1683_v21  ;;  %v1685_v25 = vmul.f32 1.442695, %v1672_v23 }
 0xa34   :  { %5610 = vpow2.f32 %v1685_v25 }
 0xa38   :  { %v6408_v27 = vpop.eup %5604 }
 0xa39   :  { %v1663_v29 = vpop.xlane.xlu0 %1662  ;;  %v1697_v28 = vsel %vm198_vm1, %v6408_v27, 0.0 }
 0xa3a   :  { %v6412_v13 = vpop.eup %5606  ;;  %v1673_v30 = vsub.f32 %v1641_v45, %v1663_v29  ;;  %1698 = vadd.xlane.f32.xlu0 %v1697_v28 }
 0xa3b   :  { %v1666_v3 = vpop.xlane.xlu1 %1665  ;;  %v1700_v6 = vsel %vm198_vm1, %v6412_v13, 0.0 }
 0xa3c   :  { %v6416_v18 = vpop.eup %5608  ;;  %v1687_v34 = vmul.f32 1.442695, %v1673_v30  ;;  %v1674_v37 = vsub.f32 %v1642_v5, %v1666_v3  ;;  %1701 = vadd.xlane.f32.xlu1 %v1700_v6 }
 0xa3d   :  { %v5392_v39 = vpop.permute.xlu0 %5391  ;;  %v1703_v40 = vsel %vm198_vm1, %v6416_v18, 0.0 }
 0xa3e   :  { %v6420_v46 = vpop.eup %5610  ;;  %5612 = vpow2.f32 %v1687_v34  ;;  %v1689_v42 = vmul.f32 1.442695, %v1674_v37  ;;  %v5394_v44 = vunpack.i.h.bf16 %v5392_v39  ;;  %v5393_v45 = vunpack.i.l.bf16 %v5392_v39  ;;  %1704 = vadd.xlane.f32.xlu0 %v1703_v40 }
 0xa3f   :  { %v5397_v47 = vpop.permute.xlu1 %5396  ;;  %v1706_v49 = vsel %vm198_vm1, %v6420_v46, 0.0 }
 0xa40   :  { %5614 = vpow2.f32 %v1689_v42  ;;  %v1421_v11 = vpack.c.bf16 %v5394_v44, %v5393_v45  ;;  %v5399_v51 = vunpack.i.h.bf16 %v5397_v47  ;;  %v5398_v5 = vunpack.i.l.bf16 %v5397_v47  ;;  %1707 = vadd.xlane.f32.xlu1 %v1706_v49 }
 0xa41   :  { %v5407_v48 = vpop.permute.xlu0 %5406 }
 0xa42   :  { %4994 = vmatpush3.bf16.msra.mxu0 %v1421_v11  ;;  %v1422_v53 = vpack.c.bf16 %v5399_v51, %v5398_v5  ;;  %v5408_v30 = vunpack.i.l.bf16 %v5407_v48 }
 0xa43   :  { %4995 = vmatprep.subr.bf16.mxu0 %v5875_v1  ;;  %v5402_v19 = vpop.permute.xlu1 %5401 }
 0xa44   :  { %v5404_v63 = vunpack.i.h.bf16 %v5402_v19  ;;  %v5403_v8 = vunpack.i.l.bf16 %v5402_v19 }
 0xa46   :  { %4996 = vmatpush3.bf16.msra.mxu0 %v1422_v53  ;;  %v1423_v21 = vpack.c.bf16 %v5404_v63, %v5403_v8  ;;  %v4563_v63 = vld [vmem:[%s7017_s5 + $0x18] sm:$0xf] }
 0xa47   :  { %5009 = vmatprep.subr.bf16.mxu0 %v5875_v1 }
 0xa48   :  { %v6426_v54 = vpop.eup %5612 }
 0xa49   :  { %v1709_v56 = vsel %vm198_vm1, %v6426_v54, 0.0 }
 0xa4a   :  { %v6430_v58 = vpop.eup %5614  ;;  %1710 = vadd.xlane.f32.xlu0 %v1709_v56  ;;  %v4561_v56 = vld [vmem:[%s7017_s5 + $0x10] sm:$0xf] }
 0xa4b   :  { %v1712_v59 = vsel %vm198_vm1, %v6430_v58, 0.0 }
 0xa4c   :  { %1713 = vadd.xlane.f32.xlu1 %v1712_v59 }
 0xa5d   :  { %5411 = vrot.lane.b32.xlu1 %v6391_v50, %s5878_s25 }
 0xa60   :  { %5416 = vrot.lane.b32.xlu0 %v6391_v50, %s5880_s13 }
 0xa72   :  { %v1693_v61 = vpop.xlane.xlu0 %1692 }
 0xa73   :  { %5616 = vrcp.f32 %v1693_v61  ;;  %v1919_v61 = vsel %vm879_vm6, %v4561_v56, 0 }
 0xa74   :  { %v1696_v62 = vpop.xlane.xlu1 %1695 }
 0xa75   :  { %5618 = vrcp.f32 %v1696_v62 }
 0xa7d   :  { %v5617_v55 = vpop.eup %5616 }
 0xa7e   :  { %v1723_v10 = vmul.f32 %v5617_v55, %v6400_v32 }
 0xa7f   :  { %v5619_v57 = vpop.eup %5618 }
 0xa80   :  { %v1724_v12 = vmul.f32 %v5619_v57, %v6402_v33  ;;  %v5409_v33 = vunpack.i.h.bf16 %v5407_v48 }
 0xa82   :  { %v1731_v7 = vpack.c.bf16 %v1724_v12, %v1723_v10  ;;  %v1425_v39 = vpack.c.bf16 %v5409_v33, %v5408_v30 }
 0xa84   :  { %4990 = vmatmul.mubr.msk.bf16.vlgmr.msra.gmra.mrb[44].mxu1 %vm198_vm1, %v1731_v7 }
 0xa85   :  { %5002 = vmatpush3.bf16.msra.mxu1 %v1423_v21  ;;  %5005 = vmatprep.mubr.msk.bf16.mxu1 %vm5876_vm0, %v5875_v1  ;;  %v2013_v21 = vsel %vm879_vm6, %v4563_v63, 0 }
 0xa86   :  { %5003 = vmatprep.subr.bf16.mxu1 %v5875_v1 }
 0xac7   :  { %v1699_v50 = vpop.xlane.xlu0 %1698 }
 0xac8   :  { %5620 = vrcp.f32 %v1699_v50 }
 0xac9   :  { %v1702_v23 = vpop.xlane.xlu1 %1701 }
 0xaca   :  { %5622 = vrcp.f32 %v1702_v23  ;;  %v4564_v23 = vld [vmem:[%s7017_s5 + $0x1c] sm:$0xf] }
 0xacb   :  { %v1705_v29 = vpop.xlane.xlu0 %1704  ;;  %v2060_v33 = vsel %vm879_vm6, %v4564_v23, 0 }
 0xacd   :  { %v1708_v25 = vpop.xlane.xlu1 %1707 }
 0xace   :  { %5624 = vrcp.f32 %v1708_v25 }
 0xacf   :  { %5626 = vrcp.f32 %v1705_v29 }
 0xad2   :  { %v5621_v28 = vpop.eup %5620 }
 0xad3   :  { %v1725_v3 = vmul.f32 %v5621_v28, %v6408_v27 }
 0xad4   :  { %v5623_v32 = vpop.eup %5622 }
 0xad5   :  { %v1726_v6 = vmul.f32 %v5623_v32, %v6412_v13 }
 0xad7   :  { %v1711_v34 = vpop.xlane.xlu0 %1710  ;;  %v1732_v37 = vpack.c.bf16 %v1726_v6, %v1725_v3 }
 0xad8   :  { %5628 = vrcp.f32 %v1711_v34  ;;  %v5625_v44 = vpop.eup %5624 }
 0xad9   :  { %v1714_v40 = vpop.xlane.xlu1 %1713  ;;  %4998 = vmatmul.mubr.msk.bf16.vlgmr.msra.gmra.mrb[40].mxu0 %vm198_vm1, %v1732_v37  ;;  %v5627_v13 = vpop.eup %5626  ;;  %v1728_v5 = vmul.f32 %v5625_v44, %v6420_v46 }
 0xada   :  { %5630 = vrcp.f32 %v1714_v40  ;;  %5010 = vmatpush3.bf16.msra.mxu0 %v1425_v39  ;;  %5013 = vmatprep.mubr.msk.bf16.mxu0 %vm5876_vm0, %v5875_v1  ;;  %v1727_v59 = vmul.f32 %v5627_v13, %v6416_v18 }
 0xadb   :  { %v5417_v42 = vpop.permute.xlu0 %5416  ;;  %5011 = vmatprep.subr.bf16.mxu0 %v5875_v1 }
 0xadc   :  { %v5419_v45 = vunpack.i.h.bf16 %v5417_v42  ;;  %v5418_v27 = vunpack.i.l.bf16 %v5417_v42  ;;  %v1733_v19 = vpack.c.bf16 %v1728_v5, %v1727_v59 }
 0xadd   :  { %v5412_v47 = vpop.permute.xlu1 %5411 }
 0xade   :  { %v1426_v49 = vpack.c.bf16 %v5419_v45, %v5418_v27  ;;  %v5414_v11 = vunpack.i.h.bf16 %v5412_v47  ;;  %v5413_v51 = vunpack.i.l.bf16 %v5412_v47 }
 0xae0   :  { %v1424_v53 = vpack.c.bf16 %v5414_v11, %v5413_v51  ;;  %5012 = vmatpush3.bf16.msra.mxu0 %v1426_v49 }
 0xae1   :  { %5023 = vmatprep.subr.bf16.mxu0 %v5875_v1 }
 0xae2   :  { %v5629_v48 = vpop.eup %5628  ;;  %5004 = vmatpush3.bf16.msra.mxu1 %v1424_v53 }
 0xae3   :  { %5017 = vmatprep.subr.bf16.mxu1 %v5875_v1  ;;  %v1729_v46 = vmul.f32 %v5629_v48, %v6426_v54  ;;  %v4562_v54 = vld [vmem:[%s7017_s5 + $0x14] sm:$0xf]  ;;  %v2111_v48 = vsub.s32 7, %v6038_v2 }
 0xae4   :  { %v5631_v62 = vpop.eup %5630 }
 0xae5   :  { %v1730_v55 = vmul.f32 %v5631_v62, %v6430_v58  ;;  %5006 = vmatmul.mubr.msk.bf16.vlgmr.msra.gmra.mrb[48].mxu1 %vm198_vm1, %v1733_v19  ;;  %v1966_v58 = vsel %vm879_vm6, %v4562_v54, 0  ;;  %v2112_v54 = vrot.slane %v6325_v41, %v2111_v48 }
 0xae6   :  { %5018 = vmatpush3.bf16.msra.mxu1 %v1919_v61  ;;  %5019 = vmatprep.mubr.msk.bf16.mxu1 %vm5876_vm0, %v5875_v1 }
 0xae7   :  { %v1734_v18 = vpack.c.bf16 %v1730_v55, %v1729_v46  ;;  %5029 = vmatprep.subr.bf16.mxu1 %v5875_v1 }
 0xae9   :  { %5014 = vmatmul.mubr.msk.bf16.vlgmr.msra.gmra.mrb[44].mxu0 %vm198_vm1, %v1734_v18 }
 0xaea   :  { %5025 = vmatprep.mubr.msk.bf16.mxu0 %vm5876_vm0, %v5875_v1  ;;  %5024 = vmatpush3.bf16.msra.mxu0 %v1966_v58 }
 0xaeb   :  { %5035 = vmatprep.subr.bf16.mxu0 %v5875_v1 }
 0xb57   :  { %v1772_v57 = vpop.f32.mrb[44].mxu1 }
 0xb58   :  { %v4991_v8 = vpop.f32.mrb[45].mxu1 }
 0xb59   :  { %v1775_v10 = vpop.f32.mrb[46].mxu1 }
 0xb5a   :  { %v1911_v12 = vpack.c.bf16 %v1775_v10, %v1772_v57  ;;  %v4992_v7 = vpop.f32.mrb[47].mxu1 }
 0xb5c   :  { %5020 = vmatmul.mubr.msk.bf16.vlgmr.msra.gmra.mrb[52].mxu1 %vm389_vm2, %v1911_v12 }
 0xb5d   :  { %5030 = vmatpush3.bf16.msra.mxu1 %v2013_v21  ;;  %5031 = vmatprep.mubr.msk.bf16.mxu1 %vm5876_vm0, %v5875_v1 }
 0xb5e   :  { %5041 = vmatprep.subr.bf16.mxu1 %v5875_v1 }
 0xbac   :  { %v1816_v50 = vpop.f32.mrb[40].mxu0 }
 0xbad   :  { %v4999_v25 = vpop.f32.mrb[41].mxu0 }
 0xbae   :  { %v1819_v29 = vpop.f32.mrb[42].mxu0 }
 0xbaf   :  { %v1912_v28 = vpack.c.bf16 %v1819_v29, %v1816_v50  ;;  %v5000_v32 = vpop.f32.mrb[43].mxu0 }
 0xbb1   :  { %5026 = vmatmul.mubr.msk.bf16.vlgmr.msra.gmra.mrb[48].mxu0 %vm389_vm2, %v1912_v28 }
 0xbb2   :  { %5036 = vmatpush3.bf16.msra.mxu0 %v2060_v33  ;;  %5037 = vmatprep.mubr.msk.bf16.mxu0 %vm5876_vm0, %v5875_v1 }
 0xbb3   :  { %5049 = vmatprep.subr.bf16.mxu0 %v5875_v1 }
 0xbb8   :  { %v1860_v30 = vpop.f32.mrb[48].mxu1 }
 0xbb9   :  { %v5007_v3 = vpop.f32.mrb[49].mxu1 }
 0xbba   :  { %v1863_v6 = vpop.f32.mrb[50].mxu1 }
 0xbbb   :  { %v1913_v34 = vpack.c.bf16 %v1863_v6, %v1860_v30  ;;  %v5008_v37 = vpop.f32.mrb[51].mxu1 }
 0xbbc   :  { %v1904_v39 = vpop.f32.mrb[44].mxu0 }
 0xbbd   :  { %v5015_v40 = vpop.f32.mrb[45].mxu0  ;;  %5032 = vmatmul.mubr.msk.bf16.vlgmr.msra.gmra.mrb[56].mxu1 %vm389_vm2, %v1913_v34 }
 0xbbe   :  { %v1907_v42 = vpop.f32.mrb[46].mxu0  ;;  %5045 = vmatprep.mubr.msk.bf16.mxu1 %vm5876_vm0, %v5875_v1  ;;  %v5548_v40 = vld [vmem:[%s7021_s9] sm:$0xff]  }
 0xbbf   :  { %v1914_v44 = vpack.c.bf16 %v1907_v42, %v1904_v39  ;;  %v5016_v45 = vpop.f32.mrb[47].mxu0  ;;  %v5547_v39 = vld [vmem:[%s7019_s7 + $0x8] sm:$0xff]  }
 0xbc0   :  { %v5549_v42 = vld [vmem:[%s7021_s9 + $0x8] sm:$0xff]  }
 0xbc1   :  { %5038 = vmatmul.mubr.msk.bf16.vlgmr.msra.gmra.mrb[52].mxu0 %vm389_vm2, %v1914_v44 }
 0xbc2   :  { %5057 = vmatprep.mubr.msk.bf16.mxu0 %vm5876_vm0, %v5875_v1  ;;  %5050 = vmatpush3.bf16.msra.mxu0 %v5548_v40 }
 0xbc3   :  { %5051 = vmatprep.subr.bf16.mxu0 %v5875_v1 }
 0xbc6   :  { %5052 = vmatpush3.bf16.msra.mxu0 %v5549_v42 }
 0xbc7   :  { %5053 = vmatprep.subr.bf16.mxu0 %v5875_v1 }
 0xc2f   :  { %v1955_v27 = vpop.f32.mrb[52].mxu1 }
 0xc30   :  { %v5021_v47 = vpop.f32.mrb[53].mxu1 }
 0xc31   :  { %v1958_v13 = vpop.f32.mrb[54].mxu1 }
 0xc32   :  { %v5022_v49 = vpop.f32.mrb[55].mxu1 }
 0xc84   :  { %v2002_v11 = vpop.f32.mrb[48].mxu0 }
 0xc85   :  { %v2103_v51 = vadd.f32 %v2002_v11, %v1955_v27  ;;  %v5027_v5 = vpop.f32.mrb[49].mxu0  ;;  %v2146_v11 = vrot.slane %v6281_v60, %v6124_v0 }
 0xc86   :  { %v2005_v53 = vpop.f32.mrb[50].mxu0 }
 0xc87   :  { %v2104_v56 = vadd.f32 %v2005_v53, %v1958_v13  ;;  %v5028_v59 = vpop.f32.mrb[51].mxu0 }
 0xc90   :  { %v2049_v19 = vpop.f32.mrb[56].mxu1 }
 0xc91   :  { %v2105_v61 = vadd.f32 %v2103_v51, %v2049_v19  ;;  %v5033_v62 = vpop.f32.mrb[57].mxu1  ;;  %v2152_v19 = vrot.slane %v6281_v60, %v6214_v52 }
 0xc92   :  { %v2052_v46 = vpop.f32.mrb[58].mxu1 }
 0xc93   :  { %v2106_v55 = vadd.f32 %v2104_v56, %v2052_v46  ;;  %v5034_v18 = vpop.f32.mrb[59].mxu1 }
 0xc94   :  { %v2096_v58 = vpop.f32.mrb[52].mxu0  ;;  %v5550_v18 = vld [vmem:[%s7021_s9 + $0x10] sm:$0xff]  }
 0xc95   :  { %v2107_v57 = vadd.f32 %v2105_v61, %v2096_v58  ;;  %v5039_v63 = vpop.f32.mrb[53].mxu0  ;;  %5054 = vmatpush3.bf16.msra.mxu0 %v5550_v18  ;;  %v4600_v58 = vld [vmem:[#allocation10] ss:$0 sm:$0xff]  ;;  %v2331_v18 = vrot.slane %v6281_v60, %v6261_v36 }
 0xc96   :  { %v2099_v8 = vpop.f32.mrb[54].mxu0  ;;  %5055 = vmatprep.subr.bf16.mxu0 %v5875_v1 }
 0xc97   :  { %v2113_v10 = vadd.f32 %v2112_v54, %v2107_v57  ;;  %v2108_v12 = vadd.f32 %v2106_v55, %v2099_v8  ;;  %v5040_v7 = vpop.f32.mrb[55].mxu0 }
 0xc99   :  { %v2114_v21 = vadd.f32 %v2112_v54, %v2108_v12  ;;  %v2115_v50 = vadd.f32 %v2113_v10, %v6287_v14  ;;  %v5551_v54 = vld [vmem:[%s7021_s9 + $0x18] sm:$0xff]  }
 0xc9a   :  { %5056 = vmatpush3.bf16.msra.mxu0 %v5551_v54 }
 0xc9b   :  { %v2117_v23 = vsel %vm198_vm1, %v2115_v50, 0.0  ;;  %v2116_v25 = vadd.f32 %v2114_v21, %v6289_v16  ;;  %v5546_v16 = vld [vmem:[%s7019_s7] sm:$0xff]   ;;  %5077 = vmatprep.subr.bf16.mxu0 %v5875_v1 }
 0xc9c   :  { %2118 = vadd.xlane.f32.xlu1 %v2117_v23  ;;  %5042 = vmatpush3.bf16.msra.mxu1 %v5546_v16 }
 0xc9d   :  { %v2120_v29 = vsel %vm198_vm1, %v2116_v25, 0.0  ;;  %5043 = vmatprep.subr.bf16.mxu1 %v5875_v1 }
 0xc9e   :  { %2121 = vadd.xlane.f32.xlu0 %v2120_v29 }
 0xca0   :  { %5044 = vmatpush3.bf16.msra.mxu1 %v5547_v39 }
 0xca1   :  { %5061 = vmatprep.subr.bf16.mxu1 %v5875_v1 }
 0xd29   :  { %v2119_v28 = vpop.xlane.xlu1 %2118 }
 0xd2a   :  { %v2123_v41 = vmul.f32 0.03125, %v2119_v28 }
 0xd2b   :  { %v2122_v32 = vpop.xlane.xlu0 %2121 }
 0xd2c   :  { %v2125_v33 = vsub.f32 %v2115_v50, %v2123_v41  ;;  %v2124_v30 = vmul.f32 0.03125, %v2122_v32 }
 0xd2e   :  { %v2126_v3 = vsub.f32 %v2116_v25, %v2124_v30  ;;  %v2127_v6 = vmul.f32 %v2125_v33, %v2125_v33  ;;  %v2224_v25 = vrot.slane %v6281_v60, %v6342_v9 }
 0xd30   :  { %v2129_v34 = vsel %vm198_vm1, %v2127_v6, 0.0  ;;  %v2128_v37 = vmul.f32 %v2126_v3, %v2126_v3 }
 0xd31   :  { %2130 = vadd.xlane.f32.xlu0 %v2129_v34 }
 0xd32   :  { %v2132_v14 = vsel %vm198_vm1, %v2128_v37, 0.0 }
 0xd33   :  { %2133 = vadd.xlane.f32.xlu1 %v2132_v14 }
 0xdbe   :  { %v2131_v44 = vpop.xlane.xlu0 %2130 }
 0xdbf   :  { %v2135_v45 = vmul.f32 0.03125, %v2131_v44 }
 0xdc0   :  { %v2134_v27 = vpop.xlane.xlu1 %2133 }
 0xdc1   :  { %v2137_v47 = vadd.f32 1e-05, %v2135_v45  ;;  %v2136_v13 = vmul.f32 0.03125, %v2134_v27 }
 0xdc3   :  { %5632 = vrsqrt.f32 %v2137_v47  ;;  %v2138_v49 = vadd.f32 1e-05, %v2136_v13 }
 0xdc5   :  { %5634 = vrsqrt.f32 %v2138_v49  ;;  %v6547_v49 = vld [vmem:[%s7016_s4 + $0x20] ss:$8 sps:$4 sm:$0xff]  }
 0xdcd   :  { %v5633_v51 = vpop.eup %5632 }
 0xdce   :  { %v2141_v5 = vmul.f32 %v5633_v51, %v2125_v33  ;;  %v6561_v51 = vld [vmem:[%s7018_s6 + $0x10] sm:$0xff] }
 0xdcf   :  { %v5635_v53 = vpop.eup %5634 }
 0xdd0   :  { %v2147_v56 = vmul.f32 %v2146_v11, %v2141_v5  ;;  %v2142_v59 = vmul.f32 %v5635_v53, %v2126_v3  ;;  %v2436_v5 = vrot.slane %v6561_v51, %v6046_v4 }
 0xdd2   :  { %v2148_v61 = vmul.f32 %v2146_v11, %v2142_v59  ;;  %v2153_v62 = vadd.f32 %v2152_v19, %v2147_v56  ;;  %v6553_v11 = vld [vmem:[%s7016_s4 + $0x30] ss:$8 sps:$4 sm:$0xff]  }
 0xdd4   :  { %v2154_v46 = vadd.f32 %v2152_v19, %v2148_v61 }
 0xdd6   :  { %v2155_v55 = vpack.c.bf16 %v2154_v46, %v2153_v62 }
 0xdd8   :  { %5046 = vmatmul.mubr.msk.bf16.vlgmr.msra.gmra.mrb[60].mxu1 %vm198_vm1, %v2155_v55 }
 0xdd9   :  { %5065 = vmatprep.mubr.msk.bf16.mxu1 %vm5876_vm0, %v5875_v1  ;;  %5062 = vmatpush3.bf16.msra.mxu1 %v6547_v49 }
 0xdda   :  { %5063 = vmatprep.subr.bf16.mxu1 %v5875_v1 }
 0xddd   :  { %5064 = vmatpush3.bf16.msra.mxu1 %v6553_v11 }
 0xdde   :  { %5069 = vmatprep.subr.bf16.mxu1 %v5875_v1 }
 0xeab   :  { %v2211_v57 = vpop.f32.mrb[60].mxu1 }
 0xeac   :  { %v2212_v63 = vadd.f32 %v4600_v58, %v2211_v57  ;;  %v5047_v8 = vpop.f32.mrb[61].mxu1 }
 0xead   :  { %v2214_v10 = vpop.f32.mrb[62].mxu1 }
 0xeae   :  { %v2215_v12 = vadd.f32 %v4600_v58, %v2214_v10  ;;  %v5048_v7 = vpop.f32.mrb[63].mxu1  ;;  %v2218_v21 = vmax.f32 %v2212_v63, 0.0 }
 0xeb0   :  { %v2219_v50 = vmax.f32 %v2215_v12, 0.0 }
 0xeb2   :  { %v2220_v23 = vpack.c.bf16 %v2219_v50, %v2218_v21 }
 0xeb4   :  { %5058 = vmatmul.mubr.msk.bf16.vlgmr.msra.gmra.mrb[56].mxu0 %vm2249_vm7, %v2220_v23 }
 0xeb5   :  { %5079 = vmatprep.mubr.msk.bf16.mxu0 %vm5876_vm0, %v5875_v1 }
 0xf87   :  { %v2287_v29 = vpop.f32.mrb[56].mxu0 }
 0xf88   :  { %v2288_v28 = vadd.f32 %v2287_v29, %v2224_v25  ;;  %v5059_v41 = vpop.f32.mrb[57].mxu0 }
 0xf89   :  { %v2290_v32 = vpop.f32.mrb[58].mxu0 }
 0xf8a   :  { %v2291_v33 = vadd.f32 %v2290_v32, %v2224_v25  ;;  %v5060_v30 = vpop.f32.mrb[59].mxu0  ;;  %v2294_v3 = vadd.f32 %v2288_v28, %v2153_v62 }
 0xf8c   :  { %v2296_v6 = vsel %vm198_vm1, %v2294_v3, 0.0  ;;  %v2295_v34 = vadd.f32 %v2291_v33, %v2154_v46  ;;  %v2325_v46 = vrot.slane %v6281_v60, %v6320_v35  ;;  %v2430_v60 = vrot.slane %v6561_v51, %v6075_v15 }
 0xf8d   :  { %2297 = vadd.xlane.f32.xlu0 %v2296_v6 }
 0xf8e   :  { %v2299_v37 = vsel %vm198_vm1, %v2295_v34, 0.0 }
 0xf8f   :  { %2300 = vadd.xlane.f32.xlu1 %v2299_v37 }
0x101a   :  { %v2298_v14 = vpop.xlane.xlu0 %2297 }
0x101b   :  { %v2302_v16 = vmul.f32 0.03125, %v2298_v14 }
0x101c   :  { %v2301_v39 = vpop.xlane.xlu1 %2300 }
0x101d   :  { %v2304_v40 = vsub.f32 %v2294_v3, %v2302_v16  ;;  %v2303_v42 = vmul.f32 0.03125, %v2301_v39 }
0x101f   :  { %v2305_v44 = vsub.f32 %v2295_v34, %v2303_v42  ;;  %v2306_v45 = vmul.f32 %v2304_v40, %v2304_v40 }
0x1021   :  { %v2308_v27 = vsel %vm198_vm1, %v2306_v45, 0.0  ;;  %v2307_v47 = vmul.f32 %v2305_v44, %v2305_v44 }
0x1022   :  { %2309 = vadd.xlane.f32.xlu0 %v2308_v27 }
0x1023   :  { %v2311_v13 = vsel %vm198_vm1, %v2307_v47, 0.0 }
0x1024   :  { %2312 = vadd.xlane.f32.xlu1 %v2311_v13 }
0x1038   :  { %2438 = vrot.lane.b32.xlu0 %v2436_v5, %s5877_s0 }
0x10af   :  { %v2310_v53 = vpop.xlane.xlu0 %2309 }
0x10b0   :  { %v2314_v56 = vmul.f32 0.03125, %v2310_v53 }
0x10b1   :  { %v2313_v59 = vpop.xlane.xlu1 %2312 }
0x10b2   :  { %v2316_v19 = vadd.f32 1e-05, %v2314_v56  ;;  %v2315_v61 = vmul.f32 0.03125, %v2313_v59 }
0x10b3   :  { %v2439_v23 = vpop.permute.xlu0 %2438 }
0x10b4   :  { %5636 = vrsqrt.f32 %v2316_v19  ;;  %v2317_v62 = vadd.f32 1e-05, %v2315_v61 }
0x10b6   :  { %5638 = vrsqrt.f32 %v2317_v62 }
0x10be   :  { %v5637_v55 = vpop.eup %5636 }
0x10bf   :  { %v2320_v54 = vmul.f32 %v5637_v55, %v2304_v40 }
0x10c0   :  { %v5639_v58 = vpop.eup %5638 }
0x10c1   :  { %v2326_v57 = vmul.f32 %v2325_v46, %v2320_v54  ;;  %v2321_v63 = vmul.f32 %v5639_v58, %v2305_v44 }
0x10c3   :  { %v6570_v8 = vadd.f32 %v2331_v18, %v2326_v57  ;;  %v2327_v10 = vmul.f32 %v2325_v46, %v2321_v63 }
0x10c5   :  { %v6572_v12 = vadd.f32 %v2331_v18, %v2327_v10  ;;  %v2368_v7 = vadd.f32 %v6291_v17, %v6570_v8 }
0x10c7   :  { %v2369_v21 = vadd.f32 %v6295_v20, %v6572_v12  ;;  %v2443_v61 = vpack.c.bf16 %v6572_v12, %v6570_v8 }
0x10c9   :  { %v2370_v50 = vpack.c.bf16 %v2369_v21, %v2368_v7 }
0x10cb   :  { %5066 = vmatmul.mubr.msk.bf16.vlgmr.msra.gmra.mrb[64].mxu1 %vm198_vm1, %v2370_v50 }
0x10cc   :  { %5073 = vmatprep.mubr.msk.bf16.mxu1 %vm5876_vm0, %v5875_v1 }
0x119e   :  { %v2420_v25 = vpop.f32.mrb[64].mxu1 }
0x119f   :  { %v5067_v29 = vpop.f32.mrb[65].mxu1  ;;  %v2431_v41 = vadd.f32 %v2430_v60, %v2420_v25  ;;  %v2441_v32 = vadd.f32 %v2439_v23, %v2420_v25 }
0x11a0   :  { %v2423_v28 = vpop.f32.mrb[66].mxu1 }
0x11a1   :  { %v2432_v33 = vadd.f32 %v2430_v60, %v2423_v28  ;;  %v2442_v17 = vadd.f32 %v2439_v23, %v2423_v28  ;;  %v5068_v30 = vpop.f32.mrb[67].mxu1 }
0x11a3   :  { %v2518_v3 = vpack.c.bf16 %v2432_v33, %v2431_v41  ;;  %v5430_v20 = vpack.i.bf16 %v2442_v17, %v2441_v32  ;;  %v2542_v6 = vpack.c.bf16 %v2442_v17, %v2441_v32  ;;  %v5435_v34 = vpack.i.bf16 %v2432_v33, %v2431_v41 }
0x11a4   :  { %v2447_v32 = vrot.slane %v6561_v51, %v6124_v0 }
0x11a5   :  { %5431 = vrot.lane.b32.xlu0 %v5430_v20, %s5880_s13  ;;  %5421 = vrot.lane.b32.xlu1 %v5430_v20, %s5879_s12 }
0x11a9   :  { %5426 = vrot.lane.b32.xlu1 %v5430_v20, %s5878_s25  ;;  %2450 = vrot.lane.b32.xlu0 %v6553_v11, %s5881_s14 }
0x11ad   :  { %2448 = vrot.lane.b32.xlu1 %v6547_v49, %s5881_s14 }
0x11b1   :  { %2571 = vrot.lane.b32.xlu1 %v2542_v6, %s5882_s15 }
0x11b5   :  { %5436 = vrot.lane.b32.xlu1 %v5435_v34, %s5879_s12 }
0x1217   :  { %v5432_v37 = vpop.permute.xlu0 %5431  ;;  %v5422_v14 = vpop.permute.xlu1 %5421 }
0x1218   :  { %v5434_v16 = vunpack.i.h.bf16 %v5432_v37  ;;  %v5433_v39 = vunpack.i.l.bf16 %v5432_v37  ;;  %v5424_v40 = vunpack.i.h.bf16 %v5422_v14  ;;  %v5423_v42 = vunpack.i.l.bf16 %v5422_v14 }
0x121a   :  { %v2545_v44 = vpack.c.bf16 %v5434_v16, %v5433_v39  ;;  %v2543_v45 = vpack.c.bf16 %v5424_v40, %v5423_v42 }
0x121b   :  { %v5427_v27 = vpop.permute.xlu1 %5426  ;;  %v2451_v56 = vpop.permute.xlu0 %2450 }
0x121c   :  { %v5429_v47 = vunpack.i.h.bf16 %v5427_v27  ;;  %v5428_v13 = vunpack.i.l.bf16 %v5427_v27  ;;  %2621 = vrot.lane.b32.xlu0 %v2543_v45, %s5882_s15  ;;  %2721 = vrot.lane.b32.xlu1 %v2545_v44, %s5882_s15 }
0x121e   :  { %v2544_v5 = vpack.c.bf16 %v5429_v47, %v5428_v13 }
0x121f   :  { %v2449_v53 = vpop.permute.xlu1 %2448 }
0x1220   :  { %5070 = vmatpush3.bf16.msra.mxu1 %v2449_v53  ;;  %2671 = vrot.lane.b32.xlu0 %v2544_v5, %s5882_s15 }
0x1221   :  { %5446 = vrot.lane.b32.xlu1 %v5435_v34, %s5880_s13  ;;  %5071 = vmatprep.subr.bf16.mxu1 %v5875_v1 }
0x1223   :  { %v2572_v59 = vpop.permute.xlu1 %2571 }
0x1224   :  { %v2577_v19 = vsel %vm389_vm2, %v2572_v59, 0  ;;  %5072 = vmatpush3.bf16.msra.mxu1 %v2451_v56  ;;  %5441 = vrot.lane.b32.xlu0 %v5435_v34, %s5878_s25 }
0x1225   :  { %5078 = vmatpush3.bf16.xpose.msra.mxu0 %v2577_v19  ;;  %5083 = vmatprep.subr.bf16.mxu1 %v5875_v1 }
0x1226   :  { %5089 = vmatprep.subr.bf16.mxu0 %v5875_v1 }
0x1227   :  { %5074 = vmatmul.mubr.msk.bf16.vlgmr.msra.gmra.mrb[68].mxu1 %vm198_vm1, %v2443_v61  ;;  %v5437_v62 = vpop.permute.xlu1 %5436 }
0x1228   :  { %5085 = vmatprep.mubr.msk.bf16.mxu1 %vm5876_vm0, %v5875_v1  ;;  %v5439_v54 = vunpack.i.h.bf16 %v5437_v62  ;;  %v5438_v58 = vunpack.i.l.bf16 %v5437_v62 }
0x122a   :  { %v2519_v10 = vpack.c.bf16 %v5439_v54, %v5438_v58 }
0x122c   :  { %5080 = vmatmul.mubr.msk.bf16.vlgmr.msra.gmra.mrb[60].mxu0 %vm389_vm2, %v2518_v3 }
0x122d   :  { %5091 = vmatprep.mubr.msk.bf16.mxu0 %vm5876_vm0, %v5875_v1 }
0x128e   :  { %v2622_v46 = vpop.permute.xlu0 %2621  ;;  %v2722_v18 = vpop.permute.xlu1 %2721 }
0x128f   :  { %v2627_v55 = vsel %vm389_vm2, %v2622_v46, 0  ;;  %v2727_v50 = vsel %vm389_vm2, %v2722_v18, 0 }
0x1290   :  { %5084 = vmatpush3.bf16.xpose.msra.mxu1 %v2627_v55 }
0x1291   :  { %5095 = vmatprep.subr.bf16.mxu1 %v5875_v1 }
0x1292   :  { %v2672_v57 = vpop.permute.xlu0 %2671 }
0x1293   :  { %v2677_v63 = vsel %vm389_vm2, %v2672_v57, 0  ;;  %v5447_v7 = vpop.permute.xlu1 %5446 }
0x1294   :  { %5090 = vmatpush3.bf16.xpose.msra.mxu0 %v2677_v63  ;;  %v5449_v25 = vunpack.i.h.bf16 %v5447_v7  ;;  %v5448_v29 = vunpack.i.l.bf16 %v5447_v7 }
0x1295   :  { %5101 = vmatprep.subr.bf16.mxu0 %v5875_v1 }
0x1296   :  { %v5442_v21 = vpop.permute.xlu0 %5441  ;;  %v2521_v41 = vpack.c.bf16 %v5449_v25, %v5448_v29 }
0x1297   :  { %v5444_v60 = vunpack.i.h.bf16 %v5442_v21  ;;  %v5443_v23 = vunpack.i.l.bf16 %v5442_v21  ;;  %5086 = vmatmul.mubr.msk.bf16.vlgmr.msra.gmra.mrb[72].mxu1 %vm389_vm2, %v2519_v10 }
0x1298   :  { %5096 = vmatpush3.bf16.xpose.msra.mxu1 %v2727_v50  ;;  %5097 = vmatprep.mubr.msk.bf16.mxu1 %vm5876_vm0, %v5875_v1 }
0x1299   :  { %v2520_v28 = vpack.c.bf16 %v5444_v60, %v5443_v23  ;;  %5107 = vmatprep.subr.bf16.mxu1 %v5875_v1 }
0x129b   :  { %5092 = vmatmul.mubr.msk.bf16.vlgmr.msra.gmra.mrb[64].mxu0 %vm389_vm2, %v2520_v28 }
0x129c   :  { %5103 = vmatprep.mubr.msk.bf16.mxu0 %vm5876_vm0, %v5875_v1 }
0x129f   :  { %5098 = vmatmul.mubr.msk.bf16.vlgmr.msra.gmra.mrb[76].mxu1 %vm389_vm2, %v2521_v41 }
0x12a0   :  { %5109 = vmatprep.mubr.msk.bf16.mxu1 %vm5876_vm0, %v5875_v1 }
0x12fa   :  { %v2491_v33 = vpop.f32.mrb[68].mxu1 }
0x12fb   :  { %v5075_v17 = vpop.f32.mrb[69].mxu1  ;;  %v2492_v3 = vadd.f32 %v2491_v33, %v2447_v32 }
0x12fc   :  { %v2494_v30 = vpop.f32.mrb[70].mxu1 }
0x12fd   :  { %v2495_v20 = vadd.f32 %v2494_v30, %v2447_v32  ;;  %v5076_v6 = vpop.f32.mrb[71].mxu1 }
0x12ff   :  { %v2613_v34 = vpop.f32.mrb[60].mxu0  ;;  %v2566_v37 = vpack.c.bf16 %v2495_v20, %v2492_v3  ;;  %v6626_v14 = vpack.i.bf16 %v2495_v20, %v2492_v3 }
0x1300   :  { %v2770_v16 = vmul.f32 0.35355338, %v2613_v34  ;;  %v5081_v39 = vpop.f32.mrb[61].mxu0 }
0x1301   :  { %v2616_v40 = vpop.f32.mrb[62].mxu0  ;;  %5102 = vmatpush3.bf16.msra.mxu0 %v2566_v37 }
0x1302   :  { %v2771_v42 = vmul.f32 0.35355338, %v2616_v40  ;;  %v5082_v44 = vpop.f32.mrb[63].mxu0  ;;  %v2778_v45 = vadd.f32 %v2770_v16, %v6128_v38  ;;  %5113 = vmatprep.subr.bf16.mxu0 %v5875_v1 }
0x1304   :  { %v2786_v27 = vsel %vm603_vm5, %v2778_v45, -inf  ;;  %v2779_v47 = vadd.f32 %v2771_v42, %v6130_v43 }
0x1305   :  { %2787 = vmax.xlane.f32.xlu0 %v2786_v27 }
0x1306   :  { %v2789_v13 = vsel %vm603_vm5, %v2779_v47, -inf }
0x1307   :  { %2790 = vmax.xlane.f32.xlu1 %v2789_v13 }
0x136a   :  { %v2663_v5 = vpop.f32.mrb[72].mxu1 }
0x136b   :  { %v2772_v53 = vmul.f32 0.35355338, %v2663_v5  ;;  %v5087_v56 = vpop.f32.mrb[73].mxu1 }
0x136c   :  { %v2666_v59 = vpop.f32.mrb[74].mxu1 }
0x136d   :  { %v2773_v19 = vmul.f32 0.35355338, %v2666_v59  ;;  %v5088_v61 = vpop.f32.mrb[75].mxu1  ;;  %v2780_v62 = vadd.f32 %v2772_v53, %v6128_v38 }
0x136e   :  { %v2713_v46 = vpop.f32.mrb[64].mxu0 }
0x136f   :  { %v2774_v55 = vmul.f32 0.35355338, %v2713_v46  ;;  %v5093_v18 = vpop.f32.mrb[65].mxu0  ;;  %v2792_v54 = vsel %vm603_vm5, %v2780_v62, -inf  ;;  %v2781_v58 = vadd.f32 %v2773_v19, %v6130_v43 }
0x1370   :  { %v2716_v57 = vpop.f32.mrb[66].mxu0  ;;  %2793 = vmax.xlane.f32.xlu0 %v2792_v54 }
0x1371   :  { %v2775_v63 = vmul.f32 0.35355338, %v2716_v57  ;;  %v5094_v10 = vpop.f32.mrb[67].mxu0  ;;  %v2782_v7 = vadd.f32 %v2774_v55, %v6128_v38  ;;  %v2795_v29 = vsel %vm603_vm5, %v2781_v58, -inf }
0x1372   :  { %v2763_v21 = vpop.f32.mrb[76].mxu1 }
0x1373   :  { %v2783_v50 = vadd.f32 %v2775_v63, %v6130_v43  ;;  %v2776_v60 = vmul.f32 0.35355338, %v2763_v21  ;;  %v5099_v23 = vpop.f32.mrb[77].mxu1  ;;  %v2798_v25 = vsel %vm603_vm5, %v2782_v7, -inf }
0x1374   :  { %2799 = vmax.xlane.f32.xlu1 %v2798_v25  ;;  %2796 = vmax.xlane.f32.xlu0 %v2795_v29  ;;  %v2766_v28 = vpop.f32.mrb[78].mxu1 }
0x1375   :  { %v2777_v41 = vmul.f32 0.35355338, %v2766_v28  ;;  %v5100_v32 = vpop.f32.mrb[79].mxu1  ;;  %v2784_v33 = vadd.f32 %v2776_v60, %v6128_v38  ;;  %v2801_v30 = vsel %vm603_vm5, %v2783_v50, -inf }
0x1377   :  { %v2785_v17 = vadd.f32 %v2777_v41, %v6130_v43  ;;  %v2804_v3 = vsel %vm603_vm5, %v2784_v33, -inf }
0x1378   :  { %2802 = vmax.xlane.f32.xlu0 %v2801_v30  ;;  %2805 = vmax.xlane.f32.xlu1 %v2804_v3 }
0x1379   :  { %v2807_v20 = vsel %vm603_vm5, %v2785_v17, -inf }
0x137c   :  { %2808 = vmax.xlane.f32.xlu0 %v2807_v20 }
0x1389   :  { %5451 = vrot.lane.b32.xlu1 %v6626_v14, %s5879_s12 }
0x1392   :  { %v2788_v6 = vpop.xlane.xlu0 %2787 }
0x1393   :  { %v2810_v16 = vsub.f32 %v2778_v45, %v2788_v6 }
0x1394   :  { %v2791_v34 = vpop.xlane.xlu1 %2790 }
0x1395   :  { %v2811_v37 = vsub.f32 %v2779_v47, %v2791_v34  ;;  %v2818_v40 = vmul.f32 1.442695, %v2810_v16 }
0x1397   :  { %v2820_v39 = vmul.f32 1.442695, %v2811_v37 }
0x1399   :  { %5640 = vpow2.f32 %v2820_v39 }
0x139a   :  { %5642 = vpow2.f32 %v2818_v40 }
0x13a3   :  { %v5641_v42 = vpop.eup %5640 }
0x13a4   :  { %v2837_v44 = vsel %vm603_vm5, %v5641_v42, 0.0  ;;  %v5643_v27 = vpop.eup %5642 }
0x13a5   :  { %2838 = vadd.xlane.f32.xlu0 %v2837_v44  ;;  %v2834_v13 = vsel %vm603_vm5, %v5643_v27, 0.0 }
0x13ad   :  { %2835 = vadd.xlane.f32.xlu1 %v2834_v13 }
0x13fd   :  { %v2794_v5 = vpop.xlane.xlu0 %2793 }
0x13fe   :  { %v2812_v53 = vsub.f32 %v2780_v62, %v2794_v5 }
0x1400   :  { %v2822_v56 = vmul.f32 1.442695, %v2812_v53 }
0x1401   :  { %v2800_v59 = vpop.xlane.xlu1 %2799  ;;  %v2797_v19 = vpop.xlane.xlu0 %2796 }
0x1402   :  { %5644 = vpow2.f32 %v2822_v56  ;;  %v2814_v47 = vsub.f32 %v2782_v7, %v2800_v59  ;;  %v2813_v45 = vsub.f32 %v2781_v58, %v2797_v19 }
0x1404   :  { %v2826_v61 = vmul.f32 1.442695, %v2814_v47  ;;  %v2824_v46 = vmul.f32 1.442695, %v2813_v45 }
0x1405   :  { %v2803_v55 = vpop.xlane.xlu0 %2802  ;;  %v2806_v18 = vpop.xlane.xlu1 %2805 }
0x1406   :  { %5646 = vpow2.f32 %v2826_v61  ;;  %v2815_v54 = vsub.f32 %v2783_v50, %v2803_v55  ;;  %v2816_v57 = vsub.f32 %v2784_v33, %v2806_v18 }
0x1407   :  { %5648 = vpow2.f32 %v2824_v46 }
0x1408   :  { %v2828_v63 = vmul.f32 1.442695, %v2815_v54  ;;  %v2830_v10 = vmul.f32 1.442695, %v2816_v57 }
0x1409   :  { %v5452_v21 = vpop.permute.xlu1 %5451  ;;  %v2809_v60 = vpop.xlane.xlu0 %2808 }
0x140a   :  { %5650 = vpow2.f32 %v2828_v63  ;;  %v5454_v62 = vunpack.i.h.bf16 %v5452_v21  ;;  %v5453_v23 = vunpack.i.l.bf16 %v5452_v21  ;;  %v2817_v25 = vsub.f32 %v2785_v17, %v2809_v60 }
0x140b   :  { %5652 = vpow2.f32 %v2830_v10 }
0x140c   :  { %v5645_v29 = vpop.eup %5644  ;;  %v2567_v7 = vpack.c.bf16 %v5454_v62, %v5453_v23  ;;  %v2832_v58 = vmul.f32 1.442695, %v2817_v25  ;;  %v4613_v25 = vld [vmem:[%s7017_s5 + $0x20] sm:$0xf] }
0x140d   :  { %v2840_v28 = vsel %vm603_vm5, %v5645_v29, 0.0 }
0x140e   :  { %5654 = vpow2.f32 %v2832_v58  ;;  %2841 = vadd.xlane.f32.xlu1 %v2840_v28  ;;  %5108 = vmatpush3.bf16.msra.mxu1 %v2567_v7 }
0x140f   :  { %5119 = vmatprep.subr.bf16.mxu1 %v5875_v1 }
0x1410   :  { %v5647_v50 = vpop.eup %5646 }
0x1411   :  { %v5649_v41 = vpop.eup %5648  ;;  %v2846_v32 = vsel %vm603_vm5, %v5647_v50, 0.0 }
0x1412   :  { %2847 = vadd.xlane.f32.xlu1 %v2846_v32  ;;  %v2843_v33 = vsel %vm603_vm5, %v5649_v41, 0.0  ;;  %v3062_v32 = vsel %vm879_vm6, %v4613_v25, 0 }
0x1413   :  { %2844 = vadd.xlane.f32.xlu0 %v2843_v33 }
0x1414   :  { %v5651_v17 = vpop.eup %5650 }
0x1415   :  { %v5653_v30 = vpop.eup %5652  ;;  %v2849_v3 = vsel %vm603_vm5, %v5651_v17, 0.0 }
0x1416   :  { %v2852_v20 = vsel %vm603_vm5, %v5653_v30, 0.0 }
0x1417   :  { %2853 = vadd.xlane.f32.xlu1 %v2852_v20  ;;  %2850 = vadd.xlane.f32.xlu0 %v2849_v3 }
0x1418   :  { %v5655_v6 = vpop.eup %5654 }
0x1419   :  { %v2855_v34 = vsel %vm603_vm5, %v5655_v6, 0.0 }
0x141b   :  { %2856 = vadd.xlane.f32.xlu0 %v2855_v34 }
0x1428   :  { %5461 = vrot.lane.b32.xlu1 %v6626_v14, %s5880_s13 }
0x1431   :  { %5456 = vrot.lane.b32.xlu0 %v6626_v14, %s5878_s25 }
0x1432   :  { %v2839_v37 = vpop.xlane.xlu0 %2838 }
0x1433   :  { %5656 = vrcp.f32 %v2839_v37 }
0x143a   :  { %v2836_v16 = vpop.xlane.xlu1 %2835 }
0x143b   :  { %5658 = vrcp.f32 %v2836_v16 }
0x143d   :  { %v5657_v39 = vpop.eup %5656 }
0x143e   :  { %v2867_v44 = vmul.f32 %v5657_v39, %v5641_v42 }
0x1445   :  { %v5659_v40 = vpop.eup %5658 }
0x1446   :  { %v2866_v13 = vmul.f32 %v5659_v40, %v5643_v27 }
0x1448   :  { %v2874_v5 = vpack.c.bf16 %v2867_v44, %v2866_v13  ;;  %v4616_v13 = vld [vmem:[%s7017_s5 + $0x2c] sm:$0xf] }
0x144a   :  { %5104 = vmatmul.mubr.msk.bf16.vlgmr.msra.gmra.mrb[68].mxu0 %vm603_vm5, %v2874_v5 }
0x144b   :  { %5115 = vmatprep.mubr.msk.bf16.mxu0 %vm5876_vm0, %v5875_v1 }
0x149b   :  { %v2842_v53 = vpop.xlane.xlu1 %2841 }
0x149c   :  { %5660 = vrcp.f32 %v2842_v53 }
0x149f   :  { %v2848_v56 = vpop.xlane.xlu1 %2847 }
0x14a0   :  { %v2845_v59 = vpop.xlane.xlu0 %2844 }
0x14a1   :  { %5662 = vrcp.f32 %v2845_v59 }
0x14a2   :  { %5664 = vrcp.f32 %v2848_v56 }
0x14a4   :  { %v2854_v14 = vpop.xlane.xlu1 %2853  ;;  %v2851_v19 = vpop.xlane.xlu0 %2850 }
0x14a5   :  { %5666 = vrcp.f32 %v2851_v19 }
0x14a6   :  { %5668 = vrcp.f32 %v2854_v14  ;;  %v5661_v42 = vpop.eup %5660  ;;  %v3203_v14 = vsel %vm879_vm6, %v4616_v13, 0 }
0x14a7   :  { %v2868_v55 = vmul.f32 %v5661_v42, %v5645_v29 }
0x14a8   :  { %v5462_v47 = vpop.permute.xlu1 %5461  ;;  %v2857_v45 = vpop.xlane.xlu0 %2856 }
0x14a9   :  { %5670 = vrcp.f32 %v2857_v45  ;;  %v5464_v61 = vunpack.i.h.bf16 %v5462_v47  ;;  %v5463_v46 = vunpack.i.l.bf16 %v5462_v47 }
0x14ab   :  { %v5663_v27 = vpop.eup %5662  ;;  %v2569_v60 = vpack.c.bf16 %v5464_v61, %v5463_v46 }
0x14ac   :  { %v2869_v18 = vmul.f32 %v5663_v27, %v5649_v41  ;;  %v5457_v54 = vpop.permute.xlu0 %5456  ;;  %v5665_v10 = vpop.eup %5664 }
0x14ad   :  { %v5459_v57 = vunpack.i.h.bf16 %v5457_v54  ;;  %v5458_v63 = vunpack.i.l.bf16 %v5457_v54  ;;  %v2870_v58 = vmul.f32 %v5665_v10, %v5647_v50  ;;  %v4614_v50 = vld [vmem:[%s7017_s5 + $0x24] sm:$0xf] }
0x14ae   :  { %v2875_v21 = vpack.c.bf16 %v2869_v18, %v2868_v55 }
0x14af   :  { %v2568_v62 = vpack.c.bf16 %v5459_v57, %v5458_v63  ;;  %v5667_v23 = vpop.eup %5666 }
0x14b0   :  { %5110 = vmatmul.mubr.msk.bf16.vlgmr.msra.gmra.mrb[80].mxu1 %vm603_vm5, %v2875_v21  ;;  %v5669_v7 = vpop.eup %5668  ;;  %v2871_v28 = vmul.f32 %v5667_v23, %v5651_v17  ;;  %v3109_v17 = vsel %vm879_vm6, %v4614_v50, 0 }
0x14b1   :  { %5120 = vmatpush3.bf16.msra.mxu1 %v2569_v60  ;;  %5114 = vmatpush3.bf16.msra.mxu0 %v2568_v62  ;;  %v2872_v33 = vmul.f32 %v5669_v7, %v5653_v30 }
0x14b2   :  { %5121 = vmatprep.mubr.msk.bf16.mxu1 %vm5876_vm0, %v5875_v1  ;;  %5125 = vmatprep.subr.bf16.mxu0 %v5875_v1  ;;  %v2876_v41 = vpack.c.bf16 %v2871_v28, %v2870_v58 }
0x14b3   :  { %v5671_v29 = vpop.eup %5670  ;;  %5131 = vmatprep.subr.bf16.mxu1 %v5875_v1 }
0x14b4   :  { %v2873_v3 = vmul.f32 %v5671_v29, %v5655_v6  ;;  %5116 = vmatmul.mubr.msk.bf16.vlgmr.msra.gmra.mrb[72].mxu0 %vm603_vm5, %v2876_v41  ;;  %v4615_v6 = vld [vmem:[%s7017_s5 + $0x28] sm:$0xf] }
0x14b5   :  { %5126 = vmatpush3.bf16.msra.mxu0 %v3062_v32  ;;  %5127 = vmatprep.mubr.msk.bf16.mxu0 %vm5876_vm0, %v5875_v1  ;;  %v3156_v40 = vsel %vm879_vm6, %v4615_v6, 0 }
0x14b6   :  { %v2877_v20 = vpack.c.bf16 %v2873_v3, %v2872_v33  ;;  %5137 = vmatprep.subr.bf16.mxu0 %v5875_v1  ;;  %v3255_v33 = vrot.slane %v6561_v51, %v6214_v52 }
0x14b8   :  { %5122 = vmatmul.mubr.msk.bf16.vlgmr.msra.gmra.mrb[84].mxu1 %vm603_vm5, %v2877_v20 }
0x14b9   :  { %5133 = vmatprep.mubr.msk.bf16.mxu1 %vm5876_vm0, %v5875_v1  ;;  %5132 = vmatpush3.bf16.msra.mxu1 %v3109_v17 }
0x14ba   :  { %5143 = vmatprep.subr.bf16.mxu1 %v5875_v1 }
0x151d   :  { %v2915_v30 = vpop.f32.mrb[68].mxu0 }
0x151e   :  { %v5105_v34 = vpop.f32.mrb[69].mxu0 }
0x151f   :  { %v2918_v37 = vpop.f32.mrb[70].mxu0 }
0x1520   :  { %v3054_v16 = vpack.c.bf16 %v2918_v37, %v2915_v30  ;;  %v5106_v39 = vpop.f32.mrb[71].mxu0 }
0x1522   :  { %5128 = vmatmul.mubr.msk.bf16.vlgmr.msra.gmra.mrb[76].mxu0 %vm389_vm2, %v3054_v16 }
0x1523   :  { %5138 = vmatpush3.bf16.msra.mxu0 %v3156_v40  ;;  %5139 = vmatprep.mubr.msk.bf16.mxu0 %vm5876_vm0, %v5875_v1 }
0x1524   :  { %5149 = vmatprep.subr.bf16.mxu0 %v5875_v1 }
0x1583   :  { %v2959_v44 = vpop.f32.mrb[80].mxu1 }
0x1584   :  { %v5111_v5 = vpop.f32.mrb[81].mxu1 }
0x1585   :  { %v2962_v53 = vpop.f32.mrb[82].mxu1  ;;  %v5556_v5 = vld [vmem:[%s7016_s4 + $0x24] ss:$8 sps:$4 sm:$0xff]  }
0x1586   :  { %v3055_v56 = vpack.c.bf16 %v2962_v53, %v2959_v44  ;;  %v5112_v59 = vpop.f32.mrb[83].mxu1  ;;  %v5557_v53 = vld [vmem:[%s7016_s4 + $0x34] ss:$8 sps:$4 sm:$0xff]   ;;  %s4547_s4 = sshll.u32 %s5884_s19, 4  ;;  %s4548_s4 = int_to_ptr.vmem [resolvable:$true] %s4547_s4 }
0x1587   :  { %v3003_v19 = vpop.f32.mrb[72].mxu0  ;;  %p5841_p13 = scmp.lt.s32.totalorder %s4548_s4, %s4548_s4 }
0x1588   :  { %5134 = vmatmul.mubr.msk.bf16.vlgmr.msra.gmra.mrb[88].mxu1 %vm389_vm2, %v3055_v56  ;;  %v5117_v47 = vpop.f32.mrb[73].mxu0 }
0x1589   :  { %5144 = vmatpush3.bf16.msra.mxu1 %v3203_v14  ;;  %5145 = vmatprep.mubr.msk.bf16.mxu1 %vm5876_vm0, %v5875_v1  ;;  %v3006_v45 = vpop.f32.mrb[74].mxu0 }
0x158a   :  { %v3056_v42 = vpack.c.bf16 %v3006_v45, %v3003_v19  ;;  %v5118_v27 = vpop.f32.mrb[75].mxu0  ;;  %5157 = vmatprep.subr.bf16.mxu1 %v5556_v5 }
0x158b   :  { %v3047_v61 = vpop.f32.mrb[84].mxu1 }
0x158c   :  { %v5123_v46 = vpop.f32.mrb[85].mxu1  ;;  %5140 = vmatmul.mubr.msk.bf16.vlgmr.msra.gmra.mrb[80].mxu0 %vm389_vm2, %v3056_v42 }
0x158d   :  { %v3050_v55 = vpop.f32.mrb[86].mxu1  ;;  %5153 = vmatprep.mubr.msk.bf16.mxu0 %vm5876_vm0, %v5875_v1 }
0x158e   :  { %v3057_v18 = vpack.c.bf16 %v3050_v55, %v3047_v61  ;;  %v5124_v54 = vpop.f32.mrb[87].mxu1 }
0x1590   :  { %5146 = vmatmul.mubr.msk.bf16.vlgmr.msra.gmra.mrb[92].mxu1 %vm389_vm2, %v3057_v18 }
0x1591   :  { %5161 = vmatprep.mubr.msk.bf16.mxu1 %vm198_vm1, %v6242_v22  ;;  %5158 = vmatpush3.bf16.msra.mxu1 %v5556_v5 }
0x1592   :  { %5159 = vmatprep.subr.bf16.mxu1 %v5557_v53 }
0x1595   :  { %5160 = vmatpush3.bf16.msra.mxu1 %v5557_v53 }
0x1596   :  { %5173 = vmatprep.subr.bf16.mxu1 %v5875_v1 }
0x1598   :  { %5162 = vmatmul.mubr.msk.bf16.vlgmr.msra.gmra.mrb[96].mxu1 %vm198_vm1, %v6247_v24  ;;  %v3358_v24 = vrot.slane %v6561_v51, %v6261_v36 }
0x1599   :  { %5177 = vmatprep.mubr.msk.bf16.mxu1 %vm5876_vm0, %v5875_v1 }
0x15f5   :  { %v3098_v57 = vpop.f32.mrb[76].mxu0 }
0x15f6   :  { %v5129_v63 = vpop.f32.mrb[77].mxu0 }
0x15f7   :  { %v3101_v10 = vpop.f32.mrb[78].mxu0 }
0x15f8   :  { %v5130_v21 = vpop.f32.mrb[79].mxu0 }
0x165b   :  { %v3145_v60 = vpop.f32.mrb[88].mxu1 }
0x165c   :  { %v3246_v62 = vadd.f32 %v3145_v60, %v3098_v57  ;;  %v5135_v23 = vpop.f32.mrb[89].mxu1 }
0x165d   :  { %v3148_v25 = vpop.f32.mrb[90].mxu1 }
0x165e   :  { %v3247_v7 = vadd.f32 %v3148_v25, %v3101_v10  ;;  %v5136_v58 = vpop.f32.mrb[91].mxu1 }
0x165f   :  { %v3192_v28 = vpop.f32.mrb[80].mxu0 }
0x1660   :  { %v3248_v29 = vadd.f32 %v3246_v62, %v3192_v28  ;;  %v5141_v41 = vpop.f32.mrb[81].mxu0 }
0x1661   :  { %v3195_v32 = vpop.f32.mrb[82].mxu0 }
0x1662   :  { %v3249_v3 = vadd.f32 %v3247_v7, %v3195_v32  ;;  %v5142_v20 = vpop.f32.mrb[83].mxu0 }
0x1663   :  { %v3239_v22 = vpop.f32.mrb[92].mxu1 }
0x1664   :  { %v3250_v50 = vadd.f32 %v3248_v29, %v3239_v22  ;;  %v5147_v17 = vpop.f32.mrb[93].mxu1 }
0x1665   :  { %v3242_v30 = vpop.f32.mrb[94].mxu1 }
0x1666   :  { %v3256_v6 = vadd.f32 %v3255_v33, %v3250_v50  ;;  %v3251_v34 = vadd.f32 %v3249_v3, %v3242_v30  ;;  %v5148_v37 = vpop.f32.mrb[95].mxu1  ;;  %v6749_v3 = vld [vmem:[%s7018_s6 + $0x18] sm:$0x7f] }
0x1667   :  { %v3289_v20 = vrot.slane %v6749_v3, %v6075_v15  ;;  %v3295_v17 = vrot.slane %v6749_v3, %v6046_v4 }
0x1668   :  { %v3257_v16 = vadd.f32 %v3255_v33, %v3251_v34  ;;  %v3258_v39 = vadd.f32 %v3256_v6, %v6570_v8 }
0x166a   :  { %v3260_v40 = vsel %vm198_vm1, %v3258_v39, 0.0  ;;  %v3259_v44 = vadd.f32 %v3257_v16, %v6572_v12 }
0x166b   :  { %3261 = vadd.xlane.f32.xlu1 %v3260_v40  ;;  %v5163_v61 = vpop.f32.mrb[96].mxu1  ;;  %v5723_v40 = vld [vmem:[#allocation7] sm:$0xff] }
0x166c   :  { %v3263_v13 = vsel %vm198_vm1, %v3259_v44, 0.0  ;;  %v3410_v46 = vadd.f32 %v5163_v61, %v3358_v24  ;;  %v3401_v55 = vpop.f32.mrb[97].mxu1 }
0x166d   :  { %3264 = vadd.xlane.f32.xlu0 %v3263_v13  ;;  %v3402_v18 = vadd.f32 %v3401_v55, %v3358_v24  ;;  %v5164_v54 = vpop.f32.mrb[98].mxu1  ;;  %v5724_v13 = vld [vmem:[#allocation7 + $0x8] sm:$0xff] }
0x166e   :  { %v3413_v57 = vadd.f32 %v5164_v54, %v3358_v24  ;;  %v3404_v63 = vpop.f32.mrb[99].mxu1 }
0x166f   :  { %v3405_v10 = vadd.f32 %v3404_v63, %v3358_v24 }
0x1670   :  { %v6732_v21 = vpack.i.bf16 %v3413_v57, %v3410_v46  ;;  %v3540_v62 = vpack.c.bf16 %v3413_v57, %v3410_v46 }
0x1671   :  { %v3539_v60 = vpack.c.bf16 %v3405_v10, %v3402_v18 }
0x1672   :  { %v3602_v23 = vsel %vm389_vm2, %v3540_v62, 0 }
0x16f8   :  { %v3262_v8 = vpop.xlane.xlu1 %3261 }
0x16f9   :  { %v3266_v12 = vmul.f32 0.03125, %v3262_v8 }
0x16fa   :  { %v3265_v56 = vpop.xlane.xlu0 %3264 }
0x16fb   :  { %v3268_v59 = vsub.f32 %v3258_v39, %v3266_v12  ;;  %v3267_v14 = vmul.f32 0.03125, %v3265_v56 }
0x16fd   :  { %v3269_v19 = vsub.f32 %v3259_v44, %v3267_v14  ;;  %v3270_v47 = vmul.f32 %v3268_v59, %v3268_v59 }
0x16ff   :  { %v3272_v45 = vsel %vm198_vm1, %v3270_v47, 0.0  ;;  %v3271_v42 = vmul.f32 %v3269_v19, %v3269_v19 }
0x1700   :  { %3273 = vadd.xlane.f32.xlu0 %v3272_v45 }
0x1701   :  { %v3275_v27 = vsel %vm198_vm1, %v3271_v42, 0.0 }
0x1702   :  { %3276 = vadd.xlane.f32.xlu1 %v3275_v27 }
0x1713   :  { %3307 = vrot.lane.b32.xlu1 %v6553_v11, %s5877_s0  ;;  %v5465_v11 = vpack.i.bf16 %v3405_v10, %v3402_v18  ;;  %v3304_v18 = vrot.slane %v6561_v51, %v6320_v35 }
0x1716   :  { %3305 = vrot.lane.b32.xlu0 %v6547_v49, %s5877_s0  ;;  %v3599_v49 = vsel %vm389_vm2, %v3539_v60, 0 }
0x1717   :  { %3420 = vrot.lane.b32.xlu1 %v5556_v5, %s5882_s15  ;;  %5174 = vmatpush3.bf16.xpose.msra.mxu1 %v3599_v49 }
0x1718   :  { %5175 = vmatprep.subr.bf16.mxu1 %v5875_v1 }
0x171a   :  { %3422 = vrot.lane.b32.xlu0 %v5557_v53, %s5882_s15 }
0x171b   :  { %5466 = vrot.lane.b32.xlu1 %v5465_v11, %s5879_s12 }
0x171e   :  { %5471 = vrot.lane.b32.xlu0 %v6732_v21, %s5879_s12 }
0x171f   :  { %5476 = vrot.lane.b32.xlu1 %v5465_v11, %s5878_s25  ;;  %5176 = vmatpush3.bf16.xpose.msra.mxu1 %v3602_v23 }
0x1720   :  { %5189 = vmatprep.subr.bf16.mxu1 %v5875_v1 }
0x1722   :  { %5481 = vrot.lane.b32.xlu0 %v5465_v11, %s5880_s13 }
0x1726   :  { %5491 = vrot.lane.b32.xlu0 %v6732_v21, %s5878_s25 }
0x178d   :  { %v3274_v25 = vpop.xlane.xlu0 %3273 }
0x178e   :  { %v3278_v7 = vmul.f32 0.03125, %v3274_v25 }
0x178f   :  { %v3277_v58 = vpop.xlane.xlu1 %3276 }
0x1790   :  { %v3280_v28 = vadd.f32 1e-05, %v3278_v7  ;;  %v3279_v29 = vmul.f32 0.03125, %v3277_v58 }
0x1791   :  { %v3306_v41 = vpop.permute.xlu0 %3305 }
0x1792   :  { %5672 = vrsqrt.f32 %v3280_v28  ;;  %v3281_v32 = vadd.f32 1e-05, %v3279_v29  ;;  %5150 = vmatpush3.bf16.msra.mxu0 %v3306_v41 }
0x1793   :  { %v3308_v33 = vpop.permute.xlu1 %3307  ;;  %5151 = vmatprep.subr.bf16.mxu0 %v5875_v1 }
0x1794   :  { %5674 = vrsqrt.f32 %v3281_v32 }
0x1795   :  { %v3423_v12 = vpop.permute.xlu0 %3422 }
0x1796   :  { %5152 = vmatpush3.bf16.msra.mxu0 %v3308_v33 }
0x1797   :  { %v3421_v8 = vpop.permute.xlu1 %3420 }
0x1798   :  { %5165 = vmatprep.subr.bf16.mxu0 %v3421_v8 }
0x1799   :  { %v5472_v47 = vpop.permute.xlu0 %5471 }
0x179a   :  { %v5473_v45 = vunpack.i.l.bf16 %v5472_v47 }
0x179b   :  { %v5467_v56 = vpop.permute.xlu1 %5466 }
0x179c   :  { %v5673_v22 = vpop.eup %5672  ;;  %v5468_v14 = vunpack.i.l.bf16 %v5467_v56 }
0x179d   :  { %v3284_v50 = vmul.f32 %v5673_v22, %v3268_v59  ;;  %v5469_v59 = vunpack.i.h.bf16 %v5467_v56  ;;  %v5482_v46 = vpop.permute.xlu0 %5481 }
0x179e   :  { %v5675_v30 = vpop.eup %5674 }
0x179f   :  { %v3290_v6 = vmul.f32 %v3289_v20, %v3284_v50  ;;  %v3285_v34 = vmul.f32 %v5675_v30, %v3269_v19  ;;  %v3541_v19 = vpack.c.bf16 %v5469_v59, %v5468_v14  ;;  %v5477_v61 = vpop.permute.xlu1 %5476  ;;  %v3419_v50 = vrot.slane %v6561_v51, %v6342_v9 }
0x17a0   :  { %v5478_v55 = vunpack.i.l.bf16 %v5477_v61  ;;  %v5483_v30 = vunpack.i.l.bf16 %v5482_v46 }
0x17a1   :  { %v3291_v37 = vmul.f32 %v3289_v20, %v3285_v34  ;;  %v6755_v16 = vadd.f32 %v3295_v17, %v3290_v6  ;;  %v3649_v42 = vsel %vm389_vm2, %v3541_v19, 0  ;;  %v5492_v62 = vpop.permute.xlu0 %5491 }
0x17a2   :  { %v5494_v58 = vunpack.i.h.bf16 %v5492_v62  ;;  %v5493_v28 = vunpack.i.l.bf16 %v5492_v62 }
0x17a3   :  { %v6757_v39 = vadd.f32 %v3295_v17, %v3291_v37  ;;  %v3298_v44 = vadd.f32 %v5723_v40, %v6755_v16  ;;  %v5484_v17 = vunpack.i.h.bf16 %v5482_v46 }
0x17a4   :  { %v3544_v29 = vpack.c.bf16 %v5494_v58, %v5493_v28 }
0x17a5   :  { %v3299_v5 = vadd.f32 %v5724_v13, %v6757_v39 }
0x17a6   :  { %v3702_v41 = vsel %vm389_vm2, %v3544_v29, 0 }
0x17a7   :  { %v3300_v53 = vpack.c.bf16 %v3299_v5, %v3298_v44 }
0x17a9   :  { %5154 = vmatmul.mubr.msk.bf16.vlgmr.msra.gmra.mrb[84].mxu0 %vm198_vm1, %v3300_v53 }
0x17aa   :  { %5169 = vmatprep.mubr.msk.bf16.mxu0 %vm198_vm1, %v6302_v26  ;;  %5166 = vmatpush3.bf16.msra.mxu0 %v3421_v8  ;;  %v5474_v26 = vunpack.i.h.bf16 %v5472_v47 }
0x17ab   :  { %5167 = vmatprep.subr.bf16.mxu0 %v3423_v12 }
0x17ac   :  { %v3542_v27 = vpack.c.bf16 %v5474_v26, %v5473_v45 }
0x17ae   :  { %5168 = vmatpush3.bf16.msra.mxu0 %v3423_v12  ;;  %v3652_v24 = vsel %vm389_vm2, %v3542_v27, 0 }
0x17af   :  { %5181 = vmatprep.subr.bf16.mxu0 %v5875_v1 }
0x17b1   :  { %5170 = vmatmul.mubr.msk.bf16.vlgmr.msra.gmra.mrb[88].mxu0 %vm198_vm1, %v6308_v31  ;;  %v5479_v31 = vunpack.i.h.bf16 %v5477_v61 }
0x17b2   :  { %5185 = vmatprep.mubr.msk.bf16.mxu0 %vm5876_vm0, %v5875_v1 }
0x17b3   :  { %v3543_v10 = vpack.c.bf16 %v5479_v31, %v5478_v55 }
0x17b5   :  { %v3699_v7 = vsel %vm389_vm2, %v3543_v10, 0 }
0x17b7   :  { %5182 = vmatpush3.bf16.xpose.msra.mxu0 %v3649_v42 }
0x17b8   :  { %5183 = vmatprep.subr.bf16.mxu0 %v5875_v1 }
0x17bf   :  { %5184 = vmatpush3.bf16.xpose.msra.mxu0 %v3652_v24 }
0x17c0   :  { %5197 = vmatprep.subr.bf16.mxu0 %v5875_v1 }
0x187c   :  { %v3348_v54 = vpop.f32.mrb[84].mxu0 }
0x187d   :  { %v5155_v57 = vpop.f32.mrb[85].mxu0  ;;  %v3349_v11 = vadd.f32 %v3348_v54, %v3304_v18 }
0x187e   :  { %v3351_v63 = vpop.f32.mrb[86].mxu0 }
0x187f   :  { %v3352_v60 = vadd.f32 %v3351_v63, %v3304_v18  ;;  %v5156_v49 = vpop.f32.mrb[87].mxu0 }
0x1881   :  { %v3495_v23 = vpack.c.bf16 %v3352_v60, %v3349_v11  ;;  %v5500_v25 = vpack.i.bf16 %v3352_v60, %v3349_v11 }
0x1883   :  { %5501 = vrot.lane.b32.xlu0 %v5500_v25, %s5878_s25  ;;  %5486 = vrot.lane.b32.xlu1 %v5500_v25, %s5879_s12 }
0x1884   :  { %5178 = vmatmul.mubr.msk.bf16.vlgmr.msra.gmra.mrb[100].mxu1 %vm389_vm2, %v3495_v23  ;;  %v5171_v32 = vpop.f32.mrb[88].mxu0 }
0x1885   :  { %5190 = vmatpush3.bf16.xpose.msra.mxu1 %v3699_v7  ;;  %5193 = vmatprep.mubr.msk.bf16.mxu1 %vm5876_vm0, %v5875_v1  ;;  %v3460_v33 = vpop.f32.mrb[89].mxu0  ;;  %v6793_v8 = vadd.f32 %v5171_v32, %v3419_v50 }
0x1886   :  { %5191 = vmatprep.subr.bf16.mxu1 %v5875_v1  ;;  %v5172_v20 = vpop.f32.mrb[90].mxu0  ;;  %v6789_v6 = vadd.f32 %v3460_v33, %v3419_v50 }
0x1887   :  { %5496 = vrot.lane.b32.xlu1 %v6732_v21, %s5880_s13  ;;  %v3463_v22 = vpop.f32.mrb[91].mxu0  ;;  %v3545_v21 = vpack.c.bf16 %v5484_v17, %v5483_v30  ;;  %v6795_v59 = vadd.f32 %v5172_v20, %v3419_v50 }
0x1888   :  { %v6791_v34 = vadd.f32 %v3463_v22, %v3419_v50 }
0x1889   :  { %v3749_v26 = vsel %vm389_vm2, %v3545_v21, 0  ;;  %v3588_v45 = vpack.c.bf16 %v6795_v59, %v6793_v8 }
0x188a   :  { %v3587_v51 = vpack.c.bf16 %v6791_v34, %v6789_v6 }
0x188b   :  { %5506 = vrot.lane.b32.xlu1 %v5500_v25, %s5880_s13 }
0x188d   :  { %5192 = vmatpush3.bf16.xpose.msra.mxu1 %v3702_v41 }
0x188e   :  { %5205 = vmatprep.subr.bf16.mxu1 %v5875_v1 }
0x18f5   :  { %v5502_v37 = vpop.permute.xlu0 %5501  ;;  %v5487_v40 = vpop.permute.xlu1 %5486 }
0x18f6   :  { %v5504_v44 = vunpack.i.h.bf16 %v5502_v37  ;;  %v5503_v13 = vunpack.i.l.bf16 %v5502_v37  ;;  %v5489_v5 = vunpack.i.h.bf16 %v5487_v40  ;;  %v5488_v53 = vunpack.i.l.bf16 %v5487_v40 }
0x18f8   :  { %v3497_v12 = vpack.c.bf16 %v5504_v44, %v5503_v13  ;;  %v3496_v56 = vpack.c.bf16 %v5489_v5, %v5488_v53 }
0x18f9   :  { %v5497_v14 = vpop.permute.xlu1 %5496 }
0x18fa   :  { %v5499_v19 = vunpack.i.h.bf16 %v5497_v14  ;;  %v5498_v47 = vunpack.i.l.bf16 %v5497_v14  ;;  %5186 = vmatmul.mubr.msk.bf16.vlgmr.msra.gmra.mrb[92].mxu0 %vm389_vm2, %v3496_v56  ;;  %5194 = vmatmul.mubr.msk.bf16.vlgmr.msra.gmra.mrb[104].mxu1 %vm389_vm2, %v3497_v12 }
0x18fb   :  { %5198 = vmatpush3.bf16.xpose.msra.mxu0 %v3749_v26  ;;  %5201 = vmatprep.mubr.msk.bf16.mxu0 %vm5876_vm0, %v5875_v1 }
0x18fc   :  { %5199 = vmatprep.subr.bf16.mxu0 %v5875_v1  ;;  %5206 = vmatpush3.bf16.msra.mxu1 %v3587_v51  ;;  %v3546_v42 = vpack.c.bf16 %v5499_v19, %v5498_v47 }
0x18fd   :  { %5207 = vmatprep.subr.bf16.mxu1 %v5875_v1  ;;  %5209 = vmatprep.mubr.msk.bf16.mxu1 %vm5876_vm0, %v5875_v1  ;;  %v5507_v27 = vpop.permute.xlu1 %5506 }
0x18fe   :  { %v3752_v24 = vsel %vm389_vm2, %v3546_v42, 0  ;;  %v5509_v61 = vunpack.i.h.bf16 %v5507_v27  ;;  %v5508_v46 = vunpack.i.l.bf16 %v5507_v27  ;;  %v5510_v27 = vpack.i.bf16 %v6791_v34, %v6789_v6 }
0x1900   :  { %5208 = vmatpush3.bf16.msra.mxu1 %v3588_v45  ;;  %v3498_v31 = vpack.c.bf16 %v5509_v61, %v5508_v46 }
0x1901   :  { %5221 = vmatprep.subr.bf16.mxu1 %v5875_v1 }
0x1903   :  { %5200 = vmatpush3.bf16.xpose.msra.mxu0 %v3752_v24 }
0x1904   :  { %5213 = vmatprep.subr.bf16.mxu0 %v5875_v1 }
0x190a   :  { %5202 = vmatmul.mubr.msk.bf16.vlgmr.msra.gmra.mrb[96].mxu0 %vm389_vm2, %v3498_v31 }
0x190b   :  { %5217 = vmatprep.mubr.msk.bf16.mxu0 %vm5876_vm0, %v5875_v1 }
0x1957   :  { %v3638_v55 = vpop.f32.mrb[100].mxu1 }
0x1958   :  { %v3795_v18 = vmul.f32 0.35355338, %v3638_v55  ;;  %v5179_v54 = vpop.f32.mrb[101].mxu1 }
0x1959   :  { %v3641_v57 = vpop.f32.mrb[102].mxu1 }
0x195a   :  { %v3803_v63 = vadd.f32 %v3795_v18, %v6128_v38  ;;  %v3796_v10 = vmul.f32 0.35355338, %v3641_v57  ;;  %v5180_v11 = vpop.f32.mrb[103].mxu1 }
0x195c   :  { %v3804_v60 = vadd.f32 %v3796_v10, %v6130_v43  ;;  %v3811_v49 = vsel %vm198_vm1, %v3803_v63, -inf }
0x195d   :  { %3812 = vmax.xlane.f32.xlu0 %v3811_v49 }
0x195e   :  { %v3814_v62 = vsel %vm198_vm1, %v3804_v60, -inf }
0x195f   :  { %3815 = vmax.xlane.f32.xlu1 %v3814_v62 }
0x19cd   :  { %v3688_v23 = vpop.f32.mrb[92].mxu0  ;;  %v3738_v25 = vpop.f32.mrb[104].mxu1 }
0x19ce   :  { %v3797_v7 = vmul.f32 0.35355338, %v3688_v23  ;;  %v3799_v58 = vmul.f32 0.35355338, %v3738_v25  ;;  %v5187_v28 = vpop.f32.mrb[93].mxu0  ;;  %v5195_v29 = vpop.f32.mrb[105].mxu1 }
0x19cf   :  { %v3691_v41 = vpop.f32.mrb[94].mxu0  ;;  %v3741_v32 = vpop.f32.mrb[106].mxu1 }
0x19d0   :  { %v3805_v33 = vadd.f32 %v3797_v7, %v6128_v38  ;;  %v3807_v20 = vadd.f32 %v3799_v58, %v6128_v38  ;;  %v3798_v22 = vmul.f32 0.35355338, %v3691_v41  ;;  %v5188_v50 = vpop.f32.mrb[95].mxu0  ;;  %v5196_v17 = vpop.f32.mrb[107].mxu1  ;;  %v3800_v21 = vmul.f32 0.35355338, %v3741_v32 }
0x19d2   :  { %v3806_v30 = vadd.f32 %v3798_v22, %v6130_v43  ;;  %v3817_v37 = vsel %vm198_vm1, %v3805_v33, -inf  ;;  %v3823_v40 = vsel %vm198_vm1, %v3807_v20, -inf  ;;  %v3808_v44 = vadd.f32 %v3800_v21, %v6130_v43 }
0x19d3   :  { %3818 = vmax.xlane.f32.xlu0 %v3817_v37  ;;  %3824 = vmax.xlane.f32.xlu1 %v3823_v40 }
0x19d4   :  { %v3820_v13 = vsel %vm198_vm1, %v3806_v30, -inf  ;;  %v3826_v5 = vsel %vm198_vm1, %v3808_v44, -inf }
0x19d7   :  { %3821 = vmax.xlane.f32.xlu0 %v3820_v13 }
0x19db   :  { %3827 = vmax.xlane.f32.xlu0 %v3826_v5 }
0x19dd   :  { %v3788_v53 = vpop.f32.mrb[96].mxu0 }
0x19de   :  { %v3801_v12 = vmul.f32 0.35355338, %v3788_v53  ;;  %v5203_v56 = vpop.f32.mrb[97].mxu0 }
0x19df   :  { %v3791_v51 = vpop.f32.mrb[98].mxu0 }
0x19e0   :  { %v3809_v14 = vadd.f32 %v3801_v12, %v6128_v38  ;;  %v3802_v19 = vmul.f32 0.35355338, %v3791_v51  ;;  %v5204_v47 = vpop.f32.mrb[99].mxu0  ;;  %v6838_v38 = vpack.i.bf16 %v6795_v59, %v6793_v8 }
0x19e2   :  { %v3810_v26 = vadd.f32 %v3802_v19, %v6130_v43  ;;  %v3829_v45 = vsel %vm198_vm1, %v3809_v14, -inf }
0x19e3   :  { %3830 = vmax.xlane.f32.xlu1 %v3829_v45 }
0x19e4   :  { %v3832_v42 = vsel %vm198_vm1, %v3810_v26, -inf }
0x19e5   :  { %3833 = vmax.xlane.f32.xlu0 %v3832_v42 }
0x19ea   :  { %v3813_v61 = vpop.xlane.xlu0 %3812 }
0x19eb   :  { %v3835_v31 = vsub.f32 %v3803_v63, %v3813_v61 }
0x19ec   :  { %v3816_v43 = vpop.xlane.xlu1 %3815 }
0x19ed   :  { %v3836_v24 = vsub.f32 %v3804_v60, %v3816_v43  ;;  %v3843_v6 = vmul.f32 1.442695, %v3835_v31 }
0x19ef   :  { %v3845_v46 = vmul.f32 1.442695, %v3836_v24 }
0x19f1   :  { %5676 = vpow2.f32 %v3845_v46 }
0x19f2   :  { %5678 = vpow2.f32 %v3843_v6 }
0x19f4   :  { %5511 = vrot.lane.b32.xlu1 %v5510_v27, %s5879_s12 }
0x19f8   :  { %5521 = vrot.lane.b32.xlu1 %v5510_v27, %s5878_s25 }
0x19fb   :  { %5516 = vrot.lane.b32.xlu0 %v6838_v38, %s5879_s12  ;;  %v6843_v34 = vpop.eup %5676 }
0x19fc   :  { %5526 = vrot.lane.b32.xlu1 %v5510_v27, %s5880_s13  ;;  %v3862_v55 = vsel %vm198_vm1, %v6843_v34, 0.0  ;;  %v6847_v8 = vpop.eup %5678 }
0x19fd   :  { %v3859_v59 = vsel %vm198_vm1, %v6847_v8, 0.0 }
0x1a1a   :  { %3863 = vadd.xlane.f32.xlu0 %v3862_v55 }
0x1a20   :  { %3860 = vadd.xlane.f32.xlu1 %v3859_v59 }
0x1a60   :  { %v3819_v18 = vpop.xlane.xlu0 %3818  ;;  %v3825_v54 = vpop.xlane.xlu1 %3824 }
0x1a61   :  { %v3837_v57 = vsub.f32 %v3805_v33, %v3819_v18  ;;  %v3839_v10 = vsub.f32 %v3807_v20, %v3825_v54 }
0x1a63   :  { %v3847_v63 = vmul.f32 1.442695, %v3837_v57  ;;  %v3851_v11 = vmul.f32 1.442695, %v3839_v10 }
0x1a64   :  { %v3822_v60 = vpop.xlane.xlu0 %3821 }
0x1a65   :  { %5680 = vpow2.f32 %v3847_v63  ;;  %v3838_v49 = vsub.f32 %v3806_v30, %v3822_v60 }
0x1a66   :  { %5682 = vpow2.f32 %v3851_v11 }
0x1a67   :  { %v3849_v62 = vmul.f32 1.442695, %v3838_v49 }
0x1a68   :  { %v3828_v23 = vpop.xlane.xlu0 %3827 }
0x1a69   :  { %5684 = vpow2.f32 %v3849_v62  ;;  %v3840_v25 = vsub.f32 %v3808_v44, %v3828_v23 }
0x1a6b   :  { %v3853_v7 = vmul.f32 1.442695, %v3840_v25 }
0x1a6d   :  { %5686 = vpow2.f32 %v3853_v7 }
0x1a6f   :  { %v6851_v58 = vpop.eup %5680 }
0x1a70   :  { %v3831_v28 = vpop.xlane.xlu1 %3830  ;;  %v3865_v29 = vsel %vm198_vm1, %v6851_v58, 0.0  ;;  %v6855_v41 = vpop.eup %5682 }
0x1a71   :  { %v3841_v32 = vsub.f32 %v3809_v14, %v3831_v28  ;;  %3866 = vadd.xlane.f32.xlu1 %v3865_v29  ;;  %v3871_v30 = vsel %vm198_vm1, %v6855_v41, 0.0 }
0x1a72   :  { %v3834_v33 = vpop.xlane.xlu0 %3833 }
0x1a73   :  { %v6857_v20 = vpop.eup %5684  ;;  %v3855_v22 = vmul.f32 1.442695, %v3841_v32  ;;  %v3842_v50 = vsub.f32 %v3810_v26, %v3834_v33 }
0x1a74   :  { %v5512_v17 = vpop.permute.xlu1 %5511  ;;  %v3868_v21 = vsel %vm198_vm1, %v6857_v20, 0.0 }
0x1a75   :  { %5688 = vpow2.f32 %v3855_v22  ;;  %v3857_v37 = vmul.f32 1.442695, %v3842_v50  ;;  %v5514_v40 = vunpack.i.h.bf16 %v5512_v17  ;;  %v5513_v44 = vunpack.i.l.bf16 %v5512_v17  ;;  %3872 = vadd.xlane.f32.xlu1 %v3871_v30  ;;  %3869 = vadd.xlane.f32.xlu0 %v3868_v21 }
0x1a76   :  { %v5517_v13 = vpop.permute.xlu0 %5516 }
0x1a77   :  { %v6863_v5 = vpop.eup %5686  ;;  %5690 = vpow2.f32 %v3857_v37  ;;  %v3589_v53 = vpack.c.bf16 %v5514_v40, %v5513_v44  ;;  %v5519_v12 = vunpack.i.h.bf16 %v5517_v13  ;;  %v5518_v56 = vunpack.i.l.bf16 %v5517_v13  ;;  %v4617_v40 = vld [vmem:[%s7017_s5 + $0x30] sm:$0xf] }
0x1a78   :  { %v3874_v51 = vsel %vm198_vm1, %v6863_v5, 0.0  ;;  %v5522_v42 = vpop.permute.xlu1 %5521 }
0x1a79   :  { %5214 = vmatpush3.bf16.msra.mxu0 %v3589_v53  ;;  %3875 = vadd.xlane.f32.xlu0 %v3874_v51  ;;  %v3590_v14 = vpack.c.bf16 %v5519_v12, %v5518_v56  ;;  %v5524_v31 = vunpack.i.h.bf16 %v5522_v42  ;;  %v5523_v6 = vunpack.i.l.bf16 %v5522_v42  ;;  %v4087_v12 = vsel %vm879_vm6, %v4617_v40, 0  ;;  %v5725_v40 = vld [vmem:[%s7018_s6 + $0x10] sm:$0xff] }
0x1a7a   :  { %5215 = vmatprep.subr.bf16.mxu0 %v5875_v1 }
0x1a7b   :  { %v3591_v54 = vpack.c.bf16 %v5524_v31, %v5523_v6 }
0x1a7c   :  { %v5527_v27 = vpop.permute.xlu1 %5526 }
0x1a7d   :  { %5216 = vmatpush3.bf16.msra.mxu0 %v3590_v14  ;;  %v5529_v11 = vunpack.i.h.bf16 %v5527_v27  ;;  %v5528_v60 = vunpack.i.l.bf16 %v5527_v27  ;;  %v4618_v14 = vld [vmem:[%s7017_s5 + $0x34] sm:$0xf] }
0x1a7e   :  { %5229 = vmatprep.subr.bf16.mxu0 %v5875_v1 }
0x1a7f   :  { %v6869_v19 = vpop.eup %5688  ;;  %v3593_v28 = vpack.c.bf16 %v5529_v11, %v5528_v60 }
0x1a80   :  { %v3877_v47 = vsel %vm198_vm1, %v6869_v19, 0.0 }
0x1a81   :  { %v6873_v26 = vpop.eup %5690  ;;  %3878 = vadd.xlane.f32.xlu1 %v3877_v47 }
0x1a82   :  { %v3880_v45 = vsel %vm198_vm1, %v6873_v26, 0.0 }
0x1a83   :  { %3881 = vadd.xlane.f32.xlu0 %v3880_v45 }
0x1a92   :  { %5536 = vrot.lane.b32.xlu1 %v6838_v38, %s5880_s13 }
0x1a99   :  { %5531 = vrot.lane.b32.xlu0 %v6838_v38, %s5878_s25 }
0x1aa7   :  { %v3864_v43 = vpop.xlane.xlu0 %3863 }
0x1aa8   :  { %5692 = vrcp.f32 %v3864_v43 }
0x1aad   :  { %v3861_v24 = vpop.xlane.xlu1 %3860 }
0x1aae   :  { %5694 = vrcp.f32 %v3861_v24 }
0x1ab2   :  { %v5693_v61 = vpop.eup %5692 }
0x1ab3   :  { %v3892_v55 = vmul.f32 %v5693_v61, %v6843_v34 }
0x1ab8   :  { %v5695_v46 = vpop.eup %5694 }
0x1ab9   :  { %v3891_v59 = vmul.f32 %v5695_v46, %v6847_v8  ;;  %v4620_v46 = vld [vmem:[%s7017_s5 + $0x3c] sm:$0xf] }
0x1abb   :  { %v3899_v18 = vpack.c.bf16 %v3892_v55, %v3891_v59 }
0x1abd   :  { %5210 = vmatmul.mubr.msk.bf16.vlgmr.msra.gmra.mrb[108].mxu1 %vm198_vm1, %v3899_v18  ;;  %v4228_v18 = vsel %vm879_vm6, %v4620_v46, 0 }
0x1abe   :  { %5222 = vmatpush3.bf16.msra.mxu1 %v3591_v54  ;;  %5225 = vmatprep.mubr.msk.bf16.mxu1 %vm5876_vm0, %v5875_v1 }
0x1abf   :  { %5223 = vmatprep.subr.bf16.mxu1 %v5875_v1 }
0x1afe   :  { %v3867_v38 = vpop.xlane.xlu1 %3866 }
0x1aff   :  { %5696 = vrcp.f32 %v3867_v38 }
0x1b02   :  { %v3870_v57 = vpop.xlane.xlu0 %3869  ;;  %v3873_v63 = vpop.xlane.xlu1 %3872 }
0x1b03   :  { %5698 = vrcp.f32 %v3870_v57 }
0x1b06   :  { %v3876_v10 = vpop.xlane.xlu0 %3875 }
0x1b07   :  { %5700 = vrcp.f32 %v3876_v10 }
0x1b08   :  { %5702 = vrcp.f32 %v3873_v63 }
0x1b09   :  { %v5697_v34 = vpop.eup %5696 }
0x1b0a   :  { %v3893_v62 = vmul.f32 %v5697_v34, %v6851_v58 }
0x1b0d   :  { %v5699_v8 = vpop.eup %5698 }
0x1b0e   :  { %v3879_v49 = vpop.xlane.xlu1 %3878  ;;  %v3894_v23 = vmul.f32 %v5699_v8, %v6857_v20 }
0x1b0f   :  { %5704 = vrcp.f32 %v3879_v49 }
0x1b10   :  { %v3882_v25 = vpop.xlane.xlu0 %3881  ;;  %v3900_v7 = vpack.c.bf16 %v3894_v23, %v3893_v62 }
0x1b11   :  { %5706 = vrcp.f32 %v3882_v25  ;;  %v5701_v32 = vpop.eup %5700 }
0x1b12   :  { %v5537_v29 = vpop.permute.xlu1 %5536  ;;  %5218 = vmatmul.mubr.msk.bf16.vlgmr.msra.gmra.mrb[100].mxu0 %vm198_vm1, %v3900_v7  ;;  %v5703_v17 = vpop.eup %5702  ;;  %v3896_v21 = vmul.f32 %v5701_v32, %v6863_v5 }
0x1b13   :  { %v5539_v33 = vunpack.i.h.bf16 %v5537_v29  ;;  %v5538_v22 = vunpack.i.l.bf16 %v5537_v29  ;;  %5230 = vmatpush3.bf16.msra.mxu0 %v3593_v28  ;;  %5233 = vmatprep.mubr.msk.bf16.mxu0 %vm5876_vm0, %v5875_v1  ;;  %v3895_v44 = vmul.f32 %v5703_v17, %v6855_v41 }
0x1b14   :  { %v5532_v50 = vpop.permute.xlu0 %5531  ;;  %5231 = vmatprep.subr.bf16.mxu0 %v5875_v1 }
0x1b15   :  { %v3594_v58 = vpack.c.bf16 %v5539_v33, %v5538_v22  ;;  %v5534_v30 = vunpack.i.h.bf16 %v5532_v50  ;;  %v5533_v20 = vunpack.i.l.bf16 %v5532_v50  ;;  %v3901_v53 = vpack.c.bf16 %v3896_v21, %v3895_v44 }
0x1b16   :  { %v4280_v44 = vrot.slane %v5725_v40, %v2111_v48 }
0x1b17   :  { %v3592_v37 = vpack.c.bf16 %v5534_v30, %v5533_v20  ;;  %5232 = vmatpush3.bf16.msra.mxu0 %v3594_v58 }
0x1b18   :  { %5243 = vmatprep.subr.bf16.mxu0 %v5875_v1 }
0x1b19   :  { %v5705_v13 = vpop.eup %5704  ;;  %5224 = vmatpush3.bf16.msra.mxu1 %v3592_v37 }
0x1b1a   :  { %5237 = vmatprep.subr.bf16.mxu1 %v5875_v1  ;;  %v3897_v5 = vmul.f32 %v5705_v13, %v6869_v19  ;;  %v4134_v19 = vsel %vm879_vm6, %v4618_v14, 0 }
0x1b1b   :  { %v5707_v56 = vpop.eup %5706 }
0x1b1c   :  { %v3898_v51 = vmul.f32 %v5707_v56, %v6873_v26  ;;  %5226 = vmatmul.mubr.msk.bf16.vlgmr.msra.gmra.mrb[112].mxu1 %vm198_vm1, %v3901_v53  ;;  %v4619_v26 = vld [vmem:[%s7017_s5 + $0x38] sm:$0xf] }
0x1b1d   :  { %5238 = vmatpush3.bf16.msra.mxu1 %v4087_v12  ;;  %5239 = vmatprep.mubr.msk.bf16.mxu1 %vm5876_vm0, %v5875_v1  ;;  %v4181_v24 = vsel %vm879_vm6, %v4619_v26, 0 }
0x1b1e   :  { %v3902_v41 = vpack.c.bf16 %v3898_v51, %v3897_v5  ;;  %5249 = vmatprep.subr.bf16.mxu1 %v5875_v1 }
0x1b20   :  { %5234 = vmatmul.mubr.msk.bf16.vlgmr.msra.gmra.mrb[104].mxu0 %vm198_vm1, %v3902_v41 }
0x1b21   :  { %5245 = vmatprep.mubr.msk.bf16.mxu0 %vm5876_vm0, %v5875_v1  ;;  %5244 = vmatpush3.bf16.msra.mxu0 %v4134_v19 }
0x1b22   :  { %5255 = vmatprep.subr.bf16.mxu0 %v5875_v1 }
0x1b90   :  { %v3940_v47 = vpop.f32.mrb[108].mxu1 }
0x1b91   :  { %v5211_v45 = vpop.f32.mrb[109].mxu1 }
0x1b92   :  { %v3943_v42 = vpop.f32.mrb[110].mxu1 }
0x1b93   :  { %v4079_v27 = vpack.c.bf16 %v3943_v42, %v3940_v47  ;;  %v5212_v43 = vpop.f32.mrb[111].mxu1 }
0x1b95   :  { %5240 = vmatmul.mubr.msk.bf16.vlgmr.msra.gmra.mrb[116].mxu1 %vm389_vm2, %v4079_v27 }
0x1b96   :  { %5250 = vmatpush3.bf16.msra.mxu1 %v4181_v24  ;;  %5251 = vmatprep.mubr.msk.bf16.mxu1 %vm5876_vm0, %v5875_v1 }
0x1b97   :  { %5261 = vmatprep.subr.bf16.mxu1 %v5875_v1 }
0x1be5   :  { %v3984_v61 = vpop.f32.mrb[100].mxu0 }
0x1be6   :  { %v5219_v31 = vpop.f32.mrb[101].mxu0 }
0x1be7   :  { %v3987_v6 = vpop.f32.mrb[102].mxu0 }
0x1be8   :  { %v4080_v55 = vpack.c.bf16 %v3987_v6, %v3984_v61  ;;  %v5220_v59 = vpop.f32.mrb[103].mxu0  ;;  %v5559_v6 = vld [vmem:[%s7019_s7 + $0x18] sm:$0xff]  }
0x1be9   :  { %v5561_v59 = vld [vmem:[%s7021_s9 + $0x28] sm:$0xff]  }
0x1bea   :  { %5246 = vmatmul.mubr.msk.bf16.vlgmr.msra.gmra.mrb[108].mxu0 %vm389_vm2, %v4080_v55  ;;  %v5560_v55 = vld [vmem:[%s7021_s9 + $0x20] sm:$0xff]  }
0x1beb   :  { %5256 = vmatpush3.bf16.msra.mxu0 %v4228_v18  ;;  %5257 = vmatprep.mubr.msk.bf16.mxu0 %vm5876_vm0, %v5875_v1 }
0x1bec   :  { %5269 = vmatprep.subr.bf16.mxu0 %v5875_v1 }
0x1bef   :  { %v4028_v54 = vpop.f32.mrb[112].mxu1 }
0x1bf0   :  { %v5227_v38 = vpop.f32.mrb[113].mxu1 }
0x1bf1   :  { %v4031_v57 = vpop.f32.mrb[114].mxu1 }
0x1bf2   :  { %v4081_v10 = vpack.c.bf16 %v4031_v57, %v4028_v54  ;;  %v5228_v63 = vpop.f32.mrb[115].mxu1 }
0x1bf3   :  { %v4072_v34 = vpop.f32.mrb[104].mxu0 }
0x1bf4   :  { %v5235_v8 = vpop.f32.mrb[105].mxu0  ;;  %5252 = vmatmul.mubr.msk.bf16.vlgmr.msra.gmra.mrb[120].mxu1 %vm389_vm2, %v4081_v10 }
0x1bf5   :  { %v4075_v11 = vpop.f32.mrb[106].mxu0  ;;  %5265 = vmatprep.mubr.msk.bf16.mxu1 %vm5876_vm0, %v5875_v1  ;;  %v4314_v8 = vrot.slane %v6749_v3, %v6124_v0  ;;  %v5563_v0 = vld [vmem:[%s7021_s9 + $0x38] sm:$0xff]  }
0x1bf6   :  { %v4082_v60 = vpack.c.bf16 %v4075_v11, %v4072_v34  ;;  %v5236_v49 = vpop.f32.mrb[107].mxu0 }
0x1bf8   :  { %5258 = vmatmul.mubr.msk.bf16.vlgmr.msra.gmra.mrb[112].mxu0 %vm389_vm2, %v4082_v60 }
0x1bf9   :  { %5277 = vmatprep.mubr.msk.bf16.mxu0 %vm5876_vm0, %v5875_v1  ;;  %5270 = vmatpush3.bf16.msra.mxu0 %v5560_v55 }
0x1bfa   :  { %5271 = vmatprep.subr.bf16.mxu0 %v5875_v1 }
0x1bfd   :  { %5272 = vmatpush3.bf16.msra.mxu0 %v5561_v59 }
0x1bfe   :  { %5273 = vmatprep.subr.bf16.mxu0 %v5875_v1 }
0x1c68   :  { %v4123_v62 = vpop.f32.mrb[116].mxu1 }
0x1c69   :  { %v5241_v23 = vpop.f32.mrb[117].mxu1 }
0x1c6a   :  { %v4126_v25 = vpop.f32.mrb[118].mxu1  ;;  %v4320_v23 = vrot.slane %v6749_v3, %v6214_v52 }
0x1c6b   :  { %v5242_v7 = vpop.f32.mrb[119].mxu1 }
0x1cbd   :  { %v4170_v28 = vpop.f32.mrb[108].mxu0 }
0x1cbe   :  { %v4271_v29 = vadd.f32 %v4170_v28, %v4123_v62  ;;  %v5247_v32 = vpop.f32.mrb[109].mxu0 }
0x1cbf   :  { %v4173_v33 = vpop.f32.mrb[110].mxu0  ;;  %v5562_v32 = vld [vmem:[%s7021_s9 + $0x30] sm:$0xff]  }
0x1cc0   :  { %v4272_v22 = vadd.f32 %v4173_v33, %v4126_v25  ;;  %v5248_v50 = vpop.f32.mrb[111].mxu0  ;;  %5274 = vmatpush3.bf16.msra.mxu0 %v5562_v32  ;;  %v4670_v33 = vld [vmem:[#allocation10 + $0x1] ss:$0 sm:$0xff] }
0x1cc1   :  { %5275 = vmatprep.subr.bf16.mxu0 %v5875_v1 }
0x1cc4   :  { %5276 = vmatpush3.bf16.msra.mxu0 %v5563_v0 }
0x1cc7   :  { %v4217_v17 = vpop.f32.mrb[120].mxu1 }
0x1cc8   :  { %v4273_v58 = vadd.f32 %v4271_v29, %v4217_v17  ;;  %v5253_v30 = vpop.f32.mrb[121].mxu1 }
0x1cc9   :  { %v4220_v20 = vpop.f32.mrb[122].mxu1 }
0x1cca   :  { %v4274_v21 = vadd.f32 %v4272_v22, %v4220_v20  ;;  %v5254_v37 = vpop.f32.mrb[123].mxu1 }
0x1ccb   :  { %v4264_v13 = vpop.f32.mrb[112].mxu0 }
0x1ccc   :  { %v4275_v53 = vadd.f32 %v4273_v58, %v4264_v13  ;;  %v5259_v12 = vpop.f32.mrb[113].mxu0 }
0x1ccd   :  { %v4267_v56 = vpop.f32.mrb[114].mxu0 }
0x1cce   :  { %v4281_v5 = vadd.f32 %v4280_v44, %v4275_v53  ;;  %v4276_v51 = vadd.f32 %v4274_v21, %v4267_v56  ;;  %v5260_v41 = vpop.f32.mrb[115].mxu0 }
0x1cd0   :  { %v4282_v14 = vadd.f32 %v4280_v44, %v4276_v51  ;;  %v4283_v19 = vadd.f32 %v4281_v5, %v6755_v16 }
0x1cd2   :  { %v4285_v47 = vsel %vm198_vm1, %v4283_v19, 0.0  ;;  %v4284_v26 = vadd.f32 %v4282_v14, %v6757_v39  ;;  %v5558_v39 = vld [vmem:[%s7019_s7 + $0x10] sm:$0xff]  }
0x1cd3   :  { %4286 = vadd.xlane.f32.xlu0 %v4285_v47  ;;  %5262 = vmatpush3.bf16.msra.mxu1 %v5558_v39 }
0x1cd4   :  { %v4288_v45 = vsel %vm198_vm1, %v4284_v26, 0.0  ;;  %5263 = vmatprep.subr.bf16.mxu1 %v5875_v1  ;;  %v4392_v1 = vrot.slane %v6749_v3, %v6342_v9 }
0x1cd5   :  { %4289 = vadd.xlane.f32.xlu1 %v4288_v45 }
0x1cd7   :  { %5264 = vmatpush3.bf16.msra.mxu1 %v5559_v6  ;;  %v4492_v6 = vrot.slane %v6749_v3, %v6320_v35 }
0x1d60   :  { %v4287_v2 = vpop.xlane.xlu0 %4286 }
0x1d61   :  { %v4291_v48 = vmul.f32 0.03125, %v4287_v2 }
0x1d62   :  { %v4290_v42 = vpop.xlane.xlu1 %4289 }
0x1d63   :  { %v4293_v27 = vsub.f32 %v4283_v19, %v4291_v48  ;;  %v4292_v43 = vmul.f32 0.03125, %v4290_v42 }
0x1d65   :  { %v4294_v24 = vsub.f32 %v4284_v26, %v4292_v43  ;;  %v4295_v61 = vmul.f32 %v4293_v27, %v4293_v27 }
0x1d67   :  { %v4297_v46 = vsel %vm198_vm1, %v4295_v61, 0.0  ;;  %v4296_v31 = vmul.f32 %v4294_v24, %v4294_v24 }
0x1d68   :  { %4298 = vadd.xlane.f32.xlu0 %v4297_v46 }
0x1d69   :  { %v4300_v16 = vsel %vm198_vm1, %v4296_v31, 0.0 }
0x1d6c   :  { %4301 = vadd.xlane.f32.xlu0 %v4300_v16 }
0x1df5   :  { %v4299_v18 = vpop.xlane.xlu0 %4298 }
0x1df6   :  { %v4303_v54 = vmul.f32 0.03125, %v4299_v18  ;;  %v4498_v18 = vrot.slane %v6749_v3, %v6261_v36 }
0x1df8   :  { %v4305_v38 = vadd.f32 1e-05, %v4303_v54 }
0x1df9   :  { %v4302_v57 = vpop.xlane.xlu0 %4301 }
0x1dfa   :  { %5708 = vrsqrt.f32 %v4305_v38  ;;  %v4304_v10 = vmul.f32 0.03125, %v4302_v57 }
0x1dfc   :  { %v4306_v63 = vadd.f32 1e-05, %v4304_v10 }
0x1dfe   :  { %5710 = vrsqrt.f32 %v4306_v63 }
0x1e04   :  { %v5709_v34 = vpop.eup %5708 }
0x1e05   :  { %v4309_v11 = vmul.f32 %v5709_v34, %v4293_v27 }
0x1e07   :  { %v4315_v49 = vmul.f32 %v4314_v8, %v4309_v11 }
0x1e08   :  { %v5711_v60 = vpop.eup %5710 }
0x1e09   :  { %v4310_v62 = vmul.f32 %v5711_v60, %v4294_v24  ;;  %v4321_v7 = vadd.f32 %v4320_v23, %v4315_v49 }
0x1e0b   :  { %v4316_v25 = vmul.f32 %v4314_v8, %v4310_v62 }
0x1e0d   :  { %v4322_v28 = vadd.f32 %v4320_v23, %v4316_v25 }
0x1e0f   :  { %v4323_v29 = vpack.c.bf16 %v4322_v28, %v4321_v7 }
0x1e11   :  { %5266 = vmatmul.mubr.msk.bf16.vlgmr.msra.gmra.mrb[124].mxu1 %vm198_vm1, %v4323_v29 }
0x1ee4   :  { %v4379_v52 = vpop.f32.mrb[124].mxu1 }
0x1ee5   :  { %v4380_v22 = vadd.f32 %v4670_v33, %v4379_v52  ;;  %v5267_v50 = vpop.f32.mrb[125].mxu1 }
0x1ee6   :  { %v4382_v17 = vpop.f32.mrb[126].mxu1  ;;  %v4501_v50 = vld [vmem:[%s7022_s10] sm:$0x3]  ;;  %s5836_s10 = scalar_lea.vmem %s4548_s4, 256 }
0x1ee7   :  { %v4383_v58 = vadd.f32 %v4670_v33, %v4382_v17  ;;  %v5268_v30 = vpop.f32.mrb[127].mxu1  ;;  %v4386_v20 = vmax.f32 %v4380_v22, 0.0  ;;  %v4531_v17 = vrot.slane %v4501_v50, %v6075_v15  ;;  %p5837_p12 = scmp.ne.s32.totalorder %s4548_s4, %s5836_s10  ;;  %p5842_p0 = scmp.lt.s32.totalorder %s5836_s10, %s5836_s10 }
0x1ee9   :  { %v4387_v21 = vmax.f32 %v4383_v58, 0.0  ;;  %p5843_p1 = por %p5842_p0, %p5841_p13 }
0x1eeb   :  { %v4388_v37 = vpack.c.bf16 %v4387_v21, %v4386_v20  ;;  %v4537_v20 = vrot.slane %v4501_v50, %v6046_v4  ;;  %p5844_p2 = pnand %p5843_p1, %p5837_p12 }
0x1eed   :  { %5278 = vmatmul.mubr.msk.bf16.vlgmr.msra.gmra.mrb[116].mxu0 %vm2249_vm7, %v4388_v37 }
0x1fc0   :  { %v4454_v40 = vpop.f32.mrb[116].mxu0 }
0x1fc1   :  { %v4455_v44 = vadd.f32 %v4454_v40, %v4392_v1  ;;  %v5279_v13 = vpop.f32.mrb[117].mxu0 }
0x1fc2   :  { %v4457_v53 = vpop.f32.mrb[118].mxu0 }
0x1fc3   :  { %v4461_v12 = vadd.f32 %v4455_v44, %v4321_v7  ;;  %v4458_v56 = vadd.f32 %v4457_v53, %v4392_v1  ;;  %v5280_v5 = vpop.f32.mrb[119].mxu0 }
0x1fc5   :  { %v4462_v51 = vadd.f32 %v4458_v56, %v4322_v28  ;;  %v4463_v41 = vsel %vm198_vm1, %v4461_v12, 0.0 }
0x1fc6   :  { %4464 = vadd.xlane.f32.xlu1 %v4463_v41 }
0x1fc7   :  { %v4466_v14 = vsel %vm198_vm1, %v4462_v51, 0.0 }
0x1fc8   :  { %4467 = vadd.xlane.f32.xlu0 %v4466_v14 }
0x2053   :  { %v4465_v19 = vpop.xlane.xlu1 %4464 }
0x2054   :  { %v4469_v47 = vmul.f32 0.03125, %v4465_v19 }
0x2055   :  { %v4468_v26 = vpop.xlane.xlu0 %4467 }
0x2056   :  { %v4471_v45 = vsub.f32 %v4461_v12, %v4469_v47  ;;  %v4470_v2 = vmul.f32 0.03125, %v4468_v26 }
0x2058   :  { %v4472_v9 = vsub.f32 %v4462_v51, %v4470_v2  ;;  %v4473_v48 = vmul.f32 %v4471_v45, %v4471_v45 }
0x205a   :  { %v4475_v42 = vsel %vm198_vm1, %v4473_v48, 0.0  ;;  %v4474_v27 = vmul.f32 %v4472_v9, %v4472_v9 }
0x205b   :  { %4476 = vadd.xlane.f32.xlu1 %v4475_v42 }
0x205c   :  { %v4478_v43 = vsel %vm198_vm1, %v4474_v27, 0.0 }
0x205d   :  { %4479 = vadd.xlane.f32.xlu0 %v4478_v43 }
0x20e8   :  { %v4477_v24 = vpop.xlane.xlu1 %4476 }
0x20e9   :  { %v4481_v61 = vmul.f32 0.03125, %v4477_v24 }
0x20ea   :  { %v4480_v46 = vpop.xlane.xlu0 %4479 }
0x20eb   :  { %v4483_v31 = vadd.f32 1e-05, %v4481_v61  ;;  %v4482_v16 = vmul.f32 0.03125, %v4480_v46 }
0x20ed   :  { %5712 = vrsqrt.f32 %v4483_v31  ;;  %v4484_v39 = vadd.f32 1e-05, %v4482_v16 }
0x20ef   :  { %5714 = vrsqrt.f32 %v4484_v39 }
0x20f7   :  { %v5713_v55 = vpop.eup %5712 }
0x20f8   :  { %v4487_v59 = vmul.f32 %v5713_v55, %v4471_v45 }
0x20f9   :  { %v5715_v54 = vpop.eup %5714 }
0x20fa   :  { %v4493_v38 = vmul.f32 %v4492_v6, %v4487_v59  ;;  %v4488_v57 = vmul.f32 %v5715_v54, %v4472_v9 }
0x20fc   :  { %v4499_v10 = vadd.f32 %v4498_v18, %v4493_v38  ;;  %v4494_v63 = vmul.f32 %v4492_v6, %v4488_v57 }
0x20fe   :  { %v4502_v34 = vsel %vm198_vm1, %v4499_v10, 0.0  ;;  %v4500_v8 = vadd.f32 %v4498_v18, %v4494_v63 }
0x20ff   :  { %4503 = vadd.xlane.f32.xlu1 %v4502_v34 }
0x2100   :  { %v4505_v11 = vsel %vm198_vm1, %v4500_v8, 0.0 }
0x2101   :  { %4506 = vadd.xlane.f32.xlu0 %v4505_v11 }
0x218c   :  { %v4504_v60 = vpop.xlane.xlu1 %4503 }
0x218d   :  { %v4508_v49 = vmul.f32 0.03125, %v4504_v60 }
0x218e   :  { %v4507_v35 = vpop.xlane.xlu0 %4506 }
0x218f   :  { %v4510_v62 = vsub.f32 %v4499_v10, %v4508_v49  ;;  %v4509_v23 = vmul.f32 0.03125, %v4507_v35 }
0x2191   :  { %v4511_v25 = vsub.f32 %v4500_v8, %v4509_v23  ;;  %v4512_v7 = vmul.f32 %v4510_v62, %v4510_v62 }
0x2193   :  { %v4514_v36 = vsel %vm198_vm1, %v4512_v7, 0.0  ;;  %v4513_v3 = vmul.f32 %v4511_v25, %v4511_v25 }
0x2194   :  { %4515 = vadd.xlane.f32.xlu1 %v4514_v36 }
0x2195   :  { %v4517_v28 = vsel %vm198_vm1, %v4513_v3, 0.0 }
0x2196   :  { %4518 = vadd.xlane.f32.xlu0 %v4517_v28 }
0x2221   :  { %v4516_v29 = vpop.xlane.xlu1 %4515 }
0x2222   :  { %v4520_v32 = vmul.f32 0.03125, %v4516_v29 }
0x2223   :  { %v4519_v0 = vpop.xlane.xlu0 %4518 }
0x2224   :  { %v4522_v33 = vadd.f32 1e-05, %v4520_v32  ;;  %v4521_v52 = vmul.f32 0.03125, %v4519_v0 }
0x2226   :  { %5716 = vrsqrt.f32 %v4522_v33  ;;  %v4523_v22 = vadd.f32 1e-05, %v4521_v52 }
0x2228   :  { %5718 = vrsqrt.f32 %v4523_v22 }
0x2230   :  { %v5717_v58 = vpop.eup %5716 }
0x2231   :  { %v4526_v30 = vmul.f32 %v5717_v58, %v4510_v62 }
0x2232   :  { %v5719_v21 = vpop.eup %5718 }
0x2233   :  { %v4527_v37 = vmul.f32 %v5719_v21, %v4511_v25  ;;  %v4532_v1 = vmul.f32 %v4531_v17, %v4526_v30 }
0x2235   :  { %v4533_v40 = vmul.f32 %v4531_v17, %v4527_v37  ;;  %v4538_v44 = vadd.f32 %v4537_v20, %v4532_v1 }
0x2237   :  { %v4539_v13 = vadd.f32 %v4537_v20, %v4533_v40  ;;  %4540 = vst.msk [vmem:[#allocation11] sm:$0xff] %vm198_vm1, %v4538_v44 }
0x2239   :  { %4541 = vst.msk [vmem:[#allocation11 + $0x8] sm:$0xff] %vm198_vm1, %v4539_v13 }
0x223a   :  { %5847 = shalt.err (!%p5844_p2)
}
0x223b   :  { %s5848_s12 = scalar_lea.hbm %s7023_s11, 256 }
0x223c   :  { %p5849_p3 = scmp.ne.s32.totalorder %s7023_s11, %s5848_s12  ;;  %p5852_p4 = scmp.lt.u32.totalorder %s5848_s12, %s7023_s11 }
0x223e   :  { %p5854_p5 = pnand %p5852_p4, %p5849_p3 }
0x2240   :  { %5857 = shalt.err (!%p5854_p5)
}
0x2241   :  { %4553 = dma.vmem_to_hbm [thread:$0]  %s4548_s4, 256, %s7023_s11, [#allocation4], %s5868_s29, %s5868_s29, %s5869_s30  }
0x2242   :  { %5864 = dma.done.wait [#allocation4], 256  }
0x2243   :  { %5865 = vsyncadd [#allocation4], 4294967040 }
0x2244   :  { %4557 = vsyncpa [#allocation3], 1 }
0x2245   :  { %4558 = vsyncpa [#allocation6], 1 }
0x2246   :  { %4559 = vsyncpa [#allocation9], 1 }
0x2247   :  { %4560 = vsyncpa [#allocation4], 1 }

</bundles_post_ra>
